<compile_context>
chip_gen: v7x
topology: tpu7x:2x2x1
jax: 0.10.0
libtpu: 0.0.40
codegen_flags: <defaults>
</compile_context>

<pallas_src>
import jax
import jax.numpy as jnp
from jax.experimental import pallas as pl
from jax.experimental.pallas import tpu as pltpu


# --------------------------------------------------------------------------- #
# Static (trace-time) tap tables.
# act1 rows: P = (oh%2*2 + ow%2)*49 + (oh//2)*7 + (ow//2)   (phase-grouped)
# act2 rows: s = oh2*7 + ow2   (rows with ow2==6 are garbage, never consumed)
# a3   rows: t = oh3*7 + ow3   (only 16 of 25 rows valid, compacted later)
# --------------------------------------------------------------------------- #
_CONV2_TAPS = []                       # (tap_index, act1 slab base)
for _i in range(4):
    for _j in range(4):
        _ph = (_i % 2) * 2 + (_j % 2)
        _CONV2_TAPS.append((_i * 4 + _j, _ph * 49 + (_i // 2) * 7 + (_j // 2)))

_CONV3_TAPS = [(_i * 3 + _j, _i * 7 + _j) for _i in range(3) for _j in range(3)]

# Row offsets of the conv-weight blocks inside the packed `wc` operand.
_W1_OFF = 0        # rows [0, 256)    cols [0, 32)
_W2_OFF = 256      # rows [256, 768)  : 16 taps x 32 rows, 64 cols
_W3_OFF = 768      # rows [768, 1344) : 9 taps x 64 rows, 64 cols


# --------------------------------------------------------------------------- #
# Fused kernel: conv1 -> conv2 -> conv3 -> dense -> out, all in VMEM.
# --------------------------------------------------------------------------- #
def _bigmodel_kernel(p1_ref, wc_ref, bias_ref, wd_hbm, wo_hbm,   # inputs
                     out_ref,                                    # output
                     act1_ref, act2_ref, a3_ref, flat_ref,       # scratch
                     wd_vmem, wo_vmem, dma_sem):
    f32 = jnp.float32
    bf16 = jnp.bfloat16

    # Opt 1: start the big dense / out-head weight DMAs immediately so the
    # ~1.15 MiB transfer overlaps the conv compute below.
    wd_cp = pltpu.make_async_copy(wd_hbm, wd_vmem, dma_sem.at[0])
    wo_cp = pltpu.make_async_copy(wo_hbm, wo_vmem, dma_sem.at[1])
    wd_cp.start()
    wo_cp.start()

    b1 = bias_ref[0:1, 0:32]
    b2 = bias_ref[1:2, 0:64]
    b3 = bias_ref[2:3, 0:64]
    bd = bias_ref[3:4, 0:512]
    bo = bias_ref[4:5, 0:128]

    # ---- conv1 (8x8 stride 4): one MXU matmul on the pre-built, conv2-phase-
    #      grouped im2col patches. ------------------------------------------
    a1 = jnp.dot(p1_ref[...], wc_ref[_W1_OFF:_W1_OFF + 256, 0:32],
                 preferred_element_type=f32)
    act1_ref[...] = jnp.maximum(a1 + b1, 0.0)                    # (196, 32)

    # ---- conv2 (4x4 stride 2): tap-wise matmul accumulation on contiguous
    #      41-row slabs of act1 (opt 3: no im2col, no masked-store storm). ---
    a2 = jnp.zeros((41, 64), f32)
    for t, base in _CONV2_TAPS:
        lhs = act1_ref[base:base + 41, :].astype(bf16)           # (41, 32)
        w2t = wc_ref[_W2_OFF + t * 32:_W2_OFF + (t + 1) * 32, :] # (32, 64)
        a2 = a2 + jnp.dot(lhs, w2t, preferred_element_type=f32)
    act2_ref[...] = jnp.maximum(a2 + b2, 0.0)                    # (41, 64)

    # ---- conv3 (3x3 stride 1): same trick on 25-row slabs of act2 (opt 4). -
    a3 = jnp.zeros((25, 64), f32)
    for t, base in _CONV3_TAPS:
        lhs = act2_ref[base:base + 25, :].astype(bf16)           # (25, 64)
        w3t = wc_ref[_W3_OFF + t * 64:_W3_OFF + (t + 1) * 64, :] # (64, 64)
        a3 = a3 + jnp.dot(lhs, w3t, preferred_element_type=f32)
    a3_ref[...] = jnp.maximum(a3 + b3, 0.0)                      # (25, 64)

    # Compact the 16 valid conv3 rows (t = oh3*7 + ow3) into the (1, 1024)
    # dense input; torch's c*16+p flatten order is folded into `wdr`
    # (flat index k = p*64 + c with p = oh3*4 + ow3).
    for p in range(16):
        s = (p // 4) * 7 + (p % 4)
        flat_ref[0:1, p * 64:(p + 1) * 64] = a3_ref[s:s + 1, :]

    # ---- dense (512): single (1,1024) x (1024,512) matmul (opt 2). ---------
    wd_cp.wait()
    y = jnp.dot(flat_ref[...].astype(bf16), wd_vmem[...],
                preferred_element_type=f32) + bd
    y = jnp.maximum(y, 0.0).astype(bf16)                         # (1, 512)

    # ---- out head: N padded 18 -> 128 (lane-dense store). ------------------
    wo_cp.wait()
    out_ref[...] = jnp.dot(y, wo_vmem[...], preferred_element_type=f32) + bo


_SCRATCH = [
    pltpu.VMEM((196, 32), jnp.float32),      # act1 (conv1 out, phase-grouped)
    pltpu.VMEM((41, 64), jnp.float32),       # act2 (conv2 out, 7-strided rows)
    pltpu.VMEM((25, 64), jnp.float32),       # a3   (conv3 out, 7-strided rows)
    pltpu.VMEM((1, 1024), jnp.float32),      # compacted/flattened dense input
    pltpu.VMEM((1024, 512), jnp.bfloat16),   # dense weight (manual-DMA target)
    pltpu.VMEM((512, 128), jnp.bfloat16),    # out-head weight (manual-DMA target)
    pltpu.SemaphoreType.DMA((2,)),
]


# --------------------------------------------------------------------------- #
# Wrapper-side conv1 im2col (one XLA transpose, rows grouped by conv2 phase).
# --------------------------------------------------------------------------- #
def _conv1_patches(x0):
    """(4, 60, 60) f32 -> (196, 256) bf16 im2col for conv1 (8x8, stride 4).

    Row p = (oh%2*2 + ow%2)*49 + (oh//2)*7 + (ow//2); col k = (i*8+j)*4 + c,
    matching the init-time re-layout of the conv1 weight block in `wc`.
    """
    xr = x0.reshape(4, 15, 4, 15, 4)                 # [c, A, ri, B, rj]
    slabs = [xr[:, qi:qi + 14, :, qj:qj + 14, :]     # [c, oh, ri, ow, rj]
             for qi in (0, 1) for qj in (0, 1)]
    st = jnp.stack(slabs, axis=0).reshape(2, 2, 4, 14, 4, 14, 4)
    st = st.reshape(2, 2, 4, 7, 2, 4, 7, 2, 4)       # [qi,qj,c,a,ri2,ri,b,rj2,rj]
    st = st.transpose(4, 7, 3, 6, 0, 5, 1, 8, 2)     # [ri2,rj2,a,b,qi,ri,qj,rj,c]
    return st.reshape(196, 256).astype(jnp.bfloat16)


def big_model_forward(x_nchw, params):
    """x_nchw: (1, 4, 60, 60) f32 -> (1, 18) f32 (same semantics as BigModel)."""
    assert x_nchw.shape == (1, 4, 60, 60), x_nchw.shape
    p1 = _conv1_patches(x_nchw[0].astype(jnp.float32))
    out = pl.pallas_call(
        _bigmodel_kernel,
        out_shape=jax.ShapeDtypeStruct((1, 128), jnp.float32),
        in_specs=[
            pl.BlockSpec(memory_space=pltpu.MemorySpace.VMEM),   # p1 patches
            pl.BlockSpec(memory_space=pltpu.MemorySpace.VMEM),   # packed conv w
            pl.BlockSpec(memory_space=pltpu.MemorySpace.VMEM),   # packed biases
            pl.BlockSpec(memory_space=pl.ANY),                    # dense w (HBM)
            pl.BlockSpec(memory_space=pl.ANY),                    # out w   (HBM)
        ],
        out_specs=pl.BlockSpec(memory_space=pltpu.MemorySpace.VMEM),
        scratch_shapes=_SCRATCH,
    )(p1, params["wc"], params["bias"], params["wdr"], params["wop"])
    return out[:, :18]


# --------------------------------------------------------------------------- #
# Parameters: raw torch-layout init + one-time kernel re-layout / bf16 cast.
# --------------------------------------------------------------------------- #
def init_raw_params(key, sigma=0.05):
    ks = jax.random.split(key, 10)
    n = jax.random.normal
    return {
        "w1": n(ks[0], (32, 4, 8, 8), jnp.float32) * sigma,
        "b1": n(ks[1], (32,), jnp.float32) * sigma,
        "w2": n(ks[2], (64, 32, 4, 4), jnp.float32) * sigma,
        "b2": n(ks[3], (64,), jnp.float32) * sigma,
        "w3": n(ks[4], (64, 64, 3, 3), jnp.float32) * sigma,
        "b3": n(ks[5], (64,), jnp.float32) * sigma,
        "wd": n(ks[6], (512, 1024), jnp.float32) * sigma,   # torch Linear (out,in)
        "bd": n(ks[7], (512,), jnp.float32) * sigma,
        "wo": n(ks[8], (18, 512), jnp.float32) * sigma,
        "bo": n(ks[9], (18,), jnp.float32) * sigma,
    }


def prepare_params(raw):
    """One-time re-layout: conv weights packed per tap into one (1344,64) bf16
    array, dense weight flattened p-major/c-minor to (1024,512), out head
    padded to 128 lanes, all biases packed into one (8,512) f32 array."""
    bf16 = jnp.bfloat16
    w1m = raw["w1"].transpose(2, 3, 1, 0).reshape(256, 32)   # row k=(i*8+j)*4+c
    w1p = jnp.zeros((256, 64), jnp.float32).at[:, :32].set(w1m)
    w2m = raw["w2"].transpose(2, 3, 1, 0).reshape(512, 64)   # tap-major, ci rows
    w3m = raw["w3"].transpose(2, 3, 1, 0).reshape(576, 64)
    wc = jnp.concatenate([w1p, w2m, w3m], axis=0).astype(bf16)     # (1344, 64)

    # wdr[p*64 + c, n] = wd[n, c*16 + p]  (torch flatten order folded in)
    wdr = (raw["wd"].T.reshape(64, 16, 512).transpose(1, 0, 2)
           .reshape(1024, 512).astype(bf16))
    wop = (jnp.zeros((512, 128), jnp.float32).at[:, :18].set(raw["wo"].T)
           .astype(bf16))

    bias = jnp.zeros((8, 512), jnp.float32)
    bias = bias.at[0, :32].set(raw["b1"])
    bias = bias.at[1, :64].set(raw["b2"])
    bias = bias.at[2, :64].set(raw["b3"])
    bias = bias.at[3, :512].set(raw["bd"])
    bias = bias.at[4, :18].set(raw["bo"])

    return {"wc": wc, "bias": bias, "wdr": wdr, "wop": wop}


# --------------------------------------------------------------------------- #
# Pure-XLA reference (f32) for a numerical sanity check.
# --------------------------------------------------------------------------- #
def _reference_forward(x, raw):
    dn = ("NCHW", "OIHW", "NCHW")
    y = jax.lax.conv_general_dilated(x, raw["w1"], (4, 4), "VALID",
                                     dimension_numbers=dn)
    y = jax.nn.relu(y + raw["b1"][None, :, None, None])
    y = jax.lax.conv_general_dilated(y, raw["w2"], (2, 2), "VALID",
                                     dimension_numbers=dn)
    y = jax.nn.relu(y + raw["b2"][None, :, None, None])
    y = jax.lax.conv_general_dilated(y, raw["w3"], (1, 1), "VALID",
                                     dimension_numbers=dn)
    y = jax.nn.relu(y + raw["b3"][None, :, None, None])
    y = y.reshape(1, -1)
    y = jax.nn.relu(y @ raw["wd"].T + raw["bd"])
    return y @ raw["wo"].T + raw["bo"]


if __name__ == "__main__":
    key = jax.random.PRNGKey(0)
    k_x, k_p = jax.random.split(key)
    x = jax.random.normal(k_x, (1, 4, 60, 60), jnp.float32)
    raw = init_raw_params(k_p, sigma=0.05)
    params = prepare_params(raw)

    fwd = jax.jit(big_model_forward)
    out = jax.block_until_ready(fwd(x, params))
    assert out.shape == (1, 18), out.shape

    # Loose check vs. f32 XLA reference (bf16 MXU operands => small drift).
    ref = _reference_forward(x, raw)
    err = float(jnp.max(jnp.abs(out - ref)))
    assert err < 0.2, f"kernel/reference mismatch: max abs err = {err}"

    print("KERNEL_OK")
</pallas_src>

<mosaic_0001>
module attributes {stable_mosaic.version = 11 : i64} {
  func.func @_bigmodel_kernel(%arg0: memref<196x256xbf16, #tpu.memory_space<vmem>>, %arg1: memref<1344x64xbf16, #tpu.memory_space<vmem>>, %arg2: memref<8x512xf32, #tpu.memory_space<vmem>>, %arg3: memref<1024x512xbf16, #tpu.memory_space<any>>, %arg4: memref<512x128xbf16, #tpu.memory_space<any>>, %arg5: memref<1x128xf32, #tpu.memory_space<vmem>>, %arg6: memref<196x32xf32, #tpu.memory_space<vmem>>, %arg7: memref<41x64xf32, #tpu.memory_space<vmem>>, %arg8: memref<25x64xf32, #tpu.memory_space<vmem>>, %arg9: memref<1x1024xf32, #tpu.memory_space<vmem>>, %arg10: memref<1024x512xbf16, #tpu.memory_space<vmem>>, %arg11: memref<512x128xbf16, #tpu.memory_space<vmem>>, %arg12: memref<2x!tpu.dma_semaphore, #tpu.memory_space<semaphore_mem>>) attributes {dimension_semantics = [], scalar_prefetch = 0 : i64, scratch_operands = 7 : i64, tpu.core_type = #tpu.core_type<tc>} {
    %c0_i32 = arith.constant 0 : i32
    %0 = tpu.memref_slice %arg12[%c0_i32] : memref<2x!tpu.dma_semaphore, #tpu.memory_space<semaphore_mem>> -> memref<1x!tpu.dma_semaphore, #tpu.memory_space<semaphore_mem>>
    %1 = tpu.memref_squeeze %0 : memref<1x!tpu.dma_semaphore, #tpu.memory_space<semaphore_mem>> -> memref<!tpu.dma_semaphore, #tpu.memory_space<semaphore_mem>>
    tpu.enqueue_dma source(%arg3 : memref<1024x512xbf16, #tpu.memory_space<any>>) target(%arg10 : memref<1024x512xbf16, #tpu.memory_space<vmem>>) target_semaphore(%1 : memref<!tpu.dma_semaphore, #tpu.memory_space<semaphore_mem>>)
    %c1_i32 = arith.constant 1 : i32
    %2 = tpu.memref_slice %arg12[%c1_i32] : memref<2x!tpu.dma_semaphore, #tpu.memory_space<semaphore_mem>> -> memref<1x!tpu.dma_semaphore, #tpu.memory_space<semaphore_mem>>
    %3 = tpu.memref_squeeze %2 : memref<1x!tpu.dma_semaphore, #tpu.memory_space<semaphore_mem>> -> memref<!tpu.dma_semaphore, #tpu.memory_space<semaphore_mem>>
    tpu.enqueue_dma source(%arg4 : memref<512x128xbf16, #tpu.memory_space<any>>) target(%arg11 : memref<512x128xbf16, #tpu.memory_space<vmem>>) target_semaphore(%3 : memref<!tpu.dma_semaphore, #tpu.memory_space<semaphore_mem>>)
    %c0 = arith.constant 0 : index
    %c0_0 = arith.constant 0 : index
    %4 = vector.load %arg2[%c0, %c0_0] : memref<8x512xf32, #tpu.memory_space<vmem>>, vector<1x32xf32>
    %c1 = arith.constant 1 : index
    %c0_1 = arith.constant 0 : index
    %5 = vector.load %arg2[%c1, %c0_1] : memref<8x512xf32, #tpu.memory_space<vmem>>, vector<1x64xf32>
    %c2 = arith.constant 2 : index
    %c0_2 = arith.constant 0 : index
    %6 = vector.load %arg2[%c2, %c0_2] : memref<8x512xf32, #tpu.memory_space<vmem>>, vector<1x64xf32>
    %c3 = arith.constant 3 : index
    %c0_3 = arith.constant 0 : index
    %7 = vector.load %arg2[%c3, %c0_3] : memref<8x512xf32, #tpu.memory_space<vmem>>, vector<1x512xf32>
    %c4 = arith.constant 4 : index
    %c0_4 = arith.constant 0 : index
    %8 = vector.load %arg2[%c4, %c0_4] : memref<8x512xf32, #tpu.memory_space<vmem>>, vector<1x128xf32>
    %c0_5 = arith.constant 0 : index
    %c0_6 = arith.constant 0 : index
    %9 = vector.load %arg0[%c0_5, %c0_6] : memref<196x256xbf16, #tpu.memory_space<vmem>>, vector<196x256xbf16>
    %c0_7 = arith.constant 0 : index
    %c0_8 = arith.constant 0 : index
    %10 = vector.load %arg1[%c0_7, %c0_8] : memref<1344x64xbf16, #tpu.memory_space<vmem>>, vector<256x32xbf16>
    %cst = arith.constant dense<0.000000e+00> : vector<196x32xf32>
    %11 = tpu.matmul %9, %10, %cst {dimension_numbers = #tpu.dot_dimension_numbers<[1], [0], [0], [1], [0, 0, 1, 1], [], []>} : vector<196x256xbf16>, vector<256x32xbf16>, vector<196x32xf32> -> vector<196x32xf32>
    %12 = vector.broadcast %4 : vector<1x32xf32> to vector<196x32xf32>
    %13 = arith.addf %11, %12 : vector<196x32xf32>
    %cst_9 = arith.constant 0.000000e+00 : f32
    %14 = vector.broadcast %cst_9 : f32 to vector<196x32xf32>
    %15 = arith.maximumf %13, %14 : vector<196x32xf32>
    %c0_10 = arith.constant 0 : index
    %c0_11 = arith.constant 0 : index
    %16 = vector.load %arg6[%c0_10, %c0_11] : memref<196x32xf32, #tpu.memory_space<vmem>>, vector<196x32xf32>
    tpu.vector_store %arg6[%c0_10, %c0_11], %15 {strides = array<i32>} : memref<196x32xf32, #tpu.memory_space<vmem>>, vector<196x32xf32>,
    %cst_12 = arith.constant 0.000000e+00 : f32
    %17 = vector.broadcast %cst_12 : f32 to vector<41x64xf32>
    %c0_13 = arith.constant 0 : index
    %c0_14 = arith.constant 0 : index
    %18 = vector.load %arg6[%c0_13, %c0_14] : memref<196x32xf32, #tpu.memory_space<vmem>>, vector<41x32xf32>
    %19 = arith.truncf %18 : vector<41x32xf32> to vector<41x32xbf16>
    %c256 = arith.constant 256 : index
    %c0_15 = arith.constant 0 : index
    %20 = vector.load %arg1[%c256, %c0_15] : memref<1344x64xbf16, #tpu.memory_space<vmem>>, vector<32x64xbf16>
    %cst_16 = arith.constant dense<0.000000e+00> : vector<41x64xf32>
    %21 = tpu.matmul %19, %20, %cst_16 {dimension_numbers = #tpu.dot_dimension_numbers<[1], [0], [0], [1], [0, 0, 1, 1], [], []>} : vector<41x32xbf16>, vector<32x64xbf16>, vector<41x64xf32> -> vector<41x64xf32>
    %22 = arith.addf %17, %21 : vector<41x64xf32>
    %c49 = arith.constant 49 : index
    %c0_17 = arith.constant 0 : index
    %23 = vector.load %arg6[%c49, %c0_17] : memref<196x32xf32, #tpu.memory_space<vmem>>, vector<41x32xf32>
    %24 = arith.truncf %23 : vector<41x32xf32> to vector<41x32xbf16>
    %c288 = arith.constant 288 : index
    %c0_18 = arith.constant 0 : index
    %25 = vector.load %arg1[%c288, %c0_18] : memref<1344x64xbf16, #tpu.memory_space<vmem>>, vector<32x64xbf16>
    %cst_19 = arith.constant dense<0.000000e+00> : vector<41x64xf32>
    %26 = tpu.matmul %24, %25, %cst_19 {dimension_numbers = #tpu.dot_dimension_numbers<[1], [0], [0], [1], [0, 0, 1, 1], [], []>} : vector<41x32xbf16>, vector<32x64xbf16>, vector<41x64xf32> -> vector<41x64xf32>
    %27 = arith.addf %22, %26 : vector<41x64xf32>
    %c1_20 = arith.constant 1 : index
    %c0_21 = arith.constant 0 : index
    %28 = vector.load %arg6[%c1_20, %c0_21] : memref<196x32xf32, #tpu.memory_space<vmem>>, vector<41x32xf32>
    %29 = arith.truncf %28 : vector<41x32xf32> to vector<41x32xbf16>
    %c320 = arith.constant 320 : index
    %c0_22 = arith.constant 0 : index
    %30 = vector.load %arg1[%c320, %c0_22] : memref<1344x64xbf16, #tpu.memory_space<vmem>>, vector<32x64xbf16>
    %cst_23 = arith.constant dense<0.000000e+00> : vector<41x64xf32>
    %31 = tpu.matmul %29, %30, %cst_23 {dimension_numbers = #tpu.dot_dimension_numbers<[1], [0], [0], [1], [0, 0, 1, 1], [], []>} : vector<41x32xbf16>, vector<32x64xbf16>, vector<41x64xf32> -> vector<41x64xf32>
    %32 = arith.addf %27, %31 : vector<41x64xf32>
    %c50 = arith.constant 50 : index
    %c0_24 = arith.constant 0 : index
    %33 = vector.load %arg6[%c50, %c0_24] : memref<196x32xf32, #tpu.memory_space<vmem>>, vector<41x32xf32>
    %34 = arith.truncf %33 : vector<41x32xf32> to vector<41x32xbf16>
    %c352 = arith.constant 352 : index
    %c0_25 = arith.constant 0 : index
    %35 = vector.load %arg1[%c352, %c0_25] : memref<1344x64xbf16, #tpu.memory_space<vmem>>, vector<32x64xbf16>
    %cst_26 = arith.constant dense<0.000000e+00> : vector<41x64xf32>
    %36 = tpu.matmul %34, %35, %cst_26 {dimension_numbers = #tpu.dot_dimension_numbers<[1], [0], [0], [1], [0, 0, 1, 1], [], []>} : vector<41x32xbf16>, vector<32x64xbf16>, vector<41x64xf32> -> vector<41x64xf32>
    %37 = arith.addf %32, %36 : vector<41x64xf32>
    %c98 = arith.constant 98 : index
    %c0_27 = arith.constant 0 : index
    %38 = vector.load %arg6[%c98, %c0_27] : memref<196x32xf32, #tpu.memory_space<vmem>>, vector<41x32xf32>
    %39 = arith.truncf %38 : vector<41x32xf32> to vector<41x32xbf16>
    %c384 = arith.constant 384 : index
    %c0_28 = arith.constant 0 : index
    %40 = vector.load %arg1[%c384, %c0_28] : memref<1344x64xbf16, #tpu.memory_space<vmem>>, vector<32x64xbf16>
    %cst_29 = arith.constant dense<0.000000e+00> : vector<41x64xf32>
    %41 = tpu.matmul %39, %40, %cst_29 {dimension_numbers = #tpu.dot_dimension_numbers<[1], [0], [0], [1], [0, 0, 1, 1], [], []>} : vector<41x32xbf16>, vector<32x64xbf16>, vector<41x64xf32> -> vector<41x64xf32>
    %42 = arith.addf %37, %41 : vector<41x64xf32>
    %c147 = arith.constant 147 : index
    %c0_30 = arith.constant 0 : index
    %43 = vector.load %arg6[%c147, %c0_30] : memref<196x32xf32, #tpu.memory_space<vmem>>, vector<41x32xf32>
    %44 = arith.truncf %43 : vector<41x32xf32> to vector<41x32xbf16>
    %c416 = arith.constant 416 : index
    %c0_31 = arith.constant 0 : index
    %45 = vector.load %arg1[%c416, %c0_31] : memref<1344x64xbf16, #tpu.memory_space<vmem>>, vector<32x64xbf16>
    %cst_32 = arith.constant dense<0.000000e+00> : vector<41x64xf32>
    %46 = tpu.matmul %44, %45, %cst_32 {dimension_numbers = #tpu.dot_dimension_numbers<[1], [0], [0], [1], [0, 0, 1, 1], [], []>} : vector<41x32xbf16>, vector<32x64xbf16>, vector<41x64xf32> -> vector<41x64xf32>
    %47 = arith.addf %42, %46 : vector<41x64xf32>
    %c99 = arith.constant 99 : index
    %c0_33 = arith.constant 0 : index
    %48 = vector.load %arg6[%c99, %c0_33] : memref<196x32xf32, #tpu.memory_space<vmem>>, vector<41x32xf32>
    %49 = arith.truncf %48 : vector<41x32xf32> to vector<41x32xbf16>
    %c448 = arith.constant 448 : index
    %c0_34 = arith.constant 0 : index
    %50 = vector.load %arg1[%c448, %c0_34] : memref<1344x64xbf16, #tpu.memory_space<vmem>>, vector<32x64xbf16>
    %cst_35 = arith.constant dense<0.000000e+00> : vector<41x64xf32>
    %51 = tpu.matmul %49, %50, %cst_35 {dimension_numbers = #tpu.dot_dimension_numbers<[1], [0], [0], [1], [0, 0, 1, 1], [], []>} : vector<41x32xbf16>, vector<32x64xbf16>, vector<41x64xf32> -> vector<41x64xf32>
    %52 = arith.addf %47, %51 : vector<41x64xf32>
    %c148 = arith.constant 148 : index
    %c0_36 = arith.constant 0 : index
    %53 = vector.load %arg6[%c148, %c0_36] : memref<196x32xf32, #tpu.memory_space<vmem>>, vector<41x32xf32>
    %54 = arith.truncf %53 : vector<41x32xf32> to vector<41x32xbf16>
    %c480 = arith.constant 480 : index
    %c0_37 = arith.constant 0 : index
    %55 = vector.load %arg1[%c480, %c0_37] : memref<1344x64xbf16, #tpu.memory_space<vmem>>, vector<32x64xbf16>
    %cst_38 = arith.constant dense<0.000000e+00> : vector<41x64xf32>
    %56 = tpu.matmul %54, %55, %cst_38 {dimension_numbers = #tpu.dot_dimension_numbers<[1], [0], [0], [1], [0, 0, 1, 1], [], []>} : vector<41x32xbf16>, vector<32x64xbf16>, vector<41x64xf32> -> vector<41x64xf32>
    %57 = arith.addf %52, %56 : vector<41x64xf32>
    %c7 = arith.constant 7 : index
    %c0_39 = arith.constant 0 : index
    %58 = vector.load %arg6[%c7, %c0_39] : memref<196x32xf32, #tpu.memory_space<vmem>>, vector<41x32xf32>
    %59 = arith.truncf %58 : vector<41x32xf32> to vector<41x32xbf16>
    %c512 = arith.constant 512 : index
    %c0_40 = arith.constant 0 : index
    %60 = vector.load %arg1[%c512, %c0_40] : memref<1344x64xbf16, #tpu.memory_space<vmem>>, vector<32x64xbf16>
    %cst_41 = arith.constant dense<0.000000e+00> : vector<41x64xf32>
    %61 = tpu.matmul %59, %60, %cst_41 {dimension_numbers = #tpu.dot_dimension_numbers<[1], [0], [0], [1], [0, 0, 1, 1], [], []>} : vector<41x32xbf16>, vector<32x64xbf16>, vector<41x64xf32> -> vector<41x64xf32>
    %62 = arith.addf %57, %61 : vector<41x64xf32>
    %c56 = arith.constant 56 : index
    %c0_42 = arith.constant 0 : index
    %63 = vector.load %arg6[%c56, %c0_42] : memref<196x32xf32, #tpu.memory_space<vmem>>, vector<41x32xf32>
    %64 = arith.truncf %63 : vector<41x32xf32> to vector<41x32xbf16>
    %c544 = arith.constant 544 : index
    %c0_43 = arith.constant 0 : index
    %65 = vector.load %arg1[%c544, %c0_43] : memref<1344x64xbf16, #tpu.memory_space<vmem>>, vector<32x64xbf16>
    %cst_44 = arith.constant dense<0.000000e+00> : vector<41x64xf32>
    %66 = tpu.matmul %64, %65, %cst_44 {dimension_numbers = #tpu.dot_dimension_numbers<[1], [0], [0], [1], [0, 0, 1, 1], [], []>} : vector<41x32xbf16>, vector<32x64xbf16>, vector<41x64xf32> -> vector<41x64xf32>
    %67 = arith.addf %62, %66 : vector<41x64xf32>
    %c8 = arith.constant 8 : index
    %c0_45 = arith.constant 0 : index
    %68 = vector.load %arg6[%c8, %c0_45] : memref<196x32xf32, #tpu.memory_space<vmem>>, vector<41x32xf32>
    %69 = arith.truncf %68 : vector<41x32xf32> to vector<41x32xbf16>
    %c576 = arith.constant 576 : index
    %c0_46 = arith.constant 0 : index
    %70 = vector.load %arg1[%c576, %c0_46] : memref<1344x64xbf16, #tpu.memory_space<vmem>>, vector<32x64xbf16>
    %cst_47 = arith.constant dense<0.000000e+00> : vector<41x64xf32>
    %71 = tpu.matmul %69, %70, %cst_47 {dimension_numbers = #tpu.dot_dimension_numbers<[1], [0], [0], [1], [0, 0, 1, 1], [], []>} : vector<41x32xbf16>, vector<32x64xbf16>, vector<41x64xf32> -> vector<41x64xf32>
    %72 = arith.addf %67, %71 : vector<41x64xf32>
    %c57 = arith.constant 57 : index
    %c0_48 = arith.constant 0 : index
    %73 = vector.load %arg6[%c57, %c0_48] : memref<196x32xf32, #tpu.memory_space<vmem>>, vector<41x32xf32>
    %74 = arith.truncf %73 : vector<41x32xf32> to vector<41x32xbf16>
    %c608 = arith.constant 608 : index
    %c0_49 = arith.constant 0 : index
    %75 = vector.load %arg1[%c608, %c0_49] : memref<1344x64xbf16, #tpu.memory_space<vmem>>, vector<32x64xbf16>
    %cst_50 = arith.constant dense<0.000000e+00> : vector<41x64xf32>
    %76 = tpu.matmul %74, %75, %cst_50 {dimension_numbers = #tpu.dot_dimension_numbers<[1], [0], [0], [1], [0, 0, 1, 1], [], []>} : vector<41x32xbf16>, vector<32x64xbf16>, vector<41x64xf32> -> vector<41x64xf32>
    %77 = arith.addf %72, %76 : vector<41x64xf32>
    %c105 = arith.constant 105 : index
    %c0_51 = arith.constant 0 : index
    %78 = vector.load %arg6[%c105, %c0_51] : memref<196x32xf32, #tpu.memory_space<vmem>>, vector<41x32xf32>
    %79 = arith.truncf %78 : vector<41x32xf32> to vector<41x32xbf16>
    %c640 = arith.constant 640 : index
    %c0_52 = arith.constant 0 : index
    %80 = vector.load %arg1[%c640, %c0_52] : memref<1344x64xbf16, #tpu.memory_space<vmem>>, vector<32x64xbf16>
    %cst_53 = arith.constant dense<0.000000e+00> : vector<41x64xf32>
    %81 = tpu.matmul %79, %80, %cst_53 {dimension_numbers = #tpu.dot_dimension_numbers<[1], [0], [0], [1], [0, 0, 1, 1], [], []>} : vector<41x32xbf16>, vector<32x64xbf16>, vector<41x64xf32> -> vector<41x64xf32>
    %82 = arith.addf %77, %81 : vector<41x64xf32>
    %c154 = arith.constant 154 : index
    %c0_54 = arith.constant 0 : index
    %83 = vector.load %arg6[%c154, %c0_54] : memref<196x32xf32, #tpu.memory_space<vmem>>, vector<41x32xf32>
    %84 = arith.truncf %83 : vector<41x32xf32> to vector<41x32xbf16>
    %c672 = arith.constant 672 : index
    %c0_55 = arith.constant 0 : index
    %85 = vector.load %arg1[%c672, %c0_55] : memref<1344x64xbf16, #tpu.memory_space<vmem>>, vector<32x64xbf16>
    %cst_56 = arith.constant dense<0.000000e+00> : vector<41x64xf32>
    %86 = tpu.matmul %84, %85, %cst_56 {dimension_numbers = #tpu.dot_dimension_numbers<[1], [0], [0], [1], [0, 0, 1, 1], [], []>} : vector<41x32xbf16>, vector<32x64xbf16>, vector<41x64xf32> -> vector<41x64xf32>
    %87 = arith.addf %82, %86 : vector<41x64xf32>
    %c106 = arith.constant 106 : index
    %c0_57 = arith.constant 0 : index
    %88 = vector.load %arg6[%c106, %c0_57] : memref<196x32xf32, #tpu.memory_space<vmem>>, vector<41x32xf32>
    %89 = arith.truncf %88 : vector<41x32xf32> to vector<41x32xbf16>
    %c704 = arith.constant 704 : index
    %c0_58 = arith.constant 0 : index
    %90 = vector.load %arg1[%c704, %c0_58] : memref<1344x64xbf16, #tpu.memory_space<vmem>>, vector<32x64xbf16>
    %cst_59 = arith.constant dense<0.000000e+00> : vector<41x64xf32>
    %91 = tpu.matmul %89, %90, %cst_59 {dimension_numbers = #tpu.dot_dimension_numbers<[1], [0], [0], [1], [0, 0, 1, 1], [], []>} : vector<41x32xbf16>, vector<32x64xbf16>, vector<41x64xf32> -> vector<41x64xf32>
    %92 = arith.addf %87, %91 : vector<41x64xf32>
    %c155 = arith.constant 155 : index
    %c0_60 = arith.constant 0 : index
    %93 = vector.load %arg6[%c155, %c0_60] : memref<196x32xf32, #tpu.memory_space<vmem>>, vector<41x32xf32>
    %94 = arith.truncf %93 : vector<41x32xf32> to vector<41x32xbf16>
    %c736 = arith.constant 736 : index
    %c0_61 = arith.constant 0 : index
    %95 = vector.load %arg1[%c736, %c0_61] : memref<1344x64xbf16, #tpu.memory_space<vmem>>, vector<32x64xbf16>
    %cst_62 = arith.constant dense<0.000000e+00> : vector<41x64xf32>
    %96 = tpu.matmul %94, %95, %cst_62 {dimension_numbers = #tpu.dot_dimension_numbers<[1], [0], [0], [1], [0, 0, 1, 1], [], []>} : vector<41x32xbf16>, vector<32x64xbf16>, vector<41x64xf32> -> vector<41x64xf32>
    %97 = arith.addf %92, %96 : vector<41x64xf32>
    %98 = vector.broadcast %5 : vector<1x64xf32> to vector<41x64xf32>
    %99 = arith.addf %97, %98 : vector<41x64xf32>
    %cst_63 = arith.constant 0.000000e+00 : f32
    %100 = vector.broadcast %cst_63 : f32 to vector<41x64xf32>
    %101 = arith.maximumf %99, %100 : vector<41x64xf32>
    %c0_64 = arith.constant 0 : index
    %c0_65 = arith.constant 0 : index
    %102 = vector.load %arg7[%c0_64, %c0_65] : memref<41x64xf32, #tpu.memory_space<vmem>>, vector<41x64xf32>
    tpu.vector_store %arg7[%c0_64, %c0_65], %101 {strides = array<i32>} : memref<41x64xf32, #tpu.memory_space<vmem>>, vector<41x64xf32>,
    %cst_66 = arith.constant 0.000000e+00 : f32
    %103 = vector.broadcast %cst_66 : f32 to vector<25x64xf32>
    %c0_67 = arith.constant 0 : index
    %c0_68 = arith.constant 0 : index
    %104 = vector.load %arg7[%c0_67, %c0_68] : memref<41x64xf32, #tpu.memory_space<vmem>>, vector<25x64xf32>
    %105 = arith.truncf %104 : vector<25x64xf32> to vector<25x64xbf16>
    %c768 = arith.constant 768 : index
    %c0_69 = arith.constant 0 : index
    %106 = vector.load %arg1[%c768, %c0_69] : memref<1344x64xbf16, #tpu.memory_space<vmem>>, vector<64x64xbf16>
    %cst_70 = arith.constant dense<0.000000e+00> : vector<25x64xf32>
    %107 = tpu.matmul %105, %106, %cst_70 {dimension_numbers = #tpu.dot_dimension_numbers<[1], [0], [0], [1], [0, 0, 1, 1], [], []>} : vector<25x64xbf16>, vector<64x64xbf16>, vector<25x64xf32> -> vector<25x64xf32>
    %108 = arith.addf %103, %107 : vector<25x64xf32>
    %c1_71 = arith.constant 1 : index
    %c0_72 = arith.constant 0 : index
    %109 = vector.load %arg7[%c1_71, %c0_72] : memref<41x64xf32, #tpu.memory_space<vmem>>, vector<25x64xf32>
    %110 = arith.truncf %109 : vector<25x64xf32> to vector<25x64xbf16>
    %c832 = arith.constant 832 : index
    %c0_73 = arith.constant 0 : index
    %111 = vector.load %arg1[%c832, %c0_73] : memref<1344x64xbf16, #tpu.memory_space<vmem>>, vector<64x64xbf16>
    %cst_74 = arith.constant dense<0.000000e+00> : vector<25x64xf32>
    %112 = tpu.matmul %110, %111, %cst_74 {dimension_numbers = #tpu.dot_dimension_numbers<[1], [0], [0], [1], [0, 0, 1, 1], [], []>} : vector<25x64xbf16>, vector<64x64xbf16>, vector<25x64xf32> -> vector<25x64xf32>
    %113 = arith.addf %108, %112 : vector<25x64xf32>
    %c2_75 = arith.constant 2 : index
    %c0_76 = arith.constant 0 : index
    %114 = vector.load %arg7[%c2_75, %c0_76] : memref<41x64xf32, #tpu.memory_space<vmem>>, vector<25x64xf32>
    %115 = arith.truncf %114 : vector<25x64xf32> to vector<25x64xbf16>
    %c896 = arith.constant 896 : index
    %c0_77 = arith.constant 0 : index
    %116 = vector.load %arg1[%c896, %c0_77] : memref<1344x64xbf16, #tpu.memory_space<vmem>>, vector<64x64xbf16>
    %cst_78 = arith.constant dense<0.000000e+00> : vector<25x64xf32>
    %117 = tpu.matmul %115, %116, %cst_78 {dimension_numbers = #tpu.dot_dimension_numbers<[1], [0], [0], [1], [0, 0, 1, 1], [], []>} : vector<25x64xbf16>, vector<64x64xbf16>, vector<25x64xf32> -> vector<25x64xf32>
    %118 = arith.addf %113, %117 : vector<25x64xf32>
    %c7_79 = arith.constant 7 : index
    %c0_80 = arith.constant 0 : index
    %119 = vector.load %arg7[%c7_79, %c0_80] : memref<41x64xf32, #tpu.memory_space<vmem>>, vector<25x64xf32>
    %120 = arith.truncf %119 : vector<25x64xf32> to vector<25x64xbf16>
    %c960 = arith.constant 960 : index
    %c0_81 = arith.constant 0 : index
    %121 = vector.load %arg1[%c960, %c0_81] : memref<1344x64xbf16, #tpu.memory_space<vmem>>, vector<64x64xbf16>
    %cst_82 = arith.constant dense<0.000000e+00> : vector<25x64xf32>
    %122 = tpu.matmul %120, %121, %cst_82 {dimension_numbers = #tpu.dot_dimension_numbers<[1], [0], [0], [1], [0, 0, 1, 1], [], []>} : vector<25x64xbf16>, vector<64x64xbf16>, vector<25x64xf32> -> vector<25x64xf32>
    %123 = arith.addf %118, %122 : vector<25x64xf32>
    %c8_83 = arith.constant 8 : index
    %c0_84 = arith.constant 0 : index
    %124 = vector.load %arg7[%c8_83, %c0_84] : memref<41x64xf32, #tpu.memory_space<vmem>>, vector<25x64xf32>
    %125 = arith.truncf %124 : vector<25x64xf32> to vector<25x64xbf16>
    %c1024 = arith.constant 1024 : index
    %c0_85 = arith.constant 0 : index
    %126 = vector.load %arg1[%c1024, %c0_85] : memref<1344x64xbf16, #tpu.memory_space<vmem>>, vector<64x64xbf16>
    %cst_86 = arith.constant dense<0.000000e+00> : vector<25x64xf32>
    %127 = tpu.matmul %125, %126, %cst_86 {dimension_numbers = #tpu.dot_dimension_numbers<[1], [0], [0], [1], [0, 0, 1, 1], [], []>} : vector<25x64xbf16>, vector<64x64xbf16>, vector<25x64xf32> -> vector<25x64xf32>
    %128 = arith.addf %123, %127 : vector<25x64xf32>
    %c9 = arith.constant 9 : index
    %c0_87 = arith.constant 0 : index
    %129 = vector.load %arg7[%c9, %c0_87] : memref<41x64xf32, #tpu.memory_space<vmem>>, vector<25x64xf32>
    %130 = arith.truncf %129 : vector<25x64xf32> to vector<25x64xbf16>
    %c1088 = arith.constant 1088 : index
    %c0_88 = arith.constant 0 : index
    %131 = vector.load %arg1[%c1088, %c0_88] : memref<1344x64xbf16, #tpu.memory_space<vmem>>, vector<64x64xbf16>
    %cst_89 = arith.constant dense<0.000000e+00> : vector<25x64xf32>
    %132 = tpu.matmul %130, %131, %cst_89 {dimension_numbers = #tpu.dot_dimension_numbers<[1], [0], [0], [1], [0, 0, 1, 1], [], []>} : vector<25x64xbf16>, vector<64x64xbf16>, vector<25x64xf32> -> vector<25x64xf32>
    %133 = arith.addf %128, %132 : vector<25x64xf32>
    %c14 = arith.constant 14 : index
    %c0_90 = arith.constant 0 : index
    %134 = vector.load %arg7[%c14, %c0_90] : memref<41x64xf32, #tpu.memory_space<vmem>>, vector<25x64xf32>
    %135 = arith.truncf %134 : vector<25x64xf32> to vector<25x64xbf16>
    %c1152 = arith.constant 1152 : index
    %c0_91 = arith.constant 0 : index
    %136 = vector.load %arg1[%c1152, %c0_91] : memref<1344x64xbf16, #tpu.memory_space<vmem>>, vector<64x64xbf16>
    %cst_92 = arith.constant dense<0.000000e+00> : vector<25x64xf32>
    %137 = tpu.matmul %135, %136, %cst_92 {dimension_numbers = #tpu.dot_dimension_numbers<[1], [0], [0], [1], [0, 0, 1, 1], [], []>} : vector<25x64xbf16>, vector<64x64xbf16>, vector<25x64xf32> -> vector<25x64xf32>
    %138 = arith.addf %133, %137 : vector<25x64xf32>
    %c15 = arith.constant 15 : index
    %c0_93 = arith.constant 0 : index
    %139 = vector.load %arg7[%c15, %c0_93] : memref<41x64xf32, #tpu.memory_space<vmem>>, vector<25x64xf32>
    %140 = arith.truncf %139 : vector<25x64xf32> to vector<25x64xbf16>
    %c1216 = arith.constant 1216 : index
    %c0_94 = arith.constant 0 : index
    %141 = vector.load %arg1[%c1216, %c0_94] : memref<1344x64xbf16, #tpu.memory_space<vmem>>, vector<64x64xbf16>
    %cst_95 = arith.constant dense<0.000000e+00> : vector<25x64xf32>
    %142 = tpu.matmul %140, %141, %cst_95 {dimension_numbers = #tpu.dot_dimension_numbers<[1], [0], [0], [1], [0, 0, 1, 1], [], []>} : vector<25x64xbf16>, vector<64x64xbf16>, vector<25x64xf32> -> vector<25x64xf32>
    %143 = arith.addf %138, %142 : vector<25x64xf32>
    %c16 = arith.constant 16 : index
    %c0_96 = arith.constant 0 : index
    %144 = vector.load %arg7[%c16, %c0_96] : memref<41x64xf32, #tpu.memory_space<vmem>>, vector<25x64xf32>
    %145 = arith.truncf %144 : vector<25x64xf32> to vector<25x64xbf16>
    %c1280 = arith.constant 1280 : index
    %c0_97 = arith.constant 0 : index
    %146 = vector.load %arg1[%c1280, %c0_97] : memref<1344x64xbf16, #tpu.memory_space<vmem>>, vector<64x64xbf16>
    %cst_98 = arith.constant dense<0.000000e+00> : vector<25x64xf32>
    %147 = tpu.matmul %145, %146, %cst_98 {dimension_numbers = #tpu.dot_dimension_numbers<[1], [0], [0], [1], [0, 0, 1, 1], [], []>} : vector<25x64xbf16>, vector<64x64xbf16>, vector<25x64xf32> -> vector<25x64xf32>
    %148 = arith.addf %143, %147 : vector<25x64xf32>
    %149 = vector.broadcast %6 : vector<1x64xf32> to vector<25x64xf32>
    %150 = arith.addf %148, %149 : vector<25x64xf32>
    %cst_99 = arith.constant 0.000000e+00 : f32
    %151 = vector.broadcast %cst_99 : f32 to vector<25x64xf32>
    %152 = arith.maximumf %150, %151 : vector<25x64xf32>
    %c0_100 = arith.constant 0 : index
    %c0_101 = arith.constant 0 : index
    %153 = vector.load %arg8[%c0_100, %c0_101] : memref<25x64xf32, #tpu.memory_space<vmem>>, vector<25x64xf32>
    tpu.vector_store %arg8[%c0_100, %c0_101], %152 {strides = array<i32>} : memref<25x64xf32, #tpu.memory_space<vmem>>, vector<25x64xf32>,
    %c0_102 = arith.constant 0 : index
    %c0_103 = arith.constant 0 : index
    %154 = vector.load %arg8[%c0_102, %c0_103] : memref<25x64xf32, #tpu.memory_space<vmem>>, vector<1x64xf32>
    %c0_104 = arith.constant 0 : index
    %c0_105 = arith.constant 0 : index
    %155 = vector.load %arg9[%c0_104, %c0_105] : memref<1x1024xf32, #tpu.memory_space<vmem>>, vector<1x64xf32>
    tpu.vector_store %arg9[%c0_104, %c0_105], %154 {strides = array<i32>} : memref<1x1024xf32, #tpu.memory_space<vmem>>, vector<1x64xf32>,
    %c1_106 = arith.constant 1 : index
    %c0_107 = arith.constant 0 : index
    %156 = vector.load %arg8[%c1_106, %c0_107] : memref<25x64xf32, #tpu.memory_space<vmem>>, vector<1x64xf32>
    %c0_108 = arith.constant 0 : index
    %c64 = arith.constant 64 : index
    %157 = vector.load %arg9[%c0_108, %c64] : memref<1x1024xf32, #tpu.memory_space<vmem>>, vector<1x64xf32>
    tpu.vector_store %arg9[%c0_108, %c64], %156 {strides = array<i32>} : memref<1x1024xf32, #tpu.memory_space<vmem>>, vector<1x64xf32>,
    %c2_109 = arith.constant 2 : index
    %c0_110 = arith.constant 0 : index
    %158 = vector.load %arg8[%c2_109, %c0_110] : memref<25x64xf32, #tpu.memory_space<vmem>>, vector<1x64xf32>
    %c0_111 = arith.constant 0 : index
    %c128 = arith.constant 128 : index
    %159 = vector.load %arg9[%c0_111, %c128] : memref<1x1024xf32, #tpu.memory_space<vmem>>, vector<1x64xf32>
    tpu.vector_store %arg9[%c0_111, %c128], %158 {strides = array<i32>} : memref<1x1024xf32, #tpu.memory_space<vmem>>, vector<1x64xf32>,
    %c3_112 = arith.constant 3 : index
    %c0_113 = arith.constant 0 : index
    %160 = vector.load %arg8[%c3_112, %c0_113] : memref<25x64xf32, #tpu.memory_space<vmem>>, vector<1x64xf32>
    %c0_114 = arith.constant 0 : index
    %c192 = arith.constant 192 : index
    %161 = vector.load %arg9[%c0_114, %c192] : memref<1x1024xf32, #tpu.memory_space<vmem>>, vector<1x64xf32>
    tpu.vector_store %arg9[%c0_114, %c192], %160 {strides = array<i32>} : memref<1x1024xf32, #tpu.memory_space<vmem>>, vector<1x64xf32>,
    %c7_115 = arith.constant 7 : index
    %c0_116 = arith.constant 0 : index
    %162 = vector.load %arg8[%c7_115, %c0_116] : memref<25x64xf32, #tpu.memory_space<vmem>>, vector<1x64xf32>
    %c0_117 = arith.constant 0 : index
    %c256_118 = arith.constant 256 : index
    %163 = vector.load %arg9[%c0_117, %c256_118] : memref<1x1024xf32, #tpu.memory_space<vmem>>, vector<1x64xf32>
    tpu.vector_store %arg9[%c0_117, %c256_118], %162 {strides = array<i32>} : memref<1x1024xf32, #tpu.memory_space<vmem>>, vector<1x64xf32>,
    %c8_119 = arith.constant 8 : index
    %c0_120 = arith.constant 0 : index
    %164 = vector.load %arg8[%c8_119, %c0_120] : memref<25x64xf32, #tpu.memory_space<vmem>>, vector<1x64xf32>
    %c0_121 = arith.constant 0 : index
    %c320_122 = arith.constant 320 : index
    %165 = vector.load %arg9[%c0_121, %c320_122] : memref<1x1024xf32, #tpu.memory_space<vmem>>, vector<1x64xf32>
    tpu.vector_store %arg9[%c0_121, %c320_122], %164 {strides = array<i32>} : memref<1x1024xf32, #tpu.memory_space<vmem>>, vector<1x64xf32>,
    %c9_123 = arith.constant 9 : index
    %c0_124 = arith.constant 0 : index
    %166 = vector.load %arg8[%c9_123, %c0_124] : memref<25x64xf32, #tpu.memory_space<vmem>>, vector<1x64xf32>
    %c0_125 = arith.constant 0 : index
    %c384_126 = arith.constant 384 : index
    %167 = vector.load %arg9[%c0_125, %c384_126] : memref<1x1024xf32, #tpu.memory_space<vmem>>, vector<1x64xf32>
    tpu.vector_store %arg9[%c0_125, %c384_126], %166 {strides = array<i32>} : memref<1x1024xf32, #tpu.memory_space<vmem>>, vector<1x64xf32>,
    %c10 = arith.constant 10 : index
    %c0_127 = arith.constant 0 : index
    %168 = vector.load %arg8[%c10, %c0_127] : memref<25x64xf32, #tpu.memory_space<vmem>>, vector<1x64xf32>
    %c0_128 = arith.constant 0 : index
    %c448_129 = arith.constant 448 : index
    %169 = vector.load %arg9[%c0_128, %c448_129] : memref<1x1024xf32, #tpu.memory_space<vmem>>, vector<1x64xf32>
    tpu.vector_store %arg9[%c0_128, %c448_129], %168 {strides = array<i32>} : memref<1x1024xf32, #tpu.memory_space<vmem>>, vector<1x64xf32>,
    %c14_130 = arith.constant 14 : index
    %c0_131 = arith.constant 0 : index
    %170 = vector.load %arg8[%c14_130, %c0_131] : memref<25x64xf32, #tpu.memory_space<vmem>>, vector<1x64xf32>
    %c0_132 = arith.constant 0 : index
    %c512_133 = arith.constant 512 : index
    %171 = vector.load %arg9[%c0_132, %c512_133] : memref<1x1024xf32, #tpu.memory_space<vmem>>, vector<1x64xf32>
    tpu.vector_store %arg9[%c0_132, %c512_133], %170 {strides = array<i32>} : memref<1x1024xf32, #tpu.memory_space<vmem>>, vector<1x64xf32>,
    %c15_134 = arith.constant 15 : index
    %c0_135 = arith.constant 0 : index
    %172 = vector.load %arg8[%c15_134, %c0_135] : memref<25x64xf32, #tpu.memory_space<vmem>>, vector<1x64xf32>
    %c0_136 = arith.constant 0 : index
    %c576_137 = arith.constant 576 : index
    %173 = vector.load %arg9[%c0_136, %c576_137] : memref<1x1024xf32, #tpu.memory_space<vmem>>, vector<1x64xf32>
    tpu.vector_store %arg9[%c0_136, %c576_137], %172 {strides = array<i32>} : memref<1x1024xf32, #tpu.memory_space<vmem>>, vector<1x64xf32>,
    %c16_138 = arith.constant 16 : index
    %c0_139 = arith.constant 0 : index
    %174 = vector.load %arg8[%c16_138, %c0_139] : memref<25x64xf32, #tpu.memory_space<vmem>>, vector<1x64xf32>
    %c0_140 = arith.constant 0 : index
    %c640_141 = arith.constant 640 : index
    %175 = vector.load %arg9[%c0_140, %c640_141] : memref<1x1024xf32, #tpu.memory_space<vmem>>, vector<1x64xf32>
    tpu.vector_store %arg9[%c0_140, %c640_141], %174 {strides = array<i32>} : memref<1x1024xf32, #tpu.memory_space<vmem>>, vector<1x64xf32>,
    %c17 = arith.constant 17 : index
    %c0_142 = arith.constant 0 : index
    %176 = vector.load %arg8[%c17, %c0_142] : memref<25x64xf32, #tpu.memory_space<vmem>>, vector<1x64xf32>
    %c0_143 = arith.constant 0 : index
    %c704_144 = arith.constant 704 : index
    %177 = vector.load %arg9[%c0_143, %c704_144] : memref<1x1024xf32, #tpu.memory_space<vmem>>, vector<1x64xf32>
    tpu.vector_store %arg9[%c0_143, %c704_144], %176 {strides = array<i32>} : memref<1x1024xf32, #tpu.memory_space<vmem>>, vector<1x64xf32>,
    %c21 = arith.constant 21 : index
    %c0_145 = arith.constant 0 : index
    %178 = vector.load %arg8[%c21, %c0_145] : memref<25x64xf32, #tpu.memory_space<vmem>>, vector<1x64xf32>
    %c0_146 = arith.constant 0 : index
    %c768_147 = arith.constant 768 : index
    %179 = vector.load %arg9[%c0_146, %c768_147] : memref<1x1024xf32, #tpu.memory_space<vmem>>, vector<1x64xf32>
    tpu.vector_store %arg9[%c0_146, %c768_147], %178 {strides = array<i32>} : memref<1x1024xf32, #tpu.memory_space<vmem>>, vector<1x64xf32>,
    %c22 = arith.constant 22 : index
    %c0_148 = arith.constant 0 : index
    %180 = vector.load %arg8[%c22, %c0_148] : memref<25x64xf32, #tpu.memory_space<vmem>>, vector<1x64xf32>
    %c0_149 = arith.constant 0 : index
    %c832_150 = arith.constant 832 : index
    %181 = vector.load %arg9[%c0_149, %c832_150] : memref<1x1024xf32, #tpu.memory_space<vmem>>, vector<1x64xf32>
    tpu.vector_store %arg9[%c0_149, %c832_150], %180 {strides = array<i32>} : memref<1x1024xf32, #tpu.memory_space<vmem>>, vector<1x64xf32>,
    %c23 = arith.constant 23 : index
    %c0_151 = arith.constant 0 : index
    %182 = vector.load %arg8[%c23, %c0_151] : memref<25x64xf32, #tpu.memory_space<vmem>>, vector<1x64xf32>
    %c0_152 = arith.constant 0 : index
    %c896_153 = arith.constant 896 : index
    %183 = vector.load %arg9[%c0_152, %c896_153] : memref<1x1024xf32, #tpu.memory_space<vmem>>, vector<1x64xf32>
    tpu.vector_store %arg9[%c0_152, %c896_153], %182 {strides = array<i32>} : memref<1x1024xf32, #tpu.memory_space<vmem>>, vector<1x64xf32>,
    %c24 = arith.constant 24 : index
    %c0_154 = arith.constant 0 : index
    %184 = vector.load %arg8[%c24, %c0_154] : memref<25x64xf32, #tpu.memory_space<vmem>>, vector<1x64xf32>
    %c0_155 = arith.constant 0 : index
    %c960_156 = arith.constant 960 : index
    %185 = vector.load %arg9[%c0_155, %c960_156] : memref<1x1024xf32, #tpu.memory_space<vmem>>, vector<1x64xf32>
    tpu.vector_store %arg9[%c0_155, %c960_156], %184 {strides = array<i32>} : memref<1x1024xf32, #tpu.memory_space<vmem>>, vector<1x64xf32>,
    %c0_i32_157 = arith.constant 0 : i32
    %186 = tpu.memref_slice %arg12[%c0_i32_157] : memref<2x!tpu.dma_semaphore, #tpu.memory_space<semaphore_mem>> -> memref<1x!tpu.dma_semaphore, #tpu.memory_space<semaphore_mem>>
    %187 = tpu.memref_squeeze %186 : memref<1x!tpu.dma_semaphore, #tpu.memory_space<semaphore_mem>> -> memref<!tpu.dma_semaphore, #tpu.memory_space<semaphore_mem>>
    tpu.wait_dma2 semaphore(%187 : memref<!tpu.dma_semaphore, #tpu.memory_space<semaphore_mem>>) src(%arg3 : memref<1024x512xbf16, #tpu.memory_space<any>>) dst(%arg10 : memref<1024x512xbf16, #tpu.memory_space<vmem>>)
    %c0_158 = arith.constant 0 : index
    %c0_159 = arith.constant 0 : index
    %188 = vector.load %arg9[%c0_158, %c0_159] : memref<1x1024xf32, #tpu.memory_space<vmem>>, vector<1x1024xf32>
    %189 = arith.truncf %188 : vector<1x1024xf32> to vector<1x1024xbf16>
    %c0_160 = arith.constant 0 : index
    %c0_161 = arith.constant 0 : index
    %190 = vector.load %arg10[%c0_160, %c0_161] : memref<1024x512xbf16, #tpu.memory_space<vmem>>, vector<1024x512xbf16>
    %cst_162 = arith.constant dense<0.000000e+00> : vector<1x512xf32>
    %191 = tpu.matmul %189, %190, %cst_162 {dimension_numbers = #tpu.dot_dimension_numbers<[1], [0], [0], [1], [0, 0, 1, 1], [], []>} : vector<1x1024xbf16>, vector<1024x512xbf16>, vector<1x512xf32> -> vector<1x512xf32>
    %192 = arith.addf %191, %7 : vector<1x512xf32>
    %cst_163 = arith.constant 0.000000e+00 : f32
    %193 = vector.broadcast %cst_163 : f32 to vector<1x512xf32>
    %194 = arith.maximumf %192, %193 : vector<1x512xf32>
    %195 = arith.truncf %194 : vector<1x512xf32> to vector<1x512xbf16>
    %c1_i32_164 = arith.constant 1 : i32
    %196 = tpu.memref_slice %arg12[%c1_i32_164] : memref<2x!tpu.dma_semaphore, #tpu.memory_space<semaphore_mem>> -> memref<1x!tpu.dma_semaphore, #tpu.memory_space<semaphore_mem>>
    %197 = tpu.memref_squeeze %196 : memref<1x!tpu.dma_semaphore, #tpu.memory_space<semaphore_mem>> -> memref<!tpu.dma_semaphore, #tpu.memory_space<semaphore_mem>>
    tpu.wait_dma2 semaphore(%197 : memref<!tpu.dma_semaphore, #tpu.memory_space<semaphore_mem>>) src(%arg4 : memref<512x128xbf16, #tpu.memory_space<any>>) dst(%arg11 : memref<512x128xbf16, #tpu.memory_space<vmem>>)
    %c0_165 = arith.constant 0 : index
    %c0_166 = arith.constant 0 : index
    %198 = vector.load %arg11[%c0_165, %c0_166] : memref<512x128xbf16, #tpu.memory_space<vmem>>, vector<512x128xbf16>
    %cst_167 = arith.constant dense<0.000000e+00> : vector<1x128xf32>
    %199 = tpu.matmul %195, %198, %cst_167 {dimension_numbers = #tpu.dot_dimension_numbers<[1], [0], [0], [1], [0, 0, 1, 1], [], []>} : vector<1x512xbf16>, vector<512x128xbf16>, vector<1x128xf32> -> vector<1x128xf32>
    %200 = arith.addf %199, %8 : vector<1x128xf32>
    %c0_168 = arith.constant 0 : index
    %c0_169 = arith.constant 0 : index
    %201 = vector.load %arg5[%c0_168, %c0_169] : memref<1x128xf32, #tpu.memory_space<vmem>>, vector<1x128xf32>
    tpu.vector_store %arg5[%c0_168, %c0_169], %200 {strides = array<i32>} : memref<1x128xf32, #tpu.memory_space<vmem>>, vector<1x128xf32>,
    return
  }
}

</mosaic_0001>

<bundles_post_ra>
// kernel: big_model_forward.1
= control target key start
LH: loop header
LB: loop body
LE: loop exit
PB: predicated region body
PF: predicated region fallthrough
CT: control target
= control target key end

     0   :  { %10 = vsyncpa [#allocation10], 0  ;;  %s11772_s0 = inlined_call_operand.vmem [shape: bf16[196,256], index: 0, kind: input, shape index: {}]   ;;  %s11773_s1 = inlined_call_operand.vmem [shape: bf16[1344,64], index: 1, kind: input, shape index: {}]   ;;  %s11774_s2 = inlined_call_operand.vmem [shape: f32[8,512], index: 2, kind: input, shape index: {}]   ;;  %s11775_s3 = inlined_call_operand.vmem [shape: bf16[1024,512], index: 3, kind: input, shape index: {}]   ;;  %s11776_s4 = inlined_call_operand.vmem [shape: bf16[512,128], index: 4, kind: input, shape index: {}]   ;;  %s11777_s5 = inlined_call_operand.hbm [shape: f32[1,128], index: 5, kind: output, shape index: {}]  }
   0x1   :  { %v35_v0 = vld [vmem:[%s11775_s3] sm:$0xf]  ;;  %v37_v1 = vld [vmem:[%s11775_s3 + $0x10] sm:$0xf]  ;;  %v39_v2 = vld [vmem:[%s11775_s3 + $0x4] sm:$0xf] }
   0x2   :  { %36 = vst [vmem:[#allocation6] sm:$0xf] %v35_v0  ;;  %38 = vst [vmem:[#allocation6 + $0x4] sm:$0xf] %v37_v1  ;;  %v41_v3 = vld [vmem:[%s11775_s3 + $0x14] sm:$0xf] }
   0x3   :  { %v43_v4 = vld [vmem:[%s11775_s3 + $0x8] sm:$0xf]  ;;  %40 = vst [vmem:[#allocation6 + $0x8] sm:$0xf] %v39_v2  ;;  %42 = vst [vmem:[#allocation6 + $0xc] sm:$0xf] %v41_v3 }
   0x4   :  { %44 = vst [vmem:[#allocation6 + $0x10] sm:$0xf] %v43_v4  ;;  %v45_v5 = vld [vmem:[%s11775_s3 + $0x18] sm:$0xf]  ;;  %v47_v6 = vld [vmem:[%s11775_s3 + $0xc] sm:$0xf] }
   0x5   :  { %v49_v7 = vld [vmem:[%s11775_s3 + $0x1c] sm:$0xff]   ;;  %46 = vst [vmem:[#allocation6 + $0x14] sm:$0xf] %v45_v5  ;;  %48 = vst [vmem:[#allocation6 + $0x18] sm:$0xf] %v47_v6 }
   0x6   :  { %50 = vst [vmem:[#allocation6 + $0x1c] sm:$0xff] %v49_v7   ;;  %v53_v8 = vld [vmem:[%s11775_s3 + $0x30] sm:$0xf]  ;;  %v55_v9 = vld [vmem:[%s11775_s3 + $0x24] sm:$0xf]  ;;  %v65_v14 = vld [vmem:[%s11775_s3 + $0x3c] sm:$0xff]  }
   0x7   :  { %v57_v10 = vld [vmem:[%s11775_s3 + $0x34] sm:$0xf]  ;;  %54 = vst [vmem:[#allocation6 + $0x24] sm:$0xf] %v53_v8  ;;  %56 = vst [vmem:[#allocation6 + $0x28] sm:$0xf] %v55_v9 }
   0x8   :  { %58 = vst [vmem:[#allocation6 + $0x2c] sm:$0xf] %v57_v10  ;;  %v59_v11 = vld [vmem:[%s11775_s3 + $0x28] sm:$0xf]  ;;  %v61_v12 = vld [vmem:[%s11775_s3 + $0x38] sm:$0xf] }
   0x9   :  { %v63_v13 = vld [vmem:[%s11775_s3 + $0x2c] sm:$0xf]  ;;  %60 = vst [vmem:[#allocation6 + $0x30] sm:$0xf] %v59_v11  ;;  %62 = vst [vmem:[#allocation6 + $0x34] sm:$0xf] %v61_v12 }
   0xa   :  { %64 = vst [vmem:[#allocation6 + $0x38] sm:$0xf] %v63_v13  ;;  %v69_v15 = vld [vmem:[%s11775_s3 + $0x50] sm:$0xf]  ;;  %v71_v16 = vld [vmem:[%s11775_s3 + $0x44] sm:$0xf] }
   0xb   :  { %66 = vst [vmem:[#allocation6 + $0x3c] sm:$0xff] %v65_v14   ;;  %70 = vst [vmem:[#allocation6 + $0x44] sm:$0xf] %v69_v15  ;;  %v73_v17 = vld [vmem:[%s11775_s3 + $0x54] sm:$0xf]  ;;  %v81_v21 = vld [vmem:[%s11775_s3 + $0x5c] sm:$0xff]  }
   0xc   :  { %72 = vst [vmem:[#allocation6 + $0x48] sm:$0xf] %v71_v16  ;;  %v75_v18 = vld [vmem:[%s11775_s3 + $0x48] sm:$0xf]  ;;  %v77_v19 = vld [vmem:[%s11775_s3 + $0x58] sm:$0xf] }
   0xd   :  { %74 = vst [vmem:[#allocation6 + $0x4c] sm:$0xf] %v73_v17  ;;  %76 = vst [vmem:[#allocation6 + $0x50] sm:$0xf] %v75_v18  ;;  %v79_v20 = vld [vmem:[%s11775_s3 + $0x4c] sm:$0xf] }
   0xe   :  { %78 = vst [vmem:[#allocation6 + $0x54] sm:$0xf] %v77_v19  ;;  %v85_v22 = vld [vmem:[%s11775_s3 + $0x70] sm:$0xf]  ;;  %80 = vst [vmem:[#allocation6 + $0x58] sm:$0xf] %v79_v20 }
   0xf   :  { %82 = vst [vmem:[#allocation6 + $0x5c] sm:$0xff] %v81_v21   ;;  %86 = vst [vmem:[#allocation6 + $0x64] sm:$0xf] %v85_v22  ;;  %v87_v23 = vld [vmem:[%s11775_s3 + $0x64] sm:$0xf]  ;;  %v97_v28 = vld [vmem:[%s11775_s3 + $0x7c] sm:$0xff]  }
  0x10   :  { %v89_v24 = vld [vmem:[%s11775_s3 + $0x74] sm:$0xf]  ;;  %v91_v25 = vld [vmem:[%s11775_s3 + $0x68] sm:$0xf]  ;;  %88 = vst [vmem:[#allocation6 + $0x68] sm:$0xf] %v87_v23 }
  0x11   :  { %90 = vst [vmem:[#allocation6 + $0x6c] sm:$0xf] %v89_v24  ;;  %92 = vst [vmem:[#allocation6 + $0x70] sm:$0xf] %v91_v25  ;;  %v93_v26 = vld [vmem:[%s11775_s3 + $0x78] sm:$0xf] }
  0x12   :  { %v95_v27 = vld [vmem:[%s11775_s3 + $0x6c] sm:$0xf]  ;;  %94 = vst [vmem:[#allocation6 + $0x74] sm:$0xf] %v93_v26  ;;  %98 = vst [vmem:[#allocation6 + $0x7c] sm:$0xff] %v97_v28   ;;  %v113_v35 = vld [vmem:[%s11775_s3 + $0x9c] sm:$0xff]  }
  0x13   :  { %96 = vst [vmem:[#allocation6 + $0x78] sm:$0xf] %v95_v27  ;;  %v101_v29 = vld [vmem:[%s11775_s3 + $0x90] sm:$0xf]  ;;  %v103_v30 = vld [vmem:[%s11775_s3 + $0x84] sm:$0xf] }
  0x14   :  { %v105_v31 = vld [vmem:[%s11775_s3 + $0x94] sm:$0xf]  ;;  %102 = vst [vmem:[#allocation6 + $0x84] sm:$0xf] %v101_v29  ;;  %104 = vst [vmem:[#allocation6 + $0x88] sm:$0xf] %v103_v30 }
  0x15   :  { %106 = vst [vmem:[#allocation6 + $0x8c] sm:$0xf] %v105_v31  ;;  %v107_v32 = vld [vmem:[%s11775_s3 + $0x88] sm:$0xf]  ;;  %v109_v33 = vld [vmem:[%s11775_s3 + $0x98] sm:$0xf] }
  0x16   :  { %v111_v34 = vld [vmem:[%s11775_s3 + $0x8c] sm:$0xf]  ;;  %108 = vst [vmem:[#allocation6 + $0x90] sm:$0xf] %v107_v32  ;;  %110 = vst [vmem:[#allocation6 + $0x94] sm:$0xf] %v109_v33 }
  0x17   :  { %112 = vst [vmem:[#allocation6 + $0x98] sm:$0xf] %v111_v34  ;;  %v117_v36 = vld [vmem:[%s11775_s3 + $0xb0] sm:$0xf]  ;;  %v119_v37 = vld [vmem:[%s11775_s3 + $0xa4] sm:$0xf] }
  0x18   :  { %114 = vst [vmem:[#allocation6 + $0x9c] sm:$0xff] %v113_v35   ;;  %118 = vst [vmem:[#allocation6 + $0xa4] sm:$0xf] %v117_v36  ;;  %v121_v38 = vld [vmem:[%s11775_s3 + $0xb4] sm:$0xf]  ;;  %v129_v42 = vld [vmem:[%s11775_s3 + $0xbc] sm:$0xff]  }
  0x19   :  { %120 = vst [vmem:[#allocation6 + $0xa8] sm:$0xf] %v119_v37  ;;  %v123_v39 = vld [vmem:[%s11775_s3 + $0xa8] sm:$0xf]  ;;  %v125_v40 = vld [vmem:[%s11775_s3 + $0xb8] sm:$0xf] }
  0x1a   :  { %122 = vst [vmem:[#allocation6 + $0xac] sm:$0xf] %v121_v38  ;;  %124 = vst [vmem:[#allocation6 + $0xb0] sm:$0xf] %v123_v39  ;;  %v127_v41 = vld [vmem:[%s11775_s3 + $0xac] sm:$0xf] }
  0x1b   :  { %126 = vst [vmem:[#allocation6 + $0xb4] sm:$0xf] %v125_v40  ;;  %v133_v43 = vld [vmem:[%s11775_s3 + $0xd0] sm:$0xf]  ;;  %128 = vst [vmem:[#allocation6 + $0xb8] sm:$0xf] %v127_v41 }
  0x1c   :  { %130 = vst [vmem:[#allocation6 + $0xbc] sm:$0xff] %v129_v42   ;;  %134 = vst [vmem:[#allocation6 + $0xc4] sm:$0xf] %v133_v43  ;;  %v135_v44 = vld [vmem:[%s11775_s3 + $0xc4] sm:$0xf]  ;;  %v145_v49 = vld [vmem:[%s11775_s3 + $0xdc] sm:$0xff]  }
  0x1d   :  { %v137_v45 = vld [vmem:[%s11775_s3 + $0xd4] sm:$0xf]  ;;  %v139_v46 = vld [vmem:[%s11775_s3 + $0xc8] sm:$0xf]  ;;  %136 = vst [vmem:[#allocation6 + $0xc8] sm:$0xf] %v135_v44 }
  0x1e   :  { %138 = vst [vmem:[#allocation6 + $0xcc] sm:$0xf] %v137_v45  ;;  %140 = vst [vmem:[#allocation6 + $0xd0] sm:$0xf] %v139_v46  ;;  %v141_v47 = vld [vmem:[%s11775_s3 + $0xd8] sm:$0xf] }
  0x1f   :  { %v143_v48 = vld [vmem:[%s11775_s3 + $0xcc] sm:$0xf]  ;;  %142 = vst [vmem:[#allocation6 + $0xd4] sm:$0xf] %v141_v47  ;;  %146 = vst [vmem:[#allocation6 + $0xdc] sm:$0xff] %v145_v49   ;;  %v161_v56 = vld [vmem:[%s11775_s3 + $0xfc] sm:$0xff]  }
  0x20   :  { %144 = vst [vmem:[#allocation6 + $0xd8] sm:$0xf] %v143_v48  ;;  %v149_v50 = vld [vmem:[%s11775_s3 + $0xf0] sm:$0xf]  ;;  %v151_v51 = vld [vmem:[%s11775_s3 + $0xe4] sm:$0xf] }
  0x21   :  { %v153_v52 = vld [vmem:[%s11775_s3 + $0xf4] sm:$0xf]  ;;  %150 = vst [vmem:[#allocation6 + $0xe4] sm:$0xf] %v149_v50  ;;  %152 = vst [vmem:[#allocation6 + $0xe8] sm:$0xf] %v151_v51 }
  0x22   :  { %154 = vst [vmem:[#allocation6 + $0xec] sm:$0xf] %v153_v52  ;;  %v155_v53 = vld [vmem:[%s11775_s3 + $0xe8] sm:$0xf]  ;;  %v157_v54 = vld [vmem:[%s11775_s3 + $0xf8] sm:$0xf] }
  0x23   :  { %v159_v55 = vld [vmem:[%s11775_s3 + $0xec] sm:$0xf]  ;;  %156 = vst [vmem:[#allocation6 + $0xf0] sm:$0xf] %v155_v53  ;;  %158 = vst [vmem:[#allocation6 + $0xf4] sm:$0xf] %v157_v54 }
  0x24   :  { %160 = vst [vmem:[#allocation6 + $0xf8] sm:$0xf] %v159_v55  ;;  %v165_v57 = vld [vmem:[%s11775_s3 + $0x110] sm:$0xf]  ;;  %v167_v58 = vld [vmem:[%s11775_s3 + $0x104] sm:$0xf] }
  0x25   :  { %162 = vst [vmem:[#allocation6 + $0xfc] sm:$0xff] %v161_v56   ;;  %166 = vst [vmem:[#allocation6 + $0x104] sm:$0xf] %v165_v57  ;;  %v169_v59 = vld [vmem:[%s11775_s3 + $0x114] sm:$0xf]  ;;  %v177_v63 = vld [vmem:[%s11775_s3 + $0x11c] sm:$0xff]  }
  0x26   :  { %168 = vst [vmem:[#allocation6 + $0x108] sm:$0xf] %v167_v58  ;;  %v171_v60 = vld [vmem:[%s11775_s3 + $0x108] sm:$0xf]  ;;  %v173_v61 = vld [vmem:[%s11775_s3 + $0x118] sm:$0xf] }
  0x27   :  { %170 = vst [vmem:[#allocation6 + $0x10c] sm:$0xf] %v169_v59  ;;  %172 = vst [vmem:[#allocation6 + $0x110] sm:$0xf] %v171_v60  ;;  %v175_v62 = vld [vmem:[%s11775_s3 + $0x10c] sm:$0xf] }
  0x28   :  { %174 = vst [vmem:[#allocation6 + $0x114] sm:$0xf] %v173_v61  ;;  %v181_v0 = vld [vmem:[%s11775_s3 + $0x130] sm:$0xf]  ;;  %176 = vst [vmem:[#allocation6 + $0x118] sm:$0xf] %v175_v62 }
  0x29   :  { %178 = vst [vmem:[#allocation6 + $0x11c] sm:$0xff] %v177_v63   ;;  %182 = vst [vmem:[#allocation6 + $0x124] sm:$0xf] %v181_v0  ;;  %v183_v1 = vld [vmem:[%s11775_s3 + $0x124] sm:$0xf]  ;;  %v193_v6 = vld [vmem:[%s11775_s3 + $0x13c] sm:$0xff]  }
  0x2a   :  { %v185_v2 = vld [vmem:[%s11775_s3 + $0x134] sm:$0xf]  ;;  %v187_v3 = vld [vmem:[%s11775_s3 + $0x128] sm:$0xf]  ;;  %184 = vst [vmem:[#allocation6 + $0x128] sm:$0xf] %v183_v1 }
  0x2b   :  { %186 = vst [vmem:[#allocation6 + $0x12c] sm:$0xf] %v185_v2  ;;  %188 = vst [vmem:[#allocation6 + $0x130] sm:$0xf] %v187_v3  ;;  %v189_v4 = vld [vmem:[%s11775_s3 + $0x138] sm:$0xf] }
  0x2c   :  { %v191_v5 = vld [vmem:[%s11775_s3 + $0x12c] sm:$0xf]  ;;  %190 = vst [vmem:[#allocation6 + $0x134] sm:$0xf] %v189_v4  ;;  %194 = vst [vmem:[#allocation6 + $0x13c] sm:$0xff] %v193_v6   ;;  %v209_v13 = vld [vmem:[%s11775_s3 + $0x15c] sm:$0xff]  }
  0x2d   :  { %192 = vst [vmem:[#allocation6 + $0x138] sm:$0xf] %v191_v5  ;;  %v197_v7 = vld [vmem:[%s11775_s3 + $0x150] sm:$0xf]  ;;  %v199_v8 = vld [vmem:[%s11775_s3 + $0x144] sm:$0xf] }
  0x2e   :  { %v201_v9 = vld [vmem:[%s11775_s3 + $0x154] sm:$0xf]  ;;  %198 = vst [vmem:[#allocation6 + $0x144] sm:$0xf] %v197_v7  ;;  %200 = vst [vmem:[#allocation6 + $0x148] sm:$0xf] %v199_v8 }
  0x2f   :  { %202 = vst [vmem:[#allocation6 + $0x14c] sm:$0xf] %v201_v9  ;;  %v203_v10 = vld [vmem:[%s11775_s3 + $0x148] sm:$0xf]  ;;  %v205_v11 = vld [vmem:[%s11775_s3 + $0x158] sm:$0xf] }
  0x30   :  { %v207_v12 = vld [vmem:[%s11775_s3 + $0x14c] sm:$0xf]  ;;  %204 = vst [vmem:[#allocation6 + $0x150] sm:$0xf] %v203_v10  ;;  %206 = vst [vmem:[#allocation6 + $0x154] sm:$0xf] %v205_v11 }
  0x31   :  { %208 = vst [vmem:[#allocation6 + $0x158] sm:$0xf] %v207_v12  ;;  %v213_v14 = vld [vmem:[%s11775_s3 + $0x170] sm:$0xf]  ;;  %v215_v15 = vld [vmem:[%s11775_s3 + $0x164] sm:$0xf] }
  0x32   :  { %210 = vst [vmem:[#allocation6 + $0x15c] sm:$0xff] %v209_v13   ;;  %214 = vst [vmem:[#allocation6 + $0x164] sm:$0xf] %v213_v14  ;;  %v217_v16 = vld [vmem:[%s11775_s3 + $0x174] sm:$0xf]  ;;  %v225_v20 = vld [vmem:[%s11775_s3 + $0x17c] sm:$0xff]  }
  0x33   :  { %216 = vst [vmem:[#allocation6 + $0x168] sm:$0xf] %v215_v15  ;;  %v219_v17 = vld [vmem:[%s11775_s3 + $0x168] sm:$0xf]  ;;  %v221_v18 = vld [vmem:[%s11775_s3 + $0x178] sm:$0xf] }
  0x34   :  { %218 = vst [vmem:[#allocation6 + $0x16c] sm:$0xf] %v217_v16  ;;  %220 = vst [vmem:[#allocation6 + $0x170] sm:$0xf] %v219_v17  ;;  %v223_v19 = vld [vmem:[%s11775_s3 + $0x16c] sm:$0xf] }
  0x35   :  { %222 = vst [vmem:[#allocation6 + $0x174] sm:$0xf] %v221_v18  ;;  %v229_v21 = vld [vmem:[%s11775_s3 + $0x190] sm:$0xf]  ;;  %224 = vst [vmem:[#allocation6 + $0x178] sm:$0xf] %v223_v19 }
  0x36   :  { %226 = vst [vmem:[#allocation6 + $0x17c] sm:$0xff] %v225_v20   ;;  %230 = vst [vmem:[#allocation6 + $0x184] sm:$0xf] %v229_v21  ;;  %v231_v22 = vld [vmem:[%s11775_s3 + $0x184] sm:$0xf]  ;;  %v241_v27 = vld [vmem:[%s11775_s3 + $0x19c] sm:$0xff]  }
  0x37   :  { %v233_v23 = vld [vmem:[%s11775_s3 + $0x194] sm:$0xf]  ;;  %v235_v24 = vld [vmem:[%s11775_s3 + $0x188] sm:$0xf]  ;;  %232 = vst [vmem:[#allocation6 + $0x188] sm:$0xf] %v231_v22 }
  0x38   :  { %234 = vst [vmem:[#allocation6 + $0x18c] sm:$0xf] %v233_v23  ;;  %236 = vst [vmem:[#allocation6 + $0x190] sm:$0xf] %v235_v24  ;;  %v237_v25 = vld [vmem:[%s11775_s3 + $0x198] sm:$0xf] }
  0x39   :  { %v239_v26 = vld [vmem:[%s11775_s3 + $0x18c] sm:$0xf]  ;;  %238 = vst [vmem:[#allocation6 + $0x194] sm:$0xf] %v237_v25  ;;  %242 = vst [vmem:[#allocation6 + $0x19c] sm:$0xff] %v241_v27   ;;  %v257_v34 = vld [vmem:[%s11775_s3 + $0x1bc] sm:$0xff]  }
  0x3a   :  { %240 = vst [vmem:[#allocation6 + $0x198] sm:$0xf] %v239_v26  ;;  %v245_v28 = vld [vmem:[%s11775_s3 + $0x1b0] sm:$0xf]  ;;  %v247_v29 = vld [vmem:[%s11775_s3 + $0x1a4] sm:$0xf] }
  0x3b   :  { %v249_v30 = vld [vmem:[%s11775_s3 + $0x1b4] sm:$0xf]  ;;  %246 = vst [vmem:[#allocation6 + $0x1a4] sm:$0xf] %v245_v28  ;;  %248 = vst [vmem:[#allocation6 + $0x1a8] sm:$0xf] %v247_v29 }
  0x3c   :  { %250 = vst [vmem:[#allocation6 + $0x1ac] sm:$0xf] %v249_v30  ;;  %v251_v31 = vld [vmem:[%s11775_s3 + $0x1a8] sm:$0xf]  ;;  %v253_v32 = vld [vmem:[%s11775_s3 + $0x1b8] sm:$0xf] }
  0x3d   :  { %v255_v33 = vld [vmem:[%s11775_s3 + $0x1ac] sm:$0xf]  ;;  %252 = vst [vmem:[#allocation6 + $0x1b0] sm:$0xf] %v251_v31  ;;  %254 = vst [vmem:[#allocation6 + $0x1b4] sm:$0xf] %v253_v32 }
  0x3e   :  { %256 = vst [vmem:[#allocation6 + $0x1b8] sm:$0xf] %v255_v33  ;;  %v261_v35 = vld [vmem:[%s11775_s3 + $0x1d0] sm:$0xf]  ;;  %v263_v36 = vld [vmem:[%s11775_s3 + $0x1c4] sm:$0xf] }
  0x3f   :  { %258 = vst [vmem:[#allocation6 + $0x1bc] sm:$0xff] %v257_v34   ;;  %262 = vst [vmem:[#allocation6 + $0x1c4] sm:$0xf] %v261_v35  ;;  %v265_v37 = vld [vmem:[%s11775_s3 + $0x1d4] sm:$0xf]  ;;  %v273_v41 = vld [vmem:[%s11775_s3 + $0x1dc] sm:$0xff]  }
  0x40   :  { %264 = vst [vmem:[#allocation6 + $0x1c8] sm:$0xf] %v263_v36  ;;  %v267_v38 = vld [vmem:[%s11775_s3 + $0x1c8] sm:$0xf]  ;;  %v269_v39 = vld [vmem:[%s11775_s3 + $0x1d8] sm:$0xf] }
  0x41   :  { %266 = vst [vmem:[#allocation6 + $0x1cc] sm:$0xf] %v265_v37  ;;  %268 = vst [vmem:[#allocation6 + $0x1d0] sm:$0xf] %v267_v38  ;;  %v271_v40 = vld [vmem:[%s11775_s3 + $0x1cc] sm:$0xf] }
  0x42   :  { %270 = vst [vmem:[#allocation6 + $0x1d4] sm:$0xf] %v269_v39  ;;  %v277_v42 = vld [vmem:[%s11775_s3 + $0x1f0] sm:$0xf]  ;;  %272 = vst [vmem:[#allocation6 + $0x1d8] sm:$0xf] %v271_v40 }
  0x43   :  { %274 = vst [vmem:[#allocation6 + $0x1dc] sm:$0xff] %v273_v41   ;;  %278 = vst [vmem:[#allocation6 + $0x1e4] sm:$0xf] %v277_v42  ;;  %v279_v43 = vld [vmem:[%s11775_s3 + $0x1e4] sm:$0xf]  ;;  %v289_v48 = vld [vmem:[%s11775_s3 + $0x1fc] sm:$0xff]  }
  0x44   :  { %v281_v44 = vld [vmem:[%s11775_s3 + $0x1f4] sm:$0xf]  ;;  %v283_v45 = vld [vmem:[%s11775_s3 + $0x1e8] sm:$0xf]  ;;  %280 = vst [vmem:[#allocation6 + $0x1e8] sm:$0xf] %v279_v43 }
  0x45   :  { %282 = vst [vmem:[#allocation6 + $0x1ec] sm:$0xf] %v281_v44  ;;  %284 = vst [vmem:[#allocation6 + $0x1f0] sm:$0xf] %v283_v45  ;;  %v285_v46 = vld [vmem:[%s11775_s3 + $0x1f8] sm:$0xf] }
  0x46   :  { %v287_v47 = vld [vmem:[%s11775_s3 + $0x1ec] sm:$0xf]  ;;  %286 = vst [vmem:[#allocation6 + $0x1f4] sm:$0xf] %v285_v46  ;;  %290 = vst [vmem:[#allocation6 + $0x1fc] sm:$0xff] %v289_v48   ;;  %v305_v55 = vld [vmem:[%s11775_s3 + $0x21c] sm:$0xff]  }
  0x47   :  { %288 = vst [vmem:[#allocation6 + $0x1f8] sm:$0xf] %v287_v47  ;;  %v293_v49 = vld [vmem:[%s11775_s3 + $0x210] sm:$0xf]  ;;  %v295_v50 = vld [vmem:[%s11775_s3 + $0x204] sm:$0xf] }
  0x48   :  { %v297_v51 = vld [vmem:[%s11775_s3 + $0x214] sm:$0xf]  ;;  %294 = vst [vmem:[#allocation6 + $0x204] sm:$0xf] %v293_v49  ;;  %296 = vst [vmem:[#allocation6 + $0x208] sm:$0xf] %v295_v50 }
  0x49   :  { %298 = vst [vmem:[#allocation6 + $0x20c] sm:$0xf] %v297_v51  ;;  %v299_v52 = vld [vmem:[%s11775_s3 + $0x208] sm:$0xf]  ;;  %v301_v53 = vld [vmem:[%s11775_s3 + $0x218] sm:$0xf] }
  0x4a   :  { %v303_v54 = vld [vmem:[%s11775_s3 + $0x20c] sm:$0xf]  ;;  %300 = vst [vmem:[#allocation6 + $0x210] sm:$0xf] %v299_v52  ;;  %302 = vst [vmem:[#allocation6 + $0x214] sm:$0xf] %v301_v53 }
  0x4b   :  { %304 = vst [vmem:[#allocation6 + $0x218] sm:$0xf] %v303_v54  ;;  %v309_v56 = vld [vmem:[%s11775_s3 + $0x230] sm:$0xf]  ;;  %v311_v57 = vld [vmem:[%s11775_s3 + $0x224] sm:$0xf] }
  0x4c   :  { %306 = vst [vmem:[#allocation6 + $0x21c] sm:$0xff] %v305_v55   ;;  %310 = vst [vmem:[#allocation6 + $0x224] sm:$0xf] %v309_v56  ;;  %v313_v58 = vld [vmem:[%s11775_s3 + $0x234] sm:$0xf]  ;;  %v321_v62 = vld [vmem:[%s11775_s3 + $0x23c] sm:$0xff]  }
  0x4d   :  { %312 = vst [vmem:[#allocation6 + $0x228] sm:$0xf] %v311_v57  ;;  %v315_v59 = vld [vmem:[%s11775_s3 + $0x228] sm:$0xf]  ;;  %v317_v60 = vld [vmem:[%s11775_s3 + $0x238] sm:$0xf] }
  0x4e   :  { %314 = vst [vmem:[#allocation6 + $0x22c] sm:$0xf] %v313_v58  ;;  %316 = vst [vmem:[#allocation6 + $0x230] sm:$0xf] %v315_v59  ;;  %v319_v61 = vld [vmem:[%s11775_s3 + $0x22c] sm:$0xf] }
  0x4f   :  { %318 = vst [vmem:[#allocation6 + $0x234] sm:$0xf] %v317_v60  ;;  %v325_v63 = vld [vmem:[%s11775_s3 + $0x250] sm:$0xf]  ;;  %320 = vst [vmem:[#allocation6 + $0x238] sm:$0xf] %v319_v61 }
  0x50   :  { %322 = vst [vmem:[#allocation6 + $0x23c] sm:$0xff] %v321_v62   ;;  %326 = vst [vmem:[#allocation6 + $0x244] sm:$0xf] %v325_v63  ;;  %v327_v0 = vld [vmem:[%s11775_s3 + $0x244] sm:$0xf]  ;;  %v337_v5 = vld [vmem:[%s11775_s3 + $0x25c] sm:$0xff]  }
  0x51   :  { %v329_v1 = vld [vmem:[%s11775_s3 + $0x254] sm:$0xf]  ;;  %v331_v2 = vld [vmem:[%s11775_s3 + $0x248] sm:$0xf]  ;;  %328 = vst [vmem:[#allocation6 + $0x248] sm:$0xf] %v327_v0 }
  0x52   :  { %330 = vst [vmem:[#allocation6 + $0x24c] sm:$0xf] %v329_v1  ;;  %332 = vst [vmem:[#allocation6 + $0x250] sm:$0xf] %v331_v2  ;;  %v333_v3 = vld [vmem:[%s11775_s3 + $0x258] sm:$0xf] }
  0x53   :  { %v335_v4 = vld [vmem:[%s11775_s3 + $0x24c] sm:$0xf]  ;;  %334 = vst [vmem:[#allocation6 + $0x254] sm:$0xf] %v333_v3  ;;  %338 = vst [vmem:[#allocation6 + $0x25c] sm:$0xff] %v337_v5   ;;  %v353_v12 = vld [vmem:[%s11775_s3 + $0x27c] sm:$0xff]  }
  0x54   :  { %336 = vst [vmem:[#allocation6 + $0x258] sm:$0xf] %v335_v4  ;;  %v341_v6 = vld [vmem:[%s11775_s3 + $0x270] sm:$0xf]  ;;  %v343_v7 = vld [vmem:[%s11775_s3 + $0x264] sm:$0xf] }
  0x55   :  { %v345_v8 = vld [vmem:[%s11775_s3 + $0x274] sm:$0xf]  ;;  %342 = vst [vmem:[#allocation6 + $0x264] sm:$0xf] %v341_v6  ;;  %344 = vst [vmem:[#allocation6 + $0x268] sm:$0xf] %v343_v7 }
  0x56   :  { %346 = vst [vmem:[#allocation6 + $0x26c] sm:$0xf] %v345_v8  ;;  %v347_v9 = vld [vmem:[%s11775_s3 + $0x268] sm:$0xf]  ;;  %v349_v10 = vld [vmem:[%s11775_s3 + $0x278] sm:$0xf] }
  0x57   :  { %v351_v11 = vld [vmem:[%s11775_s3 + $0x26c] sm:$0xf]  ;;  %348 = vst [vmem:[#allocation6 + $0x270] sm:$0xf] %v347_v9  ;;  %350 = vst [vmem:[#allocation6 + $0x274] sm:$0xf] %v349_v10 }
  0x58   :  { %352 = vst [vmem:[#allocation6 + $0x278] sm:$0xf] %v351_v11  ;;  %v357_v13 = vld [vmem:[%s11775_s3 + $0x290] sm:$0xf]  ;;  %v359_v14 = vld [vmem:[%s11775_s3 + $0x284] sm:$0xf] }
  0x59   :  { %354 = vst [vmem:[#allocation6 + $0x27c] sm:$0xff] %v353_v12   ;;  %358 = vst [vmem:[#allocation6 + $0x284] sm:$0xf] %v357_v13  ;;  %v361_v15 = vld [vmem:[%s11775_s3 + $0x294] sm:$0xf]  ;;  %v369_v19 = vld [vmem:[%s11775_s3 + $0x29c] sm:$0xff]  }
  0x5a   :  { %360 = vst [vmem:[#allocation6 + $0x288] sm:$0xf] %v359_v14  ;;  %v363_v16 = vld [vmem:[%s11775_s3 + $0x288] sm:$0xf]  ;;  %v365_v17 = vld [vmem:[%s11775_s3 + $0x298] sm:$0xf] }
  0x5b   :  { %362 = vst [vmem:[#allocation6 + $0x28c] sm:$0xf] %v361_v15  ;;  %364 = vst [vmem:[#allocation6 + $0x290] sm:$0xf] %v363_v16  ;;  %v367_v18 = vld [vmem:[%s11775_s3 + $0x28c] sm:$0xf] }
  0x5c   :  { %366 = vst [vmem:[#allocation6 + $0x294] sm:$0xf] %v365_v17  ;;  %v373_v20 = vld [vmem:[%s11775_s3 + $0x2b0] sm:$0xf]  ;;  %368 = vst [vmem:[#allocation6 + $0x298] sm:$0xf] %v367_v18 }
  0x5d   :  { %370 = vst [vmem:[#allocation6 + $0x29c] sm:$0xff] %v369_v19   ;;  %374 = vst [vmem:[#allocation6 + $0x2a4] sm:$0xf] %v373_v20  ;;  %v375_v21 = vld [vmem:[%s11775_s3 + $0x2a4] sm:$0xf]  ;;  %v385_v26 = vld [vmem:[%s11775_s3 + $0x2bc] sm:$0xff]  }
  0x5e   :  { %v377_v22 = vld [vmem:[%s11775_s3 + $0x2b4] sm:$0xf]  ;;  %v379_v23 = vld [vmem:[%s11775_s3 + $0x2a8] sm:$0xf]  ;;  %376 = vst [vmem:[#allocation6 + $0x2a8] sm:$0xf] %v375_v21 }
  0x5f   :  { %378 = vst [vmem:[#allocation6 + $0x2ac] sm:$0xf] %v377_v22  ;;  %380 = vst [vmem:[#allocation6 + $0x2b0] sm:$0xf] %v379_v23  ;;  %v381_v24 = vld [vmem:[%s11775_s3 + $0x2b8] sm:$0xf] }
  0x60   :  { %v383_v25 = vld [vmem:[%s11775_s3 + $0x2ac] sm:$0xf]  ;;  %382 = vst [vmem:[#allocation6 + $0x2b4] sm:$0xf] %v381_v24  ;;  %386 = vst [vmem:[#allocation6 + $0x2bc] sm:$0xff] %v385_v26   ;;  %v401_v33 = vld [vmem:[%s11775_s3 + $0x2dc] sm:$0xff]  }
  0x61   :  { %384 = vst [vmem:[#allocation6 + $0x2b8] sm:$0xf] %v383_v25  ;;  %v389_v27 = vld [vmem:[%s11775_s3 + $0x2d0] sm:$0xf]  ;;  %v391_v28 = vld [vmem:[%s11775_s3 + $0x2c4] sm:$0xf] }
  0x62   :  { %v393_v29 = vld [vmem:[%s11775_s3 + $0x2d4] sm:$0xf]  ;;  %390 = vst [vmem:[#allocation6 + $0x2c4] sm:$0xf] %v389_v27  ;;  %392 = vst [vmem:[#allocation6 + $0x2c8] sm:$0xf] %v391_v28 }
  0x63   :  { %394 = vst [vmem:[#allocation6 + $0x2cc] sm:$0xf] %v393_v29  ;;  %v395_v30 = vld [vmem:[%s11775_s3 + $0x2c8] sm:$0xf]  ;;  %v397_v31 = vld [vmem:[%s11775_s3 + $0x2d8] sm:$0xf] }
  0x64   :  { %v399_v32 = vld [vmem:[%s11775_s3 + $0x2cc] sm:$0xf]  ;;  %396 = vst [vmem:[#allocation6 + $0x2d0] sm:$0xf] %v395_v30  ;;  %398 = vst [vmem:[#allocation6 + $0x2d4] sm:$0xf] %v397_v31 }
  0x65   :  { %400 = vst [vmem:[#allocation6 + $0x2d8] sm:$0xf] %v399_v32  ;;  %v405_v34 = vld [vmem:[%s11775_s3 + $0x2f0] sm:$0xf]  ;;  %v407_v35 = vld [vmem:[%s11775_s3 + $0x2e4] sm:$0xf] }
  0x66   :  { %402 = vst [vmem:[#allocation6 + $0x2dc] sm:$0xff] %v401_v33   ;;  %406 = vst [vmem:[#allocation6 + $0x2e4] sm:$0xf] %v405_v34  ;;  %v409_v36 = vld [vmem:[%s11775_s3 + $0x2f4] sm:$0xf]  ;;  %v417_v40 = vld [vmem:[%s11775_s3 + $0x2fc] sm:$0xff]  }
  0x67   :  { %408 = vst [vmem:[#allocation6 + $0x2e8] sm:$0xf] %v407_v35  ;;  %v411_v37 = vld [vmem:[%s11775_s3 + $0x2e8] sm:$0xf]  ;;  %v413_v38 = vld [vmem:[%s11775_s3 + $0x2f8] sm:$0xf] }
  0x68   :  { %410 = vst [vmem:[#allocation6 + $0x2ec] sm:$0xf] %v409_v36  ;;  %412 = vst [vmem:[#allocation6 + $0x2f0] sm:$0xf] %v411_v37  ;;  %v415_v39 = vld [vmem:[%s11775_s3 + $0x2ec] sm:$0xf] }
  0x69   :  { %414 = vst [vmem:[#allocation6 + $0x2f4] sm:$0xf] %v413_v38  ;;  %v421_v41 = vld [vmem:[%s11775_s3 + $0x310] sm:$0xf]  ;;  %416 = vst [vmem:[#allocation6 + $0x2f8] sm:$0xf] %v415_v39 }
  0x6a   :  { %418 = vst [vmem:[#allocation6 + $0x2fc] sm:$0xff] %v417_v40   ;;  %422 = vst [vmem:[#allocation6 + $0x304] sm:$0xf] %v421_v41  ;;  %v423_v42 = vld [vmem:[%s11775_s3 + $0x304] sm:$0xf]  ;;  %v433_v47 = vld [vmem:[%s11775_s3 + $0x31c] sm:$0xff]  }
  0x6b   :  { %v425_v43 = vld [vmem:[%s11775_s3 + $0x314] sm:$0xf]  ;;  %v427_v44 = vld [vmem:[%s11775_s3 + $0x308] sm:$0xf]  ;;  %424 = vst [vmem:[#allocation6 + $0x308] sm:$0xf] %v423_v42 }
  0x6c   :  { %426 = vst [vmem:[#allocation6 + $0x30c] sm:$0xf] %v425_v43  ;;  %428 = vst [vmem:[#allocation6 + $0x310] sm:$0xf] %v427_v44  ;;  %v429_v45 = vld [vmem:[%s11775_s3 + $0x318] sm:$0xf] }
  0x6d   :  { %v431_v46 = vld [vmem:[%s11775_s3 + $0x30c] sm:$0xf]  ;;  %430 = vst [vmem:[#allocation6 + $0x314] sm:$0xf] %v429_v45  ;;  %434 = vst [vmem:[#allocation6 + $0x31c] sm:$0xff] %v433_v47   ;;  %v449_v54 = vld [vmem:[%s11775_s3 + $0x33c] sm:$0xff]  }
  0x6e   :  { %432 = vst [vmem:[#allocation6 + $0x318] sm:$0xf] %v431_v46  ;;  %v437_v48 = vld [vmem:[%s11775_s3 + $0x330] sm:$0xf]  ;;  %v439_v49 = vld [vmem:[%s11775_s3 + $0x324] sm:$0xf] }
  0x6f   :  { %v441_v50 = vld [vmem:[%s11775_s3 + $0x334] sm:$0xf]  ;;  %438 = vst [vmem:[#allocation6 + $0x324] sm:$0xf] %v437_v48  ;;  %440 = vst [vmem:[#allocation6 + $0x328] sm:$0xf] %v439_v49 }
  0x70   :  { %442 = vst [vmem:[#allocation6 + $0x32c] sm:$0xf] %v441_v50  ;;  %v443_v51 = vld [vmem:[%s11775_s3 + $0x328] sm:$0xf]  ;;  %v445_v52 = vld [vmem:[%s11775_s3 + $0x338] sm:$0xf] }
  0x71   :  { %v447_v53 = vld [vmem:[%s11775_s3 + $0x32c] sm:$0xf]  ;;  %444 = vst [vmem:[#allocation6 + $0x330] sm:$0xf] %v443_v51  ;;  %446 = vst [vmem:[#allocation6 + $0x334] sm:$0xf] %v445_v52 }
  0x72   :  { %448 = vst [vmem:[#allocation6 + $0x338] sm:$0xf] %v447_v53  ;;  %v453_v55 = vld [vmem:[%s11775_s3 + $0x350] sm:$0xf]  ;;  %v455_v56 = vld [vmem:[%s11775_s3 + $0x344] sm:$0xf] }
  0x73   :  { %450 = vst [vmem:[#allocation6 + $0x33c] sm:$0xff] %v449_v54   ;;  %454 = vst [vmem:[#allocation6 + $0x344] sm:$0xf] %v453_v55  ;;  %v457_v57 = vld [vmem:[%s11775_s3 + $0x354] sm:$0xf]  ;;  %v465_v61 = vld [vmem:[%s11775_s3 + $0x35c] sm:$0xff]  }
  0x74   :  { %456 = vst [vmem:[#allocation6 + $0x348] sm:$0xf] %v455_v56  ;;  %v459_v58 = vld [vmem:[%s11775_s3 + $0x348] sm:$0xf]  ;;  %v461_v59 = vld [vmem:[%s11775_s3 + $0x358] sm:$0xf] }
  0x75   :  { %458 = vst [vmem:[#allocation6 + $0x34c] sm:$0xf] %v457_v57  ;;  %460 = vst [vmem:[#allocation6 + $0x350] sm:$0xf] %v459_v58  ;;  %v463_v60 = vld [vmem:[%s11775_s3 + $0x34c] sm:$0xf] }
  0x76   :  { %462 = vst [vmem:[#allocation6 + $0x354] sm:$0xf] %v461_v59  ;;  %v469_v62 = vld [vmem:[%s11775_s3 + $0x370] sm:$0xf]  ;;  %464 = vst [vmem:[#allocation6 + $0x358] sm:$0xf] %v463_v60 }
  0x77   :  { %466 = vst [vmem:[#allocation6 + $0x35c] sm:$0xff] %v465_v61   ;;  %470 = vst [vmem:[#allocation6 + $0x364] sm:$0xf] %v469_v62  ;;  %v471_v63 = vld [vmem:[%s11775_s3 + $0x364] sm:$0xf]  ;;  %v481_v4 = vld [vmem:[%s11775_s3 + $0x37c] sm:$0xff]  }
  0x78   :  { %v473_v0 = vld [vmem:[%s11775_s3 + $0x374] sm:$0xf]  ;;  %v475_v1 = vld [vmem:[%s11775_s3 + $0x368] sm:$0xf]  ;;  %472 = vst [vmem:[#allocation6 + $0x368] sm:$0xf] %v471_v63 }
  0x79   :  { %474 = vst [vmem:[#allocation6 + $0x36c] sm:$0xf] %v473_v0  ;;  %476 = vst [vmem:[#allocation6 + $0x370] sm:$0xf] %v475_v1  ;;  %v477_v2 = vld [vmem:[%s11775_s3 + $0x378] sm:$0xf] }
  0x7a   :  { %v479_v3 = vld [vmem:[%s11775_s3 + $0x36c] sm:$0xf]  ;;  %478 = vst [vmem:[#allocation6 + $0x374] sm:$0xf] %v477_v2  ;;  %482 = vst [vmem:[#allocation6 + $0x37c] sm:$0xff] %v481_v4   ;;  %v497_v11 = vld [vmem:[%s11775_s3 + $0x39c] sm:$0xff]  }
  0x7b   :  { %480 = vst [vmem:[#allocation6 + $0x378] sm:$0xf] %v479_v3  ;;  %v485_v5 = vld [vmem:[%s11775_s3 + $0x390] sm:$0xf]  ;;  %v487_v6 = vld [vmem:[%s11775_s3 + $0x384] sm:$0xf] }
  0x7c   :  { %v489_v7 = vld [vmem:[%s11775_s3 + $0x394] sm:$0xf]  ;;  %486 = vst [vmem:[#allocation6 + $0x384] sm:$0xf] %v485_v5  ;;  %488 = vst [vmem:[#allocation6 + $0x388] sm:$0xf] %v487_v6 }
  0x7d   :  { %490 = vst [vmem:[#allocation6 + $0x38c] sm:$0xf] %v489_v7  ;;  %v491_v8 = vld [vmem:[%s11775_s3 + $0x388] sm:$0xf]  ;;  %v493_v9 = vld [vmem:[%s11775_s3 + $0x398] sm:$0xf] }
  0x7e   :  { %v495_v10 = vld [vmem:[%s11775_s3 + $0x38c] sm:$0xf]  ;;  %492 = vst [vmem:[#allocation6 + $0x390] sm:$0xf] %v491_v8  ;;  %494 = vst [vmem:[#allocation6 + $0x394] sm:$0xf] %v493_v9 }
  0x7f   :  { %496 = vst [vmem:[#allocation6 + $0x398] sm:$0xf] %v495_v10  ;;  %v501_v12 = vld [vmem:[%s11775_s3 + $0x3b0] sm:$0xf]  ;;  %v503_v13 = vld [vmem:[%s11775_s3 + $0x3a4] sm:$0xf] }
  0x80   :  { %498 = vst [vmem:[#allocation6 + $0x39c] sm:$0xff] %v497_v11   ;;  %502 = vst [vmem:[#allocation6 + $0x3a4] sm:$0xf] %v501_v12  ;;  %v505_v14 = vld [vmem:[%s11775_s3 + $0x3b4] sm:$0xf]  ;;  %v513_v18 = vld [vmem:[%s11775_s3 + $0x3bc] sm:$0xff]  }
  0x81   :  { %504 = vst [vmem:[#allocation6 + $0x3a8] sm:$0xf] %v503_v13  ;;  %v507_v15 = vld [vmem:[%s11775_s3 + $0x3a8] sm:$0xf]  ;;  %v509_v16 = vld [vmem:[%s11775_s3 + $0x3b8] sm:$0xf] }
  0x82   :  { %506 = vst [vmem:[#allocation6 + $0x3ac] sm:$0xf] %v505_v14  ;;  %508 = vst [vmem:[#allocation6 + $0x3b0] sm:$0xf] %v507_v15  ;;  %v511_v17 = vld [vmem:[%s11775_s3 + $0x3ac] sm:$0xf] }
  0x83   :  { %510 = vst [vmem:[#allocation6 + $0x3b4] sm:$0xf] %v509_v16  ;;  %v517_v19 = vld [vmem:[%s11775_s3 + $0x3d0] sm:$0xf]  ;;  %512 = vst [vmem:[#allocation6 + $0x3b8] sm:$0xf] %v511_v17 }
  0x84   :  { %514 = vst [vmem:[#allocation6 + $0x3bc] sm:$0xff] %v513_v18   ;;  %518 = vst [vmem:[#allocation6 + $0x3c4] sm:$0xf] %v517_v19  ;;  %v519_v20 = vld [vmem:[%s11775_s3 + $0x3c4] sm:$0xf]  ;;  %v529_v25 = vld [vmem:[%s11775_s3 + $0x3dc] sm:$0xff]  }
  0x85   :  { %v521_v21 = vld [vmem:[%s11775_s3 + $0x3d4] sm:$0xf]  ;;  %v523_v22 = vld [vmem:[%s11775_s3 + $0x3c8] sm:$0xf]  ;;  %520 = vst [vmem:[#allocation6 + $0x3c8] sm:$0xf] %v519_v20 }
  0x86   :  { %522 = vst [vmem:[#allocation6 + $0x3cc] sm:$0xf] %v521_v21  ;;  %524 = vst [vmem:[#allocation6 + $0x3d0] sm:$0xf] %v523_v22  ;;  %v525_v23 = vld [vmem:[%s11775_s3 + $0x3d8] sm:$0xf] }
  0x87   :  { %v527_v24 = vld [vmem:[%s11775_s3 + $0x3cc] sm:$0xf]  ;;  %526 = vst [vmem:[#allocation6 + $0x3d4] sm:$0xf] %v525_v23  ;;  %530 = vst [vmem:[#allocation6 + $0x3dc] sm:$0xff] %v529_v25   ;;  %v545_v32 = vld [vmem:[%s11775_s3 + $0x3fc] sm:$0xff]  }
  0x88   :  { %528 = vst [vmem:[#allocation6 + $0x3d8] sm:$0xf] %v527_v24  ;;  %v533_v26 = vld [vmem:[%s11775_s3 + $0x3f0] sm:$0xf]  ;;  %v535_v27 = vld [vmem:[%s11775_s3 + $0x3e4] sm:$0xf] }
  0x89   :  { %v537_v28 = vld [vmem:[%s11775_s3 + $0x3f4] sm:$0xf]  ;;  %534 = vst [vmem:[#allocation6 + $0x3e4] sm:$0xf] %v533_v26  ;;  %536 = vst [vmem:[#allocation6 + $0x3e8] sm:$0xf] %v535_v27 }
  0x8a   :  { %538 = vst [vmem:[#allocation6 + $0x3ec] sm:$0xf] %v537_v28  ;;  %v539_v29 = vld [vmem:[%s11775_s3 + $0x3e8] sm:$0xf]  ;;  %v541_v30 = vld [vmem:[%s11775_s3 + $0x3f8] sm:$0xf] }
  0x8b   :  { %v543_v31 = vld [vmem:[%s11775_s3 + $0x3ec] sm:$0xf]  ;;  %540 = vst [vmem:[#allocation6 + $0x3f0] sm:$0xf] %v539_v29  ;;  %542 = vst [vmem:[#allocation6 + $0x3f4] sm:$0xf] %v541_v30 }
  0x8c   :  { %544 = vst [vmem:[#allocation6 + $0x3f8] sm:$0xf] %v543_v31  ;;  %v549_v33 = vld [vmem:[%s11775_s3 + $0x410] sm:$0xf]  ;;  %v551_v34 = vld [vmem:[%s11775_s3 + $0x404] sm:$0xf] }
  0x8d   :  { %546 = vst [vmem:[#allocation6 + $0x3fc] sm:$0xff] %v545_v32   ;;  %550 = vst [vmem:[#allocation6 + $0x404] sm:$0xf] %v549_v33  ;;  %v553_v35 = vld [vmem:[%s11775_s3 + $0x414] sm:$0xf]  ;;  %v561_v39 = vld [vmem:[%s11775_s3 + $0x41c] sm:$0xff]  }
  0x8e   :  { %552 = vst [vmem:[#allocation6 + $0x408] sm:$0xf] %v551_v34  ;;  %v555_v36 = vld [vmem:[%s11775_s3 + $0x408] sm:$0xf]  ;;  %v557_v37 = vld [vmem:[%s11775_s3 + $0x418] sm:$0xf] }
  0x8f   :  { %554 = vst [vmem:[#allocation6 + $0x40c] sm:$0xf] %v553_v35  ;;  %556 = vst [vmem:[#allocation6 + $0x410] sm:$0xf] %v555_v36  ;;  %v559_v38 = vld [vmem:[%s11775_s3 + $0x40c] sm:$0xf] }
  0x90   :  { %558 = vst [vmem:[#allocation6 + $0x414] sm:$0xf] %v557_v37  ;;  %v565_v40 = vld [vmem:[%s11775_s3 + $0x430] sm:$0xf]  ;;  %560 = vst [vmem:[#allocation6 + $0x418] sm:$0xf] %v559_v38 }
  0x91   :  { %562 = vst [vmem:[#allocation6 + $0x41c] sm:$0xff] %v561_v39   ;;  %566 = vst [vmem:[#allocation6 + $0x424] sm:$0xf] %v565_v40  ;;  %v567_v41 = vld [vmem:[%s11775_s3 + $0x424] sm:$0xf]  ;;  %v577_v46 = vld [vmem:[%s11775_s3 + $0x43c] sm:$0xff]  }
  0x92   :  { %v569_v42 = vld [vmem:[%s11775_s3 + $0x434] sm:$0xf]  ;;  %v571_v43 = vld [vmem:[%s11775_s3 + $0x428] sm:$0xf]  ;;  %568 = vst [vmem:[#allocation6 + $0x428] sm:$0xf] %v567_v41 }
  0x93   :  { %570 = vst [vmem:[#allocation6 + $0x42c] sm:$0xf] %v569_v42  ;;  %572 = vst [vmem:[#allocation6 + $0x430] sm:$0xf] %v571_v43  ;;  %v573_v44 = vld [vmem:[%s11775_s3 + $0x438] sm:$0xf] }
  0x94   :  { %v575_v45 = vld [vmem:[%s11775_s3 + $0x42c] sm:$0xf]  ;;  %574 = vst [vmem:[#allocation6 + $0x434] sm:$0xf] %v573_v44  ;;  %578 = vst [vmem:[#allocation6 + $0x43c] sm:$0xff] %v577_v46   ;;  %v593_v53 = vld [vmem:[%s11775_s3 + $0x45c] sm:$0xff]  }
  0x95   :  { %576 = vst [vmem:[#allocation6 + $0x438] sm:$0xf] %v575_v45  ;;  %v581_v47 = vld [vmem:[%s11775_s3 + $0x450] sm:$0xf]  ;;  %v583_v48 = vld [vmem:[%s11775_s3 + $0x444] sm:$0xf] }
  0x96   :  { %v585_v49 = vld [vmem:[%s11775_s3 + $0x454] sm:$0xf]  ;;  %582 = vst [vmem:[#allocation6 + $0x444] sm:$0xf] %v581_v47  ;;  %584 = vst [vmem:[#allocation6 + $0x448] sm:$0xf] %v583_v48 }
  0x97   :  { %586 = vst [vmem:[#allocation6 + $0x44c] sm:$0xf] %v585_v49  ;;  %v587_v50 = vld [vmem:[%s11775_s3 + $0x448] sm:$0xf]  ;;  %v589_v51 = vld [vmem:[%s11775_s3 + $0x458] sm:$0xf] }
  0x98   :  { %v591_v52 = vld [vmem:[%s11775_s3 + $0x44c] sm:$0xf]  ;;  %588 = vst [vmem:[#allocation6 + $0x450] sm:$0xf] %v587_v50  ;;  %590 = vst [vmem:[#allocation6 + $0x454] sm:$0xf] %v589_v51 }
  0x99   :  { %592 = vst [vmem:[#allocation6 + $0x458] sm:$0xf] %v591_v52  ;;  %v597_v54 = vld [vmem:[%s11775_s3 + $0x470] sm:$0xf]  ;;  %v599_v55 = vld [vmem:[%s11775_s3 + $0x464] sm:$0xf] }
  0x9a   :  { %594 = vst [vmem:[#allocation6 + $0x45c] sm:$0xff] %v593_v53   ;;  %598 = vst [vmem:[#allocation6 + $0x464] sm:$0xf] %v597_v54  ;;  %v601_v56 = vld [vmem:[%s11775_s3 + $0x474] sm:$0xf]  ;;  %v609_v60 = vld [vmem:[%s11775_s3 + $0x47c] sm:$0xff]  }
  0x9b   :  { %600 = vst [vmem:[#allocation6 + $0x468] sm:$0xf] %v599_v55  ;;  %v603_v57 = vld [vmem:[%s11775_s3 + $0x468] sm:$0xf]  ;;  %v605_v58 = vld [vmem:[%s11775_s3 + $0x478] sm:$0xf] }
  0x9c   :  { %602 = vst [vmem:[#allocation6 + $0x46c] sm:$0xf] %v601_v56  ;;  %604 = vst [vmem:[#allocation6 + $0x470] sm:$0xf] %v603_v57  ;;  %v607_v59 = vld [vmem:[%s11775_s3 + $0x46c] sm:$0xf] }
  0x9d   :  { %606 = vst [vmem:[#allocation6 + $0x474] sm:$0xf] %v605_v58  ;;  %v613_v61 = vld [vmem:[%s11775_s3 + $0x490] sm:$0xf]  ;;  %608 = vst [vmem:[#allocation6 + $0x478] sm:$0xf] %v607_v59 }
  0x9e   :  { %610 = vst [vmem:[#allocation6 + $0x47c] sm:$0xff] %v609_v60   ;;  %614 = vst [vmem:[#allocation6 + $0x484] sm:$0xf] %v613_v61  ;;  %v615_v62 = vld [vmem:[%s11775_s3 + $0x484] sm:$0xf]  ;;  %v625_v3 = vld [vmem:[%s11775_s3 + $0x49c] sm:$0xff]  }
  0x9f   :  { %v617_v63 = vld [vmem:[%s11775_s3 + $0x494] sm:$0xf]  ;;  %v619_v0 = vld [vmem:[%s11775_s3 + $0x488] sm:$0xf]  ;;  %616 = vst [vmem:[#allocation6 + $0x488] sm:$0xf] %v615_v62 }
  0xa0   :  { %618 = vst [vmem:[#allocation6 + $0x48c] sm:$0xf] %v617_v63  ;;  %620 = vst [vmem:[#allocation6 + $0x490] sm:$0xf] %v619_v0  ;;  %v621_v1 = vld [vmem:[%s11775_s3 + $0x498] sm:$0xf] }
  0xa1   :  { %v623_v2 = vld [vmem:[%s11775_s3 + $0x48c] sm:$0xf]  ;;  %622 = vst [vmem:[#allocation6 + $0x494] sm:$0xf] %v621_v1  ;;  %626 = vst [vmem:[#allocation6 + $0x49c] sm:$0xff] %v625_v3   ;;  %v641_v10 = vld [vmem:[%s11775_s3 + $0x4bc] sm:$0xff]  }
  0xa2   :  { %624 = vst [vmem:[#allocation6 + $0x498] sm:$0xf] %v623_v2  ;;  %v629_v4 = vld [vmem:[%s11775_s3 + $0x4b0] sm:$0xf]  ;;  %v631_v5 = vld [vmem:[%s11775_s3 + $0x4a4] sm:$0xf] }
  0xa3   :  { %v633_v6 = vld [vmem:[%s11775_s3 + $0x4b4] sm:$0xf]  ;;  %630 = vst [vmem:[#allocation6 + $0x4a4] sm:$0xf] %v629_v4  ;;  %632 = vst [vmem:[#allocation6 + $0x4a8] sm:$0xf] %v631_v5 }
  0xa4   :  { %634 = vst [vmem:[#allocation6 + $0x4ac] sm:$0xf] %v633_v6  ;;  %v635_v7 = vld [vmem:[%s11775_s3 + $0x4a8] sm:$0xf]  ;;  %v637_v8 = vld [vmem:[%s11775_s3 + $0x4b8] sm:$0xf] }
  0xa5   :  { %v639_v9 = vld [vmem:[%s11775_s3 + $0x4ac] sm:$0xf]  ;;  %636 = vst [vmem:[#allocation6 + $0x4b0] sm:$0xf] %v635_v7  ;;  %638 = vst [vmem:[#allocation6 + $0x4b4] sm:$0xf] %v637_v8 }
  0xa6   :  { %640 = vst [vmem:[#allocation6 + $0x4b8] sm:$0xf] %v639_v9  ;;  %v645_v11 = vld [vmem:[%s11775_s3 + $0x4d0] sm:$0xf]  ;;  %v647_v12 = vld [vmem:[%s11775_s3 + $0x4c4] sm:$0xf] }
  0xa7   :  { %642 = vst [vmem:[#allocation6 + $0x4bc] sm:$0xff] %v641_v10   ;;  %646 = vst [vmem:[#allocation6 + $0x4c4] sm:$0xf] %v645_v11  ;;  %v649_v13 = vld [vmem:[%s11775_s3 + $0x4d4] sm:$0xf]  ;;  %v657_v17 = vld [vmem:[%s11775_s3 + $0x4dc] sm:$0xff]  }
  0xa8   :  { %648 = vst [vmem:[#allocation6 + $0x4c8] sm:$0xf] %v647_v12  ;;  %v651_v14 = vld [vmem:[%s11775_s3 + $0x4c8] sm:$0xf]  ;;  %v653_v15 = vld [vmem:[%s11775_s3 + $0x4d8] sm:$0xf] }
  0xa9   :  { %650 = vst [vmem:[#allocation6 + $0x4cc] sm:$0xf] %v649_v13  ;;  %652 = vst [vmem:[#allocation6 + $0x4d0] sm:$0xf] %v651_v14  ;;  %v655_v16 = vld [vmem:[%s11775_s3 + $0x4cc] sm:$0xf] }
  0xaa   :  { %654 = vst [vmem:[#allocation6 + $0x4d4] sm:$0xf] %v653_v15  ;;  %v661_v18 = vld [vmem:[%s11775_s3 + $0x4f0] sm:$0xf]  ;;  %656 = vst [vmem:[#allocation6 + $0x4d8] sm:$0xf] %v655_v16 }
  0xab   :  { %658 = vst [vmem:[#allocation6 + $0x4dc] sm:$0xff] %v657_v17   ;;  %662 = vst [vmem:[#allocation6 + $0x4e4] sm:$0xf] %v661_v18  ;;  %v663_v19 = vld [vmem:[%s11775_s3 + $0x4e4] sm:$0xf]  ;;  %v673_v24 = vld [vmem:[%s11775_s3 + $0x4fc] sm:$0xff]  }
  0xac   :  { %v665_v20 = vld [vmem:[%s11775_s3 + $0x4f4] sm:$0xf]  ;;  %v667_v21 = vld [vmem:[%s11775_s3 + $0x4e8] sm:$0xf]  ;;  %664 = vst [vmem:[#allocation6 + $0x4e8] sm:$0xf] %v663_v19 }
  0xad   :  { %666 = vst [vmem:[#allocation6 + $0x4ec] sm:$0xf] %v665_v20  ;;  %668 = vst [vmem:[#allocation6 + $0x4f0] sm:$0xf] %v667_v21  ;;  %v669_v22 = vld [vmem:[%s11775_s3 + $0x4f8] sm:$0xf] }
  0xae   :  { %v671_v23 = vld [vmem:[%s11775_s3 + $0x4ec] sm:$0xf]  ;;  %670 = vst [vmem:[#allocation6 + $0x4f4] sm:$0xf] %v669_v22  ;;  %674 = vst [vmem:[#allocation6 + $0x4fc] sm:$0xff] %v673_v24   ;;  %v689_v31 = vld [vmem:[%s11775_s3 + $0x51c] sm:$0xff]  }
  0xaf   :  { %672 = vst [vmem:[#allocation6 + $0x4f8] sm:$0xf] %v671_v23  ;;  %v677_v25 = vld [vmem:[%s11775_s3 + $0x510] sm:$0xf]  ;;  %v679_v26 = vld [vmem:[%s11775_s3 + $0x504] sm:$0xf] }
  0xb0   :  { %v681_v27 = vld [vmem:[%s11775_s3 + $0x514] sm:$0xf]  ;;  %678 = vst [vmem:[#allocation6 + $0x504] sm:$0xf] %v677_v25  ;;  %680 = vst [vmem:[#allocation6 + $0x508] sm:$0xf] %v679_v26 }
  0xb1   :  { %682 = vst [vmem:[#allocation6 + $0x50c] sm:$0xf] %v681_v27  ;;  %v683_v28 = vld [vmem:[%s11775_s3 + $0x508] sm:$0xf]  ;;  %v685_v29 = vld [vmem:[%s11775_s3 + $0x518] sm:$0xf] }
  0xb2   :  { %v687_v30 = vld [vmem:[%s11775_s3 + $0x50c] sm:$0xf]  ;;  %684 = vst [vmem:[#allocation6 + $0x510] sm:$0xf] %v683_v28  ;;  %686 = vst [vmem:[#allocation6 + $0x514] sm:$0xf] %v685_v29 }
  0xb3   :  { %688 = vst [vmem:[#allocation6 + $0x518] sm:$0xf] %v687_v30  ;;  %v693_v32 = vld [vmem:[%s11775_s3 + $0x530] sm:$0xf]  ;;  %v695_v33 = vld [vmem:[%s11775_s3 + $0x524] sm:$0xf] }
  0xb4   :  { %690 = vst [vmem:[#allocation6 + $0x51c] sm:$0xff] %v689_v31   ;;  %694 = vst [vmem:[#allocation6 + $0x524] sm:$0xf] %v693_v32  ;;  %v697_v34 = vld [vmem:[%s11775_s3 + $0x534] sm:$0xf]  ;;  %v705_v38 = vld [vmem:[%s11775_s3 + $0x53c] sm:$0xff]  }
  0xb5   :  { %696 = vst [vmem:[#allocation6 + $0x528] sm:$0xf] %v695_v33  ;;  %v699_v35 = vld [vmem:[%s11775_s3 + $0x528] sm:$0xf]  ;;  %v701_v36 = vld [vmem:[%s11775_s3 + $0x538] sm:$0xf] }
  0xb6   :  { %698 = vst [vmem:[#allocation6 + $0x52c] sm:$0xf] %v697_v34  ;;  %700 = vst [vmem:[#allocation6 + $0x530] sm:$0xf] %v699_v35  ;;  %v703_v37 = vld [vmem:[%s11775_s3 + $0x52c] sm:$0xf] }
  0xb7   :  { %702 = vst [vmem:[#allocation6 + $0x534] sm:$0xf] %v701_v36  ;;  %v709_v39 = vld [vmem:[%s11775_s3 + $0x550] sm:$0xf]  ;;  %704 = vst [vmem:[#allocation6 + $0x538] sm:$0xf] %v703_v37 }
  0xb8   :  { %706 = vst [vmem:[#allocation6 + $0x53c] sm:$0xff] %v705_v38   ;;  %710 = vst [vmem:[#allocation6 + $0x544] sm:$0xf] %v709_v39  ;;  %v711_v40 = vld [vmem:[%s11775_s3 + $0x544] sm:$0xf]  ;;  %v721_v45 = vld [vmem:[%s11775_s3 + $0x55c] sm:$0xff]  }
  0xb9   :  { %v713_v41 = vld [vmem:[%s11775_s3 + $0x554] sm:$0xf]  ;;  %v715_v42 = vld [vmem:[%s11775_s3 + $0x548] sm:$0xf]  ;;  %712 = vst [vmem:[#allocation6 + $0x548] sm:$0xf] %v711_v40 }
  0xba   :  { %714 = vst [vmem:[#allocation6 + $0x54c] sm:$0xf] %v713_v41  ;;  %716 = vst [vmem:[#allocation6 + $0x550] sm:$0xf] %v715_v42  ;;  %v717_v43 = vld [vmem:[%s11775_s3 + $0x558] sm:$0xf] }
  0xbb   :  { %v719_v44 = vld [vmem:[%s11775_s3 + $0x54c] sm:$0xf]  ;;  %718 = vst [vmem:[#allocation6 + $0x554] sm:$0xf] %v717_v43  ;;  %722 = vst [vmem:[#allocation6 + $0x55c] sm:$0xff] %v721_v45   ;;  %v737_v52 = vld [vmem:[%s11775_s3 + $0x57c] sm:$0xff]  }
  0xbc   :  { %720 = vst [vmem:[#allocation6 + $0x558] sm:$0xf] %v719_v44  ;;  %v725_v46 = vld [vmem:[%s11775_s3 + $0x570] sm:$0xf]  ;;  %v727_v47 = vld [vmem:[%s11775_s3 + $0x564] sm:$0xf] }
  0xbd   :  { %v729_v48 = vld [vmem:[%s11775_s3 + $0x574] sm:$0xf]  ;;  %726 = vst [vmem:[#allocation6 + $0x564] sm:$0xf] %v725_v46  ;;  %728 = vst [vmem:[#allocation6 + $0x568] sm:$0xf] %v727_v47 }
  0xbe   :  { %730 = vst [vmem:[#allocation6 + $0x56c] sm:$0xf] %v729_v48  ;;  %v731_v49 = vld [vmem:[%s11775_s3 + $0x568] sm:$0xf]  ;;  %v733_v50 = vld [vmem:[%s11775_s3 + $0x578] sm:$0xf] }
  0xbf   :  { %v735_v51 = vld [vmem:[%s11775_s3 + $0x56c] sm:$0xf]  ;;  %732 = vst [vmem:[#allocation6 + $0x570] sm:$0xf] %v731_v49  ;;  %734 = vst [vmem:[#allocation6 + $0x574] sm:$0xf] %v733_v50 }
  0xc0   :  { %736 = vst [vmem:[#allocation6 + $0x578] sm:$0xf] %v735_v51  ;;  %v741_v53 = vld [vmem:[%s11775_s3 + $0x590] sm:$0xf]  ;;  %v743_v54 = vld [vmem:[%s11775_s3 + $0x584] sm:$0xf] }
  0xc1   :  { %738 = vst [vmem:[#allocation6 + $0x57c] sm:$0xff] %v737_v52   ;;  %742 = vst [vmem:[#allocation6 + $0x584] sm:$0xf] %v741_v53  ;;  %v745_v55 = vld [vmem:[%s11775_s3 + $0x594] sm:$0xf]  ;;  %v753_v59 = vld [vmem:[%s11775_s3 + $0x59c] sm:$0xff]  }
  0xc2   :  { %744 = vst [vmem:[#allocation6 + $0x588] sm:$0xf] %v743_v54  ;;  %v747_v56 = vld [vmem:[%s11775_s3 + $0x588] sm:$0xf]  ;;  %v749_v57 = vld [vmem:[%s11775_s3 + $0x598] sm:$0xf] }
  0xc3   :  { %746 = vst [vmem:[#allocation6 + $0x58c] sm:$0xf] %v745_v55  ;;  %748 = vst [vmem:[#allocation6 + $0x590] sm:$0xf] %v747_v56  ;;  %v751_v58 = vld [vmem:[%s11775_s3 + $0x58c] sm:$0xf] }
  0xc4   :  { %750 = vst [vmem:[#allocation6 + $0x594] sm:$0xf] %v749_v57  ;;  %v757_v60 = vld [vmem:[%s11775_s3 + $0x5b0] sm:$0xf]  ;;  %752 = vst [vmem:[#allocation6 + $0x598] sm:$0xf] %v751_v58 }
  0xc5   :  { %754 = vst [vmem:[#allocation6 + $0x59c] sm:$0xff] %v753_v59   ;;  %758 = vst [vmem:[#allocation6 + $0x5a4] sm:$0xf] %v757_v60  ;;  %v759_v61 = vld [vmem:[%s11775_s3 + $0x5a4] sm:$0xf]  ;;  %v769_v2 = vld [vmem:[%s11775_s3 + $0x5bc] sm:$0xff]  }
  0xc6   :  { %v761_v62 = vld [vmem:[%s11775_s3 + $0x5b4] sm:$0xf]  ;;  %v763_v63 = vld [vmem:[%s11775_s3 + $0x5a8] sm:$0xf]  ;;  %760 = vst [vmem:[#allocation6 + $0x5a8] sm:$0xf] %v759_v61 }
  0xc7   :  { %762 = vst [vmem:[#allocation6 + $0x5ac] sm:$0xf] %v761_v62  ;;  %764 = vst [vmem:[#allocation6 + $0x5b0] sm:$0xf] %v763_v63  ;;  %v765_v0 = vld [vmem:[%s11775_s3 + $0x5b8] sm:$0xf] }
  0xc8   :  { %v767_v1 = vld [vmem:[%s11775_s3 + $0x5ac] sm:$0xf]  ;;  %766 = vst [vmem:[#allocation6 + $0x5b4] sm:$0xf] %v765_v0  ;;  %770 = vst [vmem:[#allocation6 + $0x5bc] sm:$0xff] %v769_v2   ;;  %v785_v9 = vld [vmem:[%s11775_s3 + $0x5dc] sm:$0xff]  }
  0xc9   :  { %768 = vst [vmem:[#allocation6 + $0x5b8] sm:$0xf] %v767_v1  ;;  %v773_v3 = vld [vmem:[%s11775_s3 + $0x5d0] sm:$0xf]  ;;  %v775_v4 = vld [vmem:[%s11775_s3 + $0x5c4] sm:$0xf] }
  0xca   :  { %v777_v5 = vld [vmem:[%s11775_s3 + $0x5d4] sm:$0xf]  ;;  %774 = vst [vmem:[#allocation6 + $0x5c4] sm:$0xf] %v773_v3  ;;  %776 = vst [vmem:[#allocation6 + $0x5c8] sm:$0xf] %v775_v4 }
  0xcb   :  { %778 = vst [vmem:[#allocation6 + $0x5cc] sm:$0xf] %v777_v5  ;;  %v779_v6 = vld [vmem:[%s11775_s3 + $0x5c8] sm:$0xf]  ;;  %v781_v7 = vld [vmem:[%s11775_s3 + $0x5d8] sm:$0xf] }
  0xcc   :  { %v783_v8 = vld [vmem:[%s11775_s3 + $0x5cc] sm:$0xf]  ;;  %780 = vst [vmem:[#allocation6 + $0x5d0] sm:$0xf] %v779_v6  ;;  %782 = vst [vmem:[#allocation6 + $0x5d4] sm:$0xf] %v781_v7 }
  0xcd   :  { %784 = vst [vmem:[#allocation6 + $0x5d8] sm:$0xf] %v783_v8  ;;  %v789_v10 = vld [vmem:[%s11775_s3 + $0x5f0] sm:$0xf]  ;;  %v791_v11 = vld [vmem:[%s11775_s3 + $0x5e4] sm:$0xf] }
  0xce   :  { %786 = vst [vmem:[#allocation6 + $0x5dc] sm:$0xff] %v785_v9   ;;  %790 = vst [vmem:[#allocation6 + $0x5e4] sm:$0xf] %v789_v10  ;;  %v793_v12 = vld [vmem:[%s11775_s3 + $0x5f4] sm:$0xf]  ;;  %v801_v16 = vld [vmem:[%s11775_s3 + $0x5fc] sm:$0xff]  }
  0xcf   :  { %792 = vst [vmem:[#allocation6 + $0x5e8] sm:$0xf] %v791_v11  ;;  %v795_v13 = vld [vmem:[%s11775_s3 + $0x5e8] sm:$0xf]  ;;  %v797_v14 = vld [vmem:[%s11775_s3 + $0x5f8] sm:$0xf] }
  0xd0   :  { %794 = vst [vmem:[#allocation6 + $0x5ec] sm:$0xf] %v793_v12  ;;  %796 = vst [vmem:[#allocation6 + $0x5f0] sm:$0xf] %v795_v13  ;;  %v799_v15 = vld [vmem:[%s11775_s3 + $0x5ec] sm:$0xf] }
  0xd1   :  { %798 = vst [vmem:[#allocation6 + $0x5f4] sm:$0xf] %v797_v14  ;;  %v805_v17 = vld [vmem:[%s11775_s3 + $0x610] sm:$0xf]  ;;  %800 = vst [vmem:[#allocation6 + $0x5f8] sm:$0xf] %v799_v15 }
  0xd2   :  { %802 = vst [vmem:[#allocation6 + $0x5fc] sm:$0xff] %v801_v16   ;;  %806 = vst [vmem:[#allocation6 + $0x604] sm:$0xf] %v805_v17  ;;  %v807_v18 = vld [vmem:[%s11775_s3 + $0x604] sm:$0xf]  ;;  %v817_v23 = vld [vmem:[%s11775_s3 + $0x61c] sm:$0xff]  }
  0xd3   :  { %v809_v19 = vld [vmem:[%s11775_s3 + $0x614] sm:$0xf]  ;;  %v811_v20 = vld [vmem:[%s11775_s3 + $0x608] sm:$0xf]  ;;  %808 = vst [vmem:[#allocation6 + $0x608] sm:$0xf] %v807_v18 }
  0xd4   :  { %810 = vst [vmem:[#allocation6 + $0x60c] sm:$0xf] %v809_v19  ;;  %812 = vst [vmem:[#allocation6 + $0x610] sm:$0xf] %v811_v20  ;;  %v813_v21 = vld [vmem:[%s11775_s3 + $0x618] sm:$0xf] }
  0xd5   :  { %v815_v22 = vld [vmem:[%s11775_s3 + $0x60c] sm:$0xf]  ;;  %814 = vst [vmem:[#allocation6 + $0x614] sm:$0xf] %v813_v21  ;;  %818 = vst [vmem:[#allocation6 + $0x61c] sm:$0xff] %v817_v23   ;;  %v833_v30 = vld [vmem:[%s11775_s3 + $0x63c] sm:$0xff]  }
  0xd6   :  { %816 = vst [vmem:[#allocation6 + $0x618] sm:$0xf] %v815_v22  ;;  %v821_v24 = vld [vmem:[%s11775_s3 + $0x630] sm:$0xf]  ;;  %v823_v25 = vld [vmem:[%s11775_s3 + $0x624] sm:$0xf] }
  0xd7   :  { %v825_v26 = vld [vmem:[%s11775_s3 + $0x634] sm:$0xf]  ;;  %822 = vst [vmem:[#allocation6 + $0x624] sm:$0xf] %v821_v24  ;;  %824 = vst [vmem:[#allocation6 + $0x628] sm:$0xf] %v823_v25 }
  0xd8   :  { %826 = vst [vmem:[#allocation6 + $0x62c] sm:$0xf] %v825_v26  ;;  %v827_v27 = vld [vmem:[%s11775_s3 + $0x628] sm:$0xf]  ;;  %v829_v28 = vld [vmem:[%s11775_s3 + $0x638] sm:$0xf] }
  0xd9   :  { %v831_v29 = vld [vmem:[%s11775_s3 + $0x62c] sm:$0xf]  ;;  %828 = vst [vmem:[#allocation6 + $0x630] sm:$0xf] %v827_v27  ;;  %830 = vst [vmem:[#allocation6 + $0x634] sm:$0xf] %v829_v28 }
  0xda   :  { %832 = vst [vmem:[#allocation6 + $0x638] sm:$0xf] %v831_v29  ;;  %v837_v31 = vld [vmem:[%s11775_s3 + $0x650] sm:$0xf]  ;;  %v839_v32 = vld [vmem:[%s11775_s3 + $0x644] sm:$0xf] }
  0xdb   :  { %834 = vst [vmem:[#allocation6 + $0x63c] sm:$0xff] %v833_v30   ;;  %838 = vst [vmem:[#allocation6 + $0x644] sm:$0xf] %v837_v31  ;;  %v841_v33 = vld [vmem:[%s11775_s3 + $0x654] sm:$0xf]  ;;  %v849_v37 = vld [vmem:[%s11775_s3 + $0x65c] sm:$0xff]  }
  0xdc   :  { %840 = vst [vmem:[#allocation6 + $0x648] sm:$0xf] %v839_v32  ;;  %v843_v34 = vld [vmem:[%s11775_s3 + $0x648] sm:$0xf]  ;;  %v845_v35 = vld [vmem:[%s11775_s3 + $0x658] sm:$0xf] }
  0xdd   :  { %842 = vst [vmem:[#allocation6 + $0x64c] sm:$0xf] %v841_v33  ;;  %844 = vst [vmem:[#allocation6 + $0x650] sm:$0xf] %v843_v34  ;;  %v847_v36 = vld [vmem:[%s11775_s3 + $0x64c] sm:$0xf] }
  0xde   :  { %846 = vst [vmem:[#allocation6 + $0x654] sm:$0xf] %v845_v35  ;;  %v853_v38 = vld [vmem:[%s11775_s3 + $0x670] sm:$0xf]  ;;  %848 = vst [vmem:[#allocation6 + $0x658] sm:$0xf] %v847_v36 }
  0xdf   :  { %850 = vst [vmem:[#allocation6 + $0x65c] sm:$0xff] %v849_v37   ;;  %854 = vst [vmem:[#allocation6 + $0x664] sm:$0xf] %v853_v38  ;;  %v855_v39 = vld [vmem:[%s11775_s3 + $0x664] sm:$0xf]  ;;  %v865_v44 = vld [vmem:[%s11775_s3 + $0x67c] sm:$0xff]  }
  0xe0   :  { %v857_v40 = vld [vmem:[%s11775_s3 + $0x674] sm:$0xf]  ;;  %v859_v41 = vld [vmem:[%s11775_s3 + $0x668] sm:$0xf]  ;;  %856 = vst [vmem:[#allocation6 + $0x668] sm:$0xf] %v855_v39 }
  0xe1   :  { %858 = vst [vmem:[#allocation6 + $0x66c] sm:$0xf] %v857_v40  ;;  %860 = vst [vmem:[#allocation6 + $0x670] sm:$0xf] %v859_v41  ;;  %v861_v42 = vld [vmem:[%s11775_s3 + $0x678] sm:$0xf] }
  0xe2   :  { %v863_v43 = vld [vmem:[%s11775_s3 + $0x66c] sm:$0xf]  ;;  %862 = vst [vmem:[#allocation6 + $0x674] sm:$0xf] %v861_v42  ;;  %866 = vst [vmem:[#allocation6 + $0x67c] sm:$0xff] %v865_v44   ;;  %v881_v51 = vld [vmem:[%s11775_s3 + $0x69c] sm:$0xff]  }
  0xe3   :  { %864 = vst [vmem:[#allocation6 + $0x678] sm:$0xf] %v863_v43  ;;  %v869_v45 = vld [vmem:[%s11775_s3 + $0x690] sm:$0xf]  ;;  %v871_v46 = vld [vmem:[%s11775_s3 + $0x684] sm:$0xf] }
  0xe4   :  { %v873_v47 = vld [vmem:[%s11775_s3 + $0x694] sm:$0xf]  ;;  %870 = vst [vmem:[#allocation6 + $0x684] sm:$0xf] %v869_v45  ;;  %872 = vst [vmem:[#allocation6 + $0x688] sm:$0xf] %v871_v46 }
  0xe5   :  { %874 = vst [vmem:[#allocation6 + $0x68c] sm:$0xf] %v873_v47  ;;  %v875_v48 = vld [vmem:[%s11775_s3 + $0x688] sm:$0xf]  ;;  %v877_v49 = vld [vmem:[%s11775_s3 + $0x698] sm:$0xf] }
  0xe6   :  { %v879_v50 = vld [vmem:[%s11775_s3 + $0x68c] sm:$0xf]  ;;  %876 = vst [vmem:[#allocation6 + $0x690] sm:$0xf] %v875_v48  ;;  %878 = vst [vmem:[#allocation6 + $0x694] sm:$0xf] %v877_v49 }
  0xe7   :  { %880 = vst [vmem:[#allocation6 + $0x698] sm:$0xf] %v879_v50  ;;  %v885_v52 = vld [vmem:[%s11775_s3 + $0x6b0] sm:$0xf]  ;;  %v887_v53 = vld [vmem:[%s11775_s3 + $0x6a4] sm:$0xf] }
  0xe8   :  { %882 = vst [vmem:[#allocation6 + $0x69c] sm:$0xff] %v881_v51   ;;  %886 = vst [vmem:[#allocation6 + $0x6a4] sm:$0xf] %v885_v52  ;;  %v889_v54 = vld [vmem:[%s11775_s3 + $0x6b4] sm:$0xf]  ;;  %v897_v58 = vld [vmem:[%s11775_s3 + $0x6bc] sm:$0xff]  }
  0xe9   :  { %888 = vst [vmem:[#allocation6 + $0x6a8] sm:$0xf] %v887_v53  ;;  %v891_v55 = vld [vmem:[%s11775_s3 + $0x6a8] sm:$0xf]  ;;  %v893_v56 = vld [vmem:[%s11775_s3 + $0x6b8] sm:$0xf] }
  0xea   :  { %890 = vst [vmem:[#allocation6 + $0x6ac] sm:$0xf] %v889_v54  ;;  %892 = vst [vmem:[#allocation6 + $0x6b0] sm:$0xf] %v891_v55  ;;  %v895_v57 = vld [vmem:[%s11775_s3 + $0x6ac] sm:$0xf] }
  0xeb   :  { %894 = vst [vmem:[#allocation6 + $0x6b4] sm:$0xf] %v893_v56  ;;  %v901_v59 = vld [vmem:[%s11775_s3 + $0x6d0] sm:$0xf]  ;;  %896 = vst [vmem:[#allocation6 + $0x6b8] sm:$0xf] %v895_v57 }
  0xec   :  { %898 = vst [vmem:[#allocation6 + $0x6bc] sm:$0xff] %v897_v58   ;;  %902 = vst [vmem:[#allocation6 + $0x6c4] sm:$0xf] %v901_v59  ;;  %v903_v60 = vld [vmem:[%s11775_s3 + $0x6c4] sm:$0xf]  ;;  %v913_v1 = vld [vmem:[%s11775_s3 + $0x6dc] sm:$0xff]  }
  0xed   :  { %v905_v61 = vld [vmem:[%s11775_s3 + $0x6d4] sm:$0xf]  ;;  %v907_v62 = vld [vmem:[%s11775_s3 + $0x6c8] sm:$0xf]  ;;  %904 = vst [vmem:[#allocation6 + $0x6c8] sm:$0xf] %v903_v60 }
  0xee   :  { %906 = vst [vmem:[#allocation6 + $0x6cc] sm:$0xf] %v905_v61  ;;  %908 = vst [vmem:[#allocation6 + $0x6d0] sm:$0xf] %v907_v62  ;;  %v909_v63 = vld [vmem:[%s11775_s3 + $0x6d8] sm:$0xf] }
  0xef   :  { %v911_v0 = vld [vmem:[%s11775_s3 + $0x6cc] sm:$0xf]  ;;  %910 = vst [vmem:[#allocation6 + $0x6d4] sm:$0xf] %v909_v63  ;;  %914 = vst [vmem:[#allocation6 + $0x6dc] sm:$0xff] %v913_v1   ;;  %v929_v8 = vld [vmem:[%s11775_s3 + $0x6fc] sm:$0xff]  }
  0xf0   :  { %912 = vst [vmem:[#allocation6 + $0x6d8] sm:$0xf] %v911_v0  ;;  %v917_v2 = vld [vmem:[%s11775_s3 + $0x6f0] sm:$0xf]  ;;  %v919_v3 = vld [vmem:[%s11775_s3 + $0x6e4] sm:$0xf] }
  0xf1   :  { %v921_v4 = vld [vmem:[%s11775_s3 + $0x6f4] sm:$0xf]  ;;  %918 = vst [vmem:[#allocation6 + $0x6e4] sm:$0xf] %v917_v2  ;;  %920 = vst [vmem:[#allocation6 + $0x6e8] sm:$0xf] %v919_v3 }
  0xf2   :  { %922 = vst [vmem:[#allocation6 + $0x6ec] sm:$0xf] %v921_v4  ;;  %v923_v5 = vld [vmem:[%s11775_s3 + $0x6e8] sm:$0xf]  ;;  %v925_v6 = vld [vmem:[%s11775_s3 + $0x6f8] sm:$0xf] }
  0xf3   :  { %v927_v7 = vld [vmem:[%s11775_s3 + $0x6ec] sm:$0xf]  ;;  %924 = vst [vmem:[#allocation6 + $0x6f0] sm:$0xf] %v923_v5  ;;  %926 = vst [vmem:[#allocation6 + $0x6f4] sm:$0xf] %v925_v6 }
  0xf4   :  { %928 = vst [vmem:[#allocation6 + $0x6f8] sm:$0xf] %v927_v7  ;;  %v933_v9 = vld [vmem:[%s11775_s3 + $0x710] sm:$0xf]  ;;  %v935_v10 = vld [vmem:[%s11775_s3 + $0x704] sm:$0xf] }
  0xf5   :  { %930 = vst [vmem:[#allocation6 + $0x6fc] sm:$0xff] %v929_v8   ;;  %934 = vst [vmem:[#allocation6 + $0x704] sm:$0xf] %v933_v9  ;;  %v937_v11 = vld [vmem:[%s11775_s3 + $0x714] sm:$0xf]  ;;  %v945_v15 = vld [vmem:[%s11775_s3 + $0x71c] sm:$0xff]  }
  0xf6   :  { %936 = vst [vmem:[#allocation6 + $0x708] sm:$0xf] %v935_v10  ;;  %v939_v12 = vld [vmem:[%s11775_s3 + $0x708] sm:$0xf]  ;;  %v941_v13 = vld [vmem:[%s11775_s3 + $0x718] sm:$0xf] }
  0xf7   :  { %938 = vst [vmem:[#allocation6 + $0x70c] sm:$0xf] %v937_v11  ;;  %940 = vst [vmem:[#allocation6 + $0x710] sm:$0xf] %v939_v12  ;;  %v943_v14 = vld [vmem:[%s11775_s3 + $0x70c] sm:$0xf] }
  0xf8   :  { %942 = vst [vmem:[#allocation6 + $0x714] sm:$0xf] %v941_v13  ;;  %v949_v16 = vld [vmem:[%s11775_s3 + $0x730] sm:$0xf]  ;;  %944 = vst [vmem:[#allocation6 + $0x718] sm:$0xf] %v943_v14 }
  0xf9   :  { %946 = vst [vmem:[#allocation6 + $0x71c] sm:$0xff] %v945_v15   ;;  %950 = vst [vmem:[#allocation6 + $0x724] sm:$0xf] %v949_v16  ;;  %v951_v17 = vld [vmem:[%s11775_s3 + $0x724] sm:$0xf]  ;;  %v961_v22 = vld [vmem:[%s11775_s3 + $0x73c] sm:$0xff]  }
  0xfa   :  { %v953_v18 = vld [vmem:[%s11775_s3 + $0x734] sm:$0xf]  ;;  %v955_v19 = vld [vmem:[%s11775_s3 + $0x728] sm:$0xf]  ;;  %952 = vst [vmem:[#allocation6 + $0x728] sm:$0xf] %v951_v17 }
  0xfb   :  { %954 = vst [vmem:[#allocation6 + $0x72c] sm:$0xf] %v953_v18  ;;  %956 = vst [vmem:[#allocation6 + $0x730] sm:$0xf] %v955_v19  ;;  %v957_v20 = vld [vmem:[%s11775_s3 + $0x738] sm:$0xf] }
  0xfc   :  { %v959_v21 = vld [vmem:[%s11775_s3 + $0x72c] sm:$0xf]  ;;  %958 = vst [vmem:[#allocation6 + $0x734] sm:$0xf] %v957_v20  ;;  %962 = vst [vmem:[#allocation6 + $0x73c] sm:$0xff] %v961_v22   ;;  %v977_v29 = vld [vmem:[%s11775_s3 + $0x75c] sm:$0xff]  }
  0xfd   :  { %960 = vst [vmem:[#allocation6 + $0x738] sm:$0xf] %v959_v21  ;;  %v965_v23 = vld [vmem:[%s11775_s3 + $0x750] sm:$0xf]  ;;  %v967_v24 = vld [vmem:[%s11775_s3 + $0x744] sm:$0xf] }
  0xfe   :  { %v969_v25 = vld [vmem:[%s11775_s3 + $0x754] sm:$0xf]  ;;  %966 = vst [vmem:[#allocation6 + $0x744] sm:$0xf] %v965_v23  ;;  %968 = vst [vmem:[#allocation6 + $0x748] sm:$0xf] %v967_v24 }
  0xff   :  { %970 = vst [vmem:[#allocation6 + $0x74c] sm:$0xf] %v969_v25  ;;  %v971_v26 = vld [vmem:[%s11775_s3 + $0x748] sm:$0xf]  ;;  %v973_v27 = vld [vmem:[%s11775_s3 + $0x758] sm:$0xf] }
 0x100   :  { %v975_v28 = vld [vmem:[%s11775_s3 + $0x74c] sm:$0xf]  ;;  %972 = vst [vmem:[#allocation6 + $0x750] sm:$0xf] %v971_v26  ;;  %974 = vst [vmem:[#allocation6 + $0x754] sm:$0xf] %v973_v27 }
 0x101   :  { %976 = vst [vmem:[#allocation6 + $0x758] sm:$0xf] %v975_v28  ;;  %v981_v30 = vld [vmem:[%s11775_s3 + $0x770] sm:$0xf]  ;;  %v983_v31 = vld [vmem:[%s11775_s3 + $0x764] sm:$0xf] }
 0x102   :  { %978 = vst [vmem:[#allocation6 + $0x75c] sm:$0xff] %v977_v29   ;;  %982 = vst [vmem:[#allocation6 + $0x764] sm:$0xf] %v981_v30  ;;  %v985_v32 = vld [vmem:[%s11775_s3 + $0x774] sm:$0xf]  ;;  %v993_v36 = vld [vmem:[%s11775_s3 + $0x77c] sm:$0xff]  }
 0x103   :  { %984 = vst [vmem:[#allocation6 + $0x768] sm:$0xf] %v983_v31  ;;  %v987_v33 = vld [vmem:[%s11775_s3 + $0x768] sm:$0xf]  ;;  %v989_v34 = vld [vmem:[%s11775_s3 + $0x778] sm:$0xf] }
 0x104   :  { %986 = vst [vmem:[#allocation6 + $0x76c] sm:$0xf] %v985_v32  ;;  %988 = vst [vmem:[#allocation6 + $0x770] sm:$0xf] %v987_v33  ;;  %v991_v35 = vld [vmem:[%s11775_s3 + $0x76c] sm:$0xf] }
 0x105   :  { %990 = vst [vmem:[#allocation6 + $0x774] sm:$0xf] %v989_v34  ;;  %v997_v37 = vld [vmem:[%s11775_s3 + $0x790] sm:$0xf]  ;;  %992 = vst [vmem:[#allocation6 + $0x778] sm:$0xf] %v991_v35 }
 0x106   :  { %994 = vst [vmem:[#allocation6 + $0x77c] sm:$0xff] %v993_v36   ;;  %998 = vst [vmem:[#allocation6 + $0x784] sm:$0xf] %v997_v37  ;;  %v999_v38 = vld [vmem:[%s11775_s3 + $0x784] sm:$0xf]  ;;  %v1009_v43 = vld [vmem:[%s11775_s3 + $0x79c] sm:$0xff]  }
 0x107   :  { %v1001_v39 = vld [vmem:[%s11775_s3 + $0x794] sm:$0xf]  ;;  %v1003_v40 = vld [vmem:[%s11775_s3 + $0x788] sm:$0xf]  ;;  %1000 = vst [vmem:[#allocation6 + $0x788] sm:$0xf] %v999_v38 }
 0x108   :  { %1002 = vst [vmem:[#allocation6 + $0x78c] sm:$0xf] %v1001_v39  ;;  %1004 = vst [vmem:[#allocation6 + $0x790] sm:$0xf] %v1003_v40  ;;  %v1005_v41 = vld [vmem:[%s11775_s3 + $0x798] sm:$0xf] }
 0x109   :  { %v1007_v42 = vld [vmem:[%s11775_s3 + $0x78c] sm:$0xf]  ;;  %1006 = vst [vmem:[#allocation6 + $0x794] sm:$0xf] %v1005_v41  ;;  %1010 = vst [vmem:[#allocation6 + $0x79c] sm:$0xff] %v1009_v43   ;;  %v1025_v50 = vld [vmem:[%s11775_s3 + $0x7bc] sm:$0xff]  }
 0x10a   :  { %1008 = vst [vmem:[#allocation6 + $0x798] sm:$0xf] %v1007_v42  ;;  %v1013_v44 = vld [vmem:[%s11775_s3 + $0x7b0] sm:$0xf]  ;;  %v1015_v45 = vld [vmem:[%s11775_s3 + $0x7a4] sm:$0xf] }
 0x10b   :  { %v1017_v46 = vld [vmem:[%s11775_s3 + $0x7b4] sm:$0xf]  ;;  %1014 = vst [vmem:[#allocation6 + $0x7a4] sm:$0xf] %v1013_v44  ;;  %1016 = vst [vmem:[#allocation6 + $0x7a8] sm:$0xf] %v1015_v45 }
 0x10c   :  { %1018 = vst [vmem:[#allocation6 + $0x7ac] sm:$0xf] %v1017_v46  ;;  %v1019_v47 = vld [vmem:[%s11775_s3 + $0x7a8] sm:$0xf]  ;;  %v1021_v48 = vld [vmem:[%s11775_s3 + $0x7b8] sm:$0xf] }
 0x10d   :  { %v1023_v49 = vld [vmem:[%s11775_s3 + $0x7ac] sm:$0xf]  ;;  %1020 = vst [vmem:[#allocation6 + $0x7b0] sm:$0xf] %v1019_v47  ;;  %1022 = vst [vmem:[#allocation6 + $0x7b4] sm:$0xf] %v1021_v48 }
 0x10e   :  { %1024 = vst [vmem:[#allocation6 + $0x7b8] sm:$0xf] %v1023_v49  ;;  %v1029_v51 = vld [vmem:[%s11775_s3 + $0x7d0] sm:$0xf]  ;;  %v1031_v52 = vld [vmem:[%s11775_s3 + $0x7c4] sm:$0xf] }
 0x10f   :  { %1026 = vst [vmem:[#allocation6 + $0x7bc] sm:$0xff] %v1025_v50   ;;  %1030 = vst [vmem:[#allocation6 + $0x7c4] sm:$0xf] %v1029_v51  ;;  %v1033_v53 = vld [vmem:[%s11775_s3 + $0x7d4] sm:$0xf]  ;;  %v1041_v57 = vld [vmem:[%s11775_s3 + $0x7dc] sm:$0xff]  }
 0x110   :  { %1032 = vst [vmem:[#allocation6 + $0x7c8] sm:$0xf] %v1031_v52  ;;  %v1035_v54 = vld [vmem:[%s11775_s3 + $0x7c8] sm:$0xf]  ;;  %v1037_v55 = vld [vmem:[%s11775_s3 + $0x7d8] sm:$0xf] }
 0x111   :  { %1034 = vst [vmem:[#allocation6 + $0x7cc] sm:$0xf] %v1033_v53  ;;  %1036 = vst [vmem:[#allocation6 + $0x7d0] sm:$0xf] %v1035_v54  ;;  %v1039_v56 = vld [vmem:[%s11775_s3 + $0x7cc] sm:$0xf] }
 0x112   :  { %1038 = vst [vmem:[#allocation6 + $0x7d4] sm:$0xf] %v1037_v55  ;;  %v1045_v58 = vld [vmem:[%s11775_s3 + $0x7f0] sm:$0xf]  ;;  %1040 = vst [vmem:[#allocation6 + $0x7d8] sm:$0xf] %v1039_v56 }
 0x113   :  { %1042 = vst [vmem:[#allocation6 + $0x7dc] sm:$0xff] %v1041_v57   ;;  %1046 = vst [vmem:[#allocation6 + $0x7e4] sm:$0xf] %v1045_v58  ;;  %v1047_v59 = vld [vmem:[%s11775_s3 + $0x7e4] sm:$0xf] }
 0x114   :  { %v1049_v60 = vld [vmem:[%s11775_s3 + $0x7f4] sm:$0xf]  ;;  %v1051_v61 = vld [vmem:[%s11775_s3 + $0x7e8] sm:$0xf]  ;;  %1048 = vst [vmem:[#allocation6 + $0x7e8] sm:$0xf] %v1047_v59 }
 0x115   :  { %1050 = vst [vmem:[#allocation6 + $0x7ec] sm:$0xf] %v1049_v60  ;;  %1052 = vst [vmem:[#allocation6 + $0x7f0] sm:$0xf] %v1051_v61  ;;  %v1053_v62 = vld [vmem:[%s11775_s3 + $0x7f8] sm:$0xf] }
 0x116   :  { %v1055_v63 = vld [vmem:[%s11775_s3 + $0x7ec] sm:$0xf]  ;;  %v1057_v0 = vld [vmem:[%s11775_s3 + $0x7fc] sm:$0xf]  ;;  %1054 = vst [vmem:[#allocation6 + $0x7f4] sm:$0xf] %v1053_v62 }
 0x117   :  { %1056 = vst [vmem:[#allocation6 + $0x7f8] sm:$0xf] %v1055_v63  ;;  %1058 = vst [vmem:[#allocation6 + $0x7fc] sm:$0xf] %v1057_v0 }
 0x118   :  { %4194 = vsyncadd [#allocation8], 32768  ;;  %v10702_v1 = vld [vmem:[%s11776_s4] sm:$0xff]  ;;  %v10707_v2 = vld [vmem:[%s11776_s4 + $0x8] sm:$0xff] }
 0x119   :  { %v10712_v3 = vld [vmem:[%s11776_s4 + $0x10] sm:$0xff]  ;;  %v10717_v4 = vld [vmem:[%s11776_s4 + $0x18] sm:$0xff]  ;;  %v10722_v5 = vld [vmem:[%s11776_s4 + $0x20] sm:$0xff] }
 0x11a   :  { %v10727_v6 = vld [vmem:[%s11776_s4 + $0x28] sm:$0xff]  ;;  %v10732_v7 = vld [vmem:[%s11776_s4 + $0x30] sm:$0xff]  ;;  %v10737_v8 = vld [vmem:[%s11776_s4 + $0x38] sm:$0xff] }
 0x11b   :  { %11778 = vst [vmem:[#allocation16_spill] sm:$0xff] %v10737_v8  ;;  %v10742_v9 = vld [vmem:[%s11776_s4 + $0x40] sm:$0xff]  ;;  %v10747_v10 = vld [vmem:[%s11776_s4 + $0x48] sm:$0xff]  ;;  %v10752_v11 = vld [vmem:[%s11776_s4 + $0x50] sm:$0xff] }
 0x11c   :  { %v10757_v12 = vld [vmem:[%s11776_s4 + $0x58] sm:$0xff]  ;;  %v10762_v13 = vld [vmem:[%s11776_s4 + $0x60] sm:$0xff]  ;;  %v10767_v14 = vld [vmem:[%s11776_s4 + $0x68] sm:$0xff] }
 0x11d   :  { %v10772_v15 = vld [vmem:[%s11776_s4 + $0x70] sm:$0xff]  ;;  %v10777_v16 = vld [vmem:[%s11776_s4 + $0x78] sm:$0xff]  ;;  %v10782_v17 = vld [vmem:[%s11776_s4 + $0x80] sm:$0xff] }
 0x11e   :  { %11779 = vst [vmem:[#allocation17_spill] sm:$0xff] %v10782_v17  ;;  %v10787_v18 = vld [vmem:[%s11776_s4 + $0x88] sm:$0xff]  ;;  %v10792_v19 = vld [vmem:[%s11776_s4 + $0x90] sm:$0xff]  ;;  %v10797_v20 = vld [vmem:[%s11776_s4 + $0x98] sm:$0xff] }
 0x11f   :  { %11780 = vst [vmem:[#allocation18_spill] sm:$0xff] %v10787_v18  ;;  %11781 = vst [vmem:[#allocation19_spill] sm:$0xff] %v10792_v19  ;;  %v10802_v21 = vld [vmem:[%s11776_s4 + $0xa0] sm:$0xff]  ;;  %v10807_v22 = vld [vmem:[%s11776_s4 + $0xa8] sm:$0xff] }
 0x120   :  { %11782 = vst [vmem:[#allocation20_spill] sm:$0xff] %v10797_v20  ;;  %11783 = vst [vmem:[#allocation21_spill] sm:$0xff] %v10802_v21  ;;  %v10812_v23 = vld [vmem:[%s11776_s4 + $0xb0] sm:$0xff]  ;;  %v10817_v24 = vld [vmem:[%s11776_s4 + $0xb8] sm:$0xff] }
 0x121   :  { %11784 = vst [vmem:[#allocation22_spill] sm:$0xff] %v10807_v22  ;;  %11785 = vst [vmem:[#allocation23_spill] sm:$0xff] %v10812_v23  ;;  %v10822_v25 = vld [vmem:[%s11776_s4 + $0xc0] sm:$0xff]  ;;  %v10827_v26 = vld [vmem:[%s11776_s4 + $0xc8] sm:$0xff] }
 0x122   :  { %11786 = vst [vmem:[#allocation24_spill] sm:$0xff] %v10817_v24  ;;  %11787 = vst [vmem:[#allocation25_spill] sm:$0xff] %v10822_v25  ;;  %v10832_v27 = vld [vmem:[%s11776_s4 + $0xd0] sm:$0xff]  ;;  %v10837_v28 = vld [vmem:[%s11776_s4 + $0xd8] sm:$0xff] }
 0x123   :  { %11788 = vst [vmem:[#allocation26_spill] sm:$0xff] %v10827_v26  ;;  %11789 = vst [vmem:[#allocation27_spill] sm:$0xff] %v10832_v27  ;;  %v10842_v29 = vld [vmem:[%s11776_s4 + $0xe0] sm:$0xff]  ;;  %v10847_v30 = vld [vmem:[%s11776_s4 + $0xe8] sm:$0xff] }
 0x124   :  { %11790 = vst [vmem:[#allocation28_spill] sm:$0xff] %v10837_v28  ;;  %11791 = vst [vmem:[#allocation29_spill] sm:$0xff] %v10842_v29  ;;  %v10852_v31 = vld [vmem:[%s11776_s4 + $0xf0] sm:$0xff]  ;;  %v10857_v32 = vld [vmem:[%s11776_s4 + $0xf8] sm:$0xff] }
 0x125   :  { %11792 = vst [vmem:[#allocation30_spill] sm:$0xff] %v10847_v30  ;;  %11793 = vst [vmem:[#allocation31_spill] sm:$0xff] %v10852_v31 }
 0x126   :  { %11794 = vst [vmem:[#allocation32_spill] sm:$0xff] %v10857_v32 }
 0x127   :  { %4299 = vsyncadd [#allocation8 + $0x1], 4096  ;;  %v10862_v33 = vld [vmem:[%s11774_s2 + $0x3] ss:$8 sm:$0xf]  ;;  %vm9318_vm0 = vmmov 0  }
 0x128   :  { %v9167_v34 = vld [vmem:[%s11773_s1 + $0x40] sm:$0xff]   ;;  %v9169_v37 = vld [vmem:[%s11773_s1 + $0x48] sm:$0xff]   ;;  %v9171_v39 = vld [vmem:[%s11773_s1 + $0x50] sm:$0xff]   ;;  %vm4747_vm1 = vcmask 261120   ;;  %vm4772_vm2 = vcmask 257024   ;;  %vm6326_vm3 = vcmask 523264  }
 0x129   :  { %v10870_v35 = vld [vmem:[%s11774_s2 + $0x4] ss:$0 sm:$0xff]  ;;  %8450 = vmatprep.subr.bf16.mxu0 %v9167_v34  ;;  %9086 = vmatprep.subr.bf16.mxu1 %v9167_v34  ;;  %v9170_v38 = vld [vmem:[%s11773_s1 + $0x8] sm:$0xff]   ;;  %v9172_v40 = vld [vmem:[%s11773_s1 + $0x10] sm:$0xff]   ;;  %vm6332_vm4 = vcmask 516096  }
 0x12a   :  { %11795 = vst [vmem:[#allocation33_spill] sm:$0xff] %v10870_v35  ;;  %v9168_v36 = vld [vmem:[%s11773_s1] sm:$0xff]   ;;  %v9173_v41 = vld [vmem:[%s11773_s1 + $0x58] sm:$0xff]   ;;  %v9177_v45 = vld [vmem:[%s11773_s1 + $0x68] sm:$0xff]  }
 0x12b   :  { %8451 = vmatpush3.bf16.msra.mxu0 %v9168_v36  ;;  %9094 = vmatpush3.bf16.msra.mxu1 %v9168_v36  ;;  %v9174_v42 = vld [vmem:[%s11773_s1 + $0x18] sm:$0xff]   ;;  %v9175_v43 = vld [vmem:[%s11773_s1 + $0x60] sm:$0xff]   ;;  %v9178_v47 = vld [vmem:[%s11773_s1 + $0x28] sm:$0xff]  }
 0x12c   :  { %8452 = vmatprep.subr.bf16.mxu0 %v9169_v37  ;;  %9087 = vmatprep.subr.bf16.mxu1 %v9169_v37  ;;  %v9176_v44 = vld [vmem:[%s11773_s1 + $0x20] sm:$0xff]   ;;  %v9179_v48 = vld [vmem:[%s11773_s1 + $0x70] sm:$0xff]   ;;  %v9181_v50 = vld [vmem:[%s11773_s1 + $0x78] sm:$0xff]  }
 0x12d   :  { %v9185_v46 = vld [vmem:[%s11772_s0 + $0x4] ss:$8 sps:$4 sm:$0xff]   ;;  %v9180_v49 = vld [vmem:[%s11773_s1 + $0x30] sm:$0xff]   ;;  %v9182_v51 = vld [vmem:[%s11773_s1 + $0x38] sm:$0xff]  }
 0x12e   :  { %4618 = vmatprep.mubr.bf16.mxu0 %v9185_v46  ;;  %v9183_v52 = vld [vmem:[%s11772_s0] ss:$8 sps:$4 sm:$0xff]   ;;  %v9215_v53 = vld [vmem:[%s11772_s0 + $0xa4] ss:$8 sps:$4 sm:$0xff]   ;;  %v9186_v54 = vld [vmem:[%s11772_s0 + $0x14] ss:$8 sps:$4 sm:$0xff]  }
 0x12f   :  { %8453 = vmatpush3.bf16.msra.mxu0 %v9170_v38  ;;  %9095 = vmatpush3.bf16.msra.mxu1 %v9170_v38  ;;  %v9213_v55 = vld [vmem:[%s11772_s0 + $0xa0] ss:$8 sps:$4 sm:$0xff]   ;;  %v9216_v56 = vld [vmem:[%s11772_s0 + $0xb4] ss:$8 sps:$4 sm:$0xff]   ;;  %v9188_v58 = vld [vmem:[%s11772_s0 + $0x10] ss:$8 sps:$4 sm:$0xff]  }
 0x130   :  { %8454 = vmatprep.subr.bf16.mxu0 %v9171_v39  ;;  %9088 = vmatprep.subr.bf16.mxu1 %v9171_v39  ;;  %v4330_v57 = vld [vmem:[%s11772_s0 + $0xc0] sm:$0x33]  ;;  %v9218_v60 = vld [vmem:[%s11772_s0 + $0xb0] ss:$8 sps:$4 sm:$0xff]   ;;  %v9192_v63 = vld [vmem:[%s11772_s0 + $0x34] ss:$8 sps:$4 sm:$0xff]  }
 0x131   :  { %4698 = vmatprep.mubr.bf16.mxu1 %v9215_v53  ;;  %v9189_v59 = vld [vmem:[%s11772_s0 + $0x24] ss:$8 sps:$4 sm:$0xff]   ;;  %v8289_v61 = vcombine.high %v4330_v57, %v4330_v57  ;;  %v9191_v62 = vld [vmem:[%s11772_s0 + $0x20] ss:$8 sps:$4 sm:$0xff]   ;;  %v8288_v0 = vcombine.low %v4330_v57, %v4330_v57  ;;  %v9194_v34 = vld [vmem:[%s11772_s0 + $0x30] ss:$8 sps:$4 sm:$0xff]  }
 0x132   :  { %v9195_v36 = vld [vmem:[%s11772_s0 + $0x44] ss:$8 sps:$4 sm:$0xff]   ;;  %v9197_v37 = vld [vmem:[%s11772_s0 + $0x40] ss:$8 sps:$4 sm:$0xff]   ;;  %v9198_v38 = vld [vmem:[%s11772_s0 + $0x54] ss:$8 sps:$4 sm:$0xff]  }
 0x133   :  { %8455 = vmatpush3.bf16.msra.mxu0 %v9172_v40  ;;  %9096 = vmatpush3.bf16.msra.mxu1 %v9172_v40  ;;  %v9200_v39 = vld [vmem:[%s11772_s0 + $0x50] ss:$8 sps:$4 sm:$0xff]   ;;  %v9201_v40 = vld [vmem:[%s11772_s0 + $0x64] ss:$8 sps:$4 sm:$0xff]   ;;  %v9210_v46 = vld [vmem:[%s11772_s0 + $0x94] ss:$8 sps:$4 sm:$0xff]  }
 0x134   :  { %8456 = vmatprep.subr.bf16.mxu0 %v9173_v41  ;;  %9089 = vmatprep.subr.bf16.mxu1 %v9173_v41  ;;  %v9203_v41 = vld [vmem:[%s11772_s0 + $0x60] ss:$8 sps:$4 sm:$0xff]  }
 0x137   :  { %8457 = vmatpush3.bf16.msra.mxu0 %v9174_v42  ;;  %9097 = vmatpush3.bf16.msra.mxu1 %v9174_v42  ;;  %v9204_v42 = vld [vmem:[%s11772_s0 + $0x74] ss:$8 sps:$4 sm:$0xff]  }
 0x138   :  { %8458 = vmatprep.subr.bf16.mxu0 %v9175_v43  ;;  %9090 = vmatprep.subr.bf16.mxu1 %v9175_v43  ;;  %v9206_v43 = vld [vmem:[%s11772_s0 + $0x70] ss:$8 sps:$4 sm:$0xff]  }
 0x13b   :  { %8459 = vmatpush3.bf16.msra.mxu0 %v9176_v44  ;;  %9098 = vmatpush3.bf16.msra.mxu1 %v9176_v44  ;;  %v9207_v44 = vld [vmem:[%s11772_s0 + $0x84] ss:$8 sps:$4 sm:$0xff]  }
 0x13c   :  { %8460 = vmatprep.subr.bf16.mxu0 %v9177_v45  ;;  %9091 = vmatprep.subr.bf16.mxu1 %v9177_v45  ;;  %v9209_v45 = vld [vmem:[%s11772_s0 + $0x80] ss:$8 sps:$4 sm:$0xff]  }
 0x13f   :  { %8461 = vmatpush3.bf16.msra.mxu0 %v9178_v47  ;;  %9099 = vmatpush3.bf16.msra.mxu1 %v9178_v47  ;;  %v9212_v47 = vld [vmem:[%s11772_s0 + $0x90] ss:$8 sps:$4 sm:$0xff]  }
 0x140   :  { %8462 = vmatprep.subr.bf16.mxu0 %v9179_v48  ;;  %9092 = vmatprep.subr.bf16.mxu1 %v9179_v48  ;;  %v9221_v48 = vld [vmem:[%s11773_s1 + $0x90] sm:$0xff]  }
 0x143   :  { %8463 = vmatpush3.bf16.msra.mxu0 %v9180_v49  ;;  %9100 = vmatpush3.bf16.msra.mxu1 %v9180_v49  ;;  %v9317_v49 = vmov 0.0  }
 0x144   :  { %8464 = vmatprep.subr.bf16.mxu0 %v9181_v50  ;;  %9093 = vmatprep.subr.bf16.mxu1 %v9181_v50  ;;  %v9222_v50 = vld [vmem:[%s11773_s1 + $0x98] sm:$0xff]  }
 0x147   :  { %8465 = vmatpush3.bf16.msra.mxu0 %v9182_v51  ;;  %9101 = vmatpush3.bf16.msra.mxu1 %v9182_v51  ;;  %v9225_v51 = vld [vmem:[%s11773_s1 + $0xe0] sm:$0xff]  }
 0x148   :  { %8722 = vmatprep.subr.bf16.mxu1 %v9317_v49  ;;  %8818 = vmatprep.subr.bf16.mxu0 %v9317_v49 }
 0x14a   :  { %4619 = vmatmul.mubr.bf16.vlgmr.msra.gmra.mrb[0].mxu0 %v9183_v52  ;;  %4699 = vmatmul.mubr.bf16.vlgmr.msra.gmra.mrb[0].mxu1 %v9213_v55  ;;  %v9226_v52 = vld [vmem:[%s11773_s1 + $0xe8] sm:$0xff]  }
 0x14b   :  { %4626 = vmatprep.mubr.bf16.mxu0 %v9186_v54  ;;  %4706 = vmatprep.mubr.bf16.mxu1 %v9216_v56  ;;  %v11017_v54 = vld [vmem:[%s11774_s2] ss:$0 sm:$0xff] }
 0x14c   :  { %8723 = vmatpush3.bf16.msra.mxu1 %v9221_v48  ;;  %8819 = vmatpush3.bf16.msra.mxu0 %v9225_v51 }
 0x14d   :  { %8724 = vmatprep.subr.bf16.mxu1 %v9317_v49  ;;  %8820 = vmatprep.subr.bf16.mxu0 %v9317_v49 }
 0x150   :  { %8725 = vmatpush3.bf16.msra.mxu1 %v9222_v50  ;;  %8821 = vmatpush3.bf16.msra.mxu0 %v9226_v52 }
 0x151   :  { %8738 = vmatprep.subr.bf16.mxu1 %v9317_v49  ;;  %8850 = vmatprep.subr.bf16.mxu0 %v9317_v49 }
 0x152   :  { %4627 = vmatmul.mubr.bf16.gmra.mrb[4].mxu0 %v9188_v58  ;;  %4707 = vmatmul.mubr.bf16.gmra.mrb[4].mxu1 %v9218_v60 }
 0x153   :  { %4634 = vmatprep.mubr.bf16.mxu0 %v9189_v59  ;;  %4714 = vmatprep.mubr.bf16.mxu1 %v8289_v61 }
 0x15a   :  { %4635 = vmatmul.mubr.bf16.gmra.mrb[8].mxu0 %v9191_v62  ;;  %4715 = vmatmul.mubr.bf16.gmra.mrb[8].mxu1 %v8288_v0 }
 0x15b   :  { %4642 = vmatprep.mubr.bf16.mxu0 %v9192_v63  ;;  %8726 = vmatprep.mubr.msk.bf16.mxu1 %vm9318_vm0, %v9317_v49 }
 0x162   :  { %4643 = vmatmul.mubr.bf16.gmra.mrb[12].mxu0 %v9194_v34 }
 0x163   :  { %4650 = vmatprep.mubr.bf16.mxu0 %v9195_v36 }
 0x16a   :  { %4651 = vmatmul.mubr.bf16.gmra.mrb[16].mxu0 %v9197_v37 }
 0x16b   :  { %4658 = vmatprep.mubr.bf16.mxu0 %v9198_v38 }
 0x172   :  { %4659 = vmatmul.mubr.bf16.gmra.mrb[20].mxu0 %v9200_v39 }
 0x173   :  { %4666 = vmatprep.mubr.bf16.mxu0 %v9201_v40 }
 0x17a   :  { %4667 = vmatmul.mubr.bf16.gmra.mrb[24].mxu0 %v9203_v41 }
 0x17b   :  { %4674 = vmatprep.mubr.bf16.mxu0 %v9204_v42 }
 0x182   :  { %4675 = vmatmul.mubr.bf16.gmra.mrb[28].mxu0 %v9206_v43 }
 0x183   :  { %4682 = vmatprep.mubr.bf16.mxu0 %v9207_v44 }
 0x18a   :  { %4683 = vmatmul.mubr.bf16.gmra.mrb[32].mxu0 %v9209_v45 }
 0x18b   :  { %4690 = vmatprep.mubr.bf16.mxu0 %v9210_v46 }
 0x192   :  { %4691 = vmatmul.mubr.bf16.gmra.mrb[36].mxu0 %v9212_v47 }
 0x193   :  { %8822 = vmatprep.mubr.msk.bf16.mxu0 %vm9318_vm0, %v9317_v49 }
 0x21d   :  { %v8466_v53 = vpop.f32.mrb[0].mxu0  ;;  %v8526_v38 = vpop.f32.mrb[0].mxu1 }
 0x21e   :  { %v8467_v55 = vpop.f32.mrb[1].mxu0  ;;  %v8527_v40 = vpop.f32.mrb[1].mxu1 }
 0x21f   :  { %v8468_v56 = vadd.f32 %v8467_v55, %v8466_v53  ;;  %v8469_v57 = vpop.f32.mrb[2].mxu0  ;;  %v8528_v43 = vadd.f32 %v8527_v40, %v8526_v38 }
 0x220   :  { %v8470_v58 = vpop.f32.mrb[3].mxu0 }
 0x221   :  { %v4621_v59 = vadd.f32 %v8468_v56, %v11017_v54  ;;  %v8471_v60 = vadd.f32 %v8470_v58, %v8469_v57  ;;  %v4701_v46 = vadd.f32 %v8528_v43, %v11017_v54  ;;  %v8529_v56 = vpop.f32.mrb[2].mxu1 }
 0x223   :  { %v4722_v61 = vmax.f32 %v4621_v59, 0.0  ;;  %v4624_v62 = vadd.f32 %v8471_v60, %v11017_v54  ;;  %v4742_v50 = vmax.f32 %v4701_v46, 0.0  ;;  %v8530_v59 = vpop.f32.mrb[3].mxu1 }
 0x224   :  { %v8531_v60 = vadd.f32 %v8530_v59, %v8529_v56 }
 0x225   :  { %4748 = vst.msk [vmem:[#allocation2] sm:$0xff] %vm4747_vm1, %v4722_v61  ;;  %v4723_v63 = vmax.f32 %v4624_v62, 0.0  ;;  %v8472_v0 = vpop.f32.mrb[4].mxu0  ;;  %4768 = vst.msk [vmem:[#allocation2 + $0xa0] sm:$0xff] %vm4747_vm1, %v4742_v50  ;;  %v8532_v61 = vpop.f32.mrb[4].mxu1 }
 0x226   :  { %v8473_v34 = vpop.f32.mrb[5].mxu0 }
 0x227   :  { %4749 = vst.msk [vmem:[#allocation2 + $0x8] sm:$0xff] %vm4747_vm1, %v4723_v63  ;;  %v8474_v36 = vadd.f32 %v8473_v34, %v8472_v0  ;;  %v8475_v37 = vpop.f32.mrb[6].mxu0  ;;  %v8533_v0 = vpop.f32.mrb[5].mxu1  ;;  %v4704_v34 = vadd.f32 %v8531_v60, %v11017_v54 }
 0x228   :  { %v8476_v39 = vpop.f32.mrb[7].mxu0 }
 0x229   :  { %v4629_v41 = vadd.f32 %v8474_v36, %v11017_v54  ;;  %v8477_v42 = vadd.f32 %v8476_v39, %v8475_v37  ;;  %v8534_v36 = vadd.f32 %v8533_v0, %v8532_v61  ;;  %v8535_v37 = vpop.f32.mrb[6].mxu1 }
 0x22a   :  { %v8536_v40 = vpop.f32.mrb[7].mxu1 }
 0x22b   :  { %v4724_v44 = vmax.f32 %v4629_v41, 0.0  ;;  %v4632_v45 = vadd.f32 %v8477_v42, %v11017_v54  ;;  %v4743_v42 = vmax.f32 %v4704_v34, 0.0  ;;  %v4709_v43 = vadd.f32 %v8534_v36, %v11017_v54 }
 0x22d   :  { %4750 = vst.msk [vmem:[#allocation2 + $0x10] sm:$0xff] %vm4747_vm1, %v4724_v44  ;;  %v4725_v47 = vmax.f32 %v4632_v45, 0.0  ;;  %v8478_v48 = vpop.f32.mrb[8].mxu0  ;;  %v8537_v44 = vadd.f32 %v8536_v40, %v8535_v37  ;;  %4769 = vst.msk [vmem:[#allocation2 + $0xa8] sm:$0xff] %vm4747_vm1, %v4743_v42  ;;  %v4744_v50 = vmax.f32 %v4709_v43, 0.0 }
 0x22e   :  { %v8479_v51 = vpop.f32.mrb[9].mxu0 }
 0x22f   :  { %4751 = vst.msk [vmem:[#allocation2 + $0x18] sm:$0xff] %vm4747_vm1, %v4725_v47  ;;  %v8480_v52 = vadd.f32 %v8479_v51, %v8478_v48  ;;  %v8481_v53 = vpop.f32.mrb[10].mxu0  ;;  %v8538_v47 = vpop.f32.mrb[8].mxu1  ;;  %v4712_v51 = vadd.f32 %v8537_v44, %v11017_v54  ;;  %4770 = vst.msk [vmem:[#allocation2 + $0xb0] sm:$0xff] %vm4747_vm1, %v4744_v50 }
 0x230   :  { %v8482_v55 = vpop.f32.mrb[11].mxu0 }
 0x231   :  { %v4637_v57 = vadd.f32 %v8480_v52, %v11017_v54  ;;  %v8483_v58 = vadd.f32 %v8482_v55, %v8481_v53  ;;  %v8539_v52 = vpop.f32.mrb[9].mxu1 }
 0x232   :  { %v8540_v56 = vadd.f32 %v8539_v52, %v8538_v47 }
 0x233   :  { %v4726_v62 = vmax.f32 %v4637_v57, 0.0  ;;  %v4640_v63 = vadd.f32 %v8483_v58, %v11017_v54  ;;  %v8541_v57 = vpop.f32.mrb[10].mxu1  ;;  %v4745_v58 = vmax.f32 %v4712_v51, 0.0 }
 0x234   :  { %v8542_v59 = vpop.f32.mrb[11].mxu1 }
 0x235   :  { %4752 = vst.msk [vmem:[#allocation2 + $0x20] sm:$0xff] %vm4747_vm1, %v4726_v62  ;;  %v4727_v38 = vmax.f32 %v4640_v63, 0.0  ;;  %v8484_v39 = vpop.f32.mrb[12].mxu0  ;;  %v4717_v62 = vadd.f32 %v8540_v56, %v11017_v54  ;;  %4771 = vst.msk [vmem:[#allocation2 + $0xb8] sm:$0xff] %vm4747_vm1, %v4745_v58 }
 0x236   :  { %v8485_v41 = vpop.f32.mrb[13].mxu0  ;;  %v11046_v44 = vld [vmem:[#allocation2 + $0xab] sm:$0xff] }
 0x237   :  { %4753 = vst.msk [vmem:[#allocation2 + $0x28] sm:$0xff] %vm4747_vm1, %v4727_v38  ;;  %v8486_v45 = vadd.f32 %v8485_v41, %v8484_v39  ;;  %v8487_v46 = vpop.f32.mrb[14].mxu0  ;;  %v4746_v38 = vmax.f32 %v4717_v62, 0.0 }
 0x238   :  { %v8488_v48 = vpop.f32.mrb[15].mxu0 }
 0x239   :  { %v4645_v53 = vadd.f32 %v8486_v45, %v11017_v54  ;;  %v8489_v55 = vadd.f32 %v8488_v48, %v8487_v46  ;;  %4773 = vst.msk [vmem:[#allocation2 + $0xc0] sm:$0xf] %vm4772_vm2, %v4746_v38 }
 0x23b   :  { %v4728_v60 = vmax.f32 %v4645_v53, 0.0  ;;  %v4648_v61 = vadd.f32 %v8489_v55, %v11017_v54 }
 0x23c   :  { %v11048_v45 = vld [vmem:[#allocation2 + $0xb3] sm:$0xff] }
 0x23d   :  { %4754 = vst.msk [vmem:[#allocation2 + $0x30] sm:$0xff] %vm4747_vm1, %v4728_v60  ;;  %v4729_v63 = vmax.f32 %v4648_v61, 0.0  ;;  %v8490_v0 = vpop.f32.mrb[16].mxu0  ;;  %v6224_v48 = vpack.c.bf16 %v11048_v45, %v11046_v44  ;;  %v9223_v61 = vld [vmem:[%s11773_s1 + $0x80] sm:$0xff]  }
 0x23e   :  { %v8491_v34 = vpop.f32.mrb[17].mxu0 }
 0x23f   :  { %4755 = vst.msk [vmem:[#allocation2 + $0x38] sm:$0xff] %vm4747_vm1, %v4729_v63  ;;  %v8492_v36 = vadd.f32 %v8491_v34, %v8490_v0  ;;  %v8493_v37 = vpop.f32.mrb[18].mxu0 }
 0x240   :  { %v8494_v39 = vpop.f32.mrb[19].mxu0 }
 0x241   :  { %v4653_v40 = vadd.f32 %v8492_v36, %v11017_v54  ;;  %v8495_v41 = vadd.f32 %v8494_v39, %v8493_v37 }
 0x243   :  { %v4730_v42 = vmax.f32 %v4653_v40, 0.0  ;;  %v4656_v43 = vadd.f32 %v8495_v41, %v11017_v54  ;;  %v9224_v41 = vld [vmem:[%s11773_s1 + $0x88] sm:$0xff]  }
 0x245   :  { %4756 = vst.msk [vmem:[#allocation2 + $0x40] sm:$0xff] %vm4747_vm1, %v4730_v42  ;;  %v4731_v46 = vmax.f32 %v4656_v43, 0.0  ;;  %v8496_v47 = vpop.f32.mrb[20].mxu0 }
 0x246   :  { %v8497_v50 = vpop.f32.mrb[21].mxu0  ;;  %v4787_v59 = vld [vmem:[#allocation2 + $0x31] sm:$0xff] }
 0x247   :  { %4757 = vst.msk [vmem:[#allocation2 + $0x48] sm:$0xff] %vm4747_vm1, %v4731_v46  ;;  %v8498_v51 = vadd.f32 %v8497_v50, %v8496_v47  ;;  %v8499_v52 = vpop.f32.mrb[22].mxu0 }
 0x248   :  { %v8500_v53 = vpop.f32.mrb[23].mxu0 }
 0x249   :  { %v4661_v55 = vadd.f32 %v8498_v51, %v11017_v54  ;;  %v8501_v56 = vadd.f32 %v8500_v53, %v8499_v52 }
 0x24b   :  { %v4732_v57 = vmax.f32 %v4661_v55, 0.0  ;;  %v4664_v58 = vadd.f32 %v8501_v56, %v11017_v54 }
 0x24c   :  { %v11056_v60 = vld [vmem:[#allocation2 + $0x39] sm:$0xff] }
 0x24d   :  { %4758 = vst.msk [vmem:[#allocation2 + $0x50] sm:$0xff] %vm4747_vm1, %v4732_v57  ;;  %v4733_v62 = vmax.f32 %v4664_v58, 0.0  ;;  %v8502_v63 = vpop.f32.mrb[24].mxu0  ;;  %v4793_v0 = vpack.c.bf16 %v11056_v60, %v4787_v59 }
 0x24e   :  { %v8503_v34 = vpop.f32.mrb[25].mxu0  ;;  %v11063_v36 = vld [vmem:[#allocation2 + $0x41] sm:$0xff] }
 0x24f   :  { %4759 = vst.msk [vmem:[#allocation2 + $0x58] sm:$0xff] %vm4747_vm1, %v4733_v62  ;;  %v8504_v37 = vadd.f32 %v8503_v34, %v8502_v63  ;;  %8727 = vmatmul.mubr.msk.bf16.vlgmr.msra.gmra.mrb[12].mxu1 %vm4747_vm1, %v4793_v0  ;;  %v8505_v38 = vpop.f32.mrb[26].mxu0  ;;  %v5835_v39 = vpack.c.bf16 %v11063_v36, %v11056_v60 }
 0x250   :  { %8739 = vmatpush3.bf16.msra.mxu1 %v9223_v61  ;;  %v8506_v40 = vpop.f32.mrb[27].mxu0  ;;  %8730 = vmatprep.mubr.msk.bf16.mxu1 %vm9318_vm0, %v9317_v49 }
 0x251   :  { %v4669_v42 = vadd.f32 %v8504_v37, %v11017_v54  ;;  %v8507_v43 = vadd.f32 %v8506_v40, %v8505_v38  ;;  %8740 = vmatprep.subr.bf16.mxu1 %v9317_v49 }
 0x253   :  { %v4734_v46 = vmax.f32 %v4669_v42, 0.0  ;;  %v4672_v47 = vadd.f32 %v8507_v43, %v11017_v54 }
 0x254   :  { %v11077_v50 = vld [vmem:[#allocation2 + $0x49] sm:$0xff]  ;;  %8741 = vmatpush3.bf16.msra.mxu1 %v9224_v41 }
 0x255   :  { %4760 = vst.msk [vmem:[#allocation2 + $0x60] sm:$0xff] %vm4747_vm1, %v4734_v46  ;;  %v4735_v51 = vmax.f32 %v4672_v47, 0.0  ;;  %v8508_v52 = vpop.f32.mrb[28].mxu0  ;;  %v4794_v53 = vpack.c.bf16 %v11077_v50, %v11063_v36  ;;  %8754 = vmatprep.subr.bf16.mxu1 %v9317_v49 }
 0x256   :  { %v8509_v55 = vpop.f32.mrb[29].mxu0  ;;  %v11083_v56 = vld [vmem:[#allocation2 + $0x51] sm:$0xff]  ;;  %v4792_v0 = vld [vmem:[#allocation2 + $0x59] sm:$0x1] }
 0x257   :  { %4761 = vst.msk [vmem:[#allocation2 + $0x68] sm:$0xff] %vm4747_vm1, %v4735_v51  ;;  %v8510_v57 = vadd.f32 %v8509_v55, %v8508_v52  ;;  %8731 = vmatmul.mubr.msk.bf16.gmra.mrb[16].mxu1 %vm4747_vm1, %v4794_v53  ;;  %v8511_v58 = vpop.f32.mrb[30].mxu0  ;;  %v5836_v59 = vpack.c.bf16 %v11083_v56, %v11077_v50  ;;  %v4795_v41 = vpack.c.bf16 %v4792_v0, %v11083_v56  ;;  %v11100_v53 = vld [vmem:[#allocation2 + $0x8] sm:$0xff]  ;;  %v9251_v50 = vld [vmem:[%s11773_s1 + $0x170] sm:$0xff]  }
 0x258   :  { %v8512_v61 = vpop.f32.mrb[31].mxu0  ;;  %8734 = vmatprep.mubr.msk.bf16.mxu1 %vm9318_vm0, %v9317_v49 }
 0x259   :  { %v4677_v62 = vadd.f32 %v8510_v57, %v11017_v54  ;;  %v8513_v63 = vadd.f32 %v8512_v61, %v8511_v58  ;;  %v4774_v61 = vld [vmem:[#allocation2] sm:$0xff] }
 0x25b   :  { %v4736_v34 = vmax.f32 %v4677_v62, 0.0  ;;  %v4680_v37 = vadd.f32 %v8513_v63, %v11017_v54  ;;  %v9227_v62 = vld [vmem:[%s11773_s1 + $0xa0] sm:$0xff]  }
 0x25c   :  { %v5833_v60 = vld [vmem:[#allocation2 + $0x59] sm:$0xff]  ;;  %v5834_v36 = vld [vmem:[#allocation2 + $0x61] sm:$0x1] }
 0x25d   :  { %4762 = vst.msk [vmem:[#allocation2 + $0x70] sm:$0xff] %vm4747_vm1, %v4736_v34  ;;  %v4737_v38 = vmax.f32 %v4680_v37, 0.0  ;;  %v8514_v40 = vpop.f32.mrb[32].mxu0  ;;  %v4780_v34 = vpack.c.bf16 %v11100_v53, %v4774_v61 }
 0x25e   :  { %v8515_v42 = vpop.f32.mrb[33].mxu0  ;;  %v5344_v55 = vld [vmem:[#allocation2 + $0x63] sm:$0xff] }
 0x25f   :  { %4763 = vst.msk [vmem:[#allocation2 + $0x78] sm:$0xff] %vm4747_vm1, %v4737_v38  ;;  %v8516_v43 = vadd.f32 %v8515_v42, %v8514_v40  ;;  %8735 = vmatmul.mubr.msk.bf16.gmra.mrb[20].mxu1 %vm4747_vm1, %v4795_v41  ;;  %v8517_v46 = vpop.f32.mrb[34].mxu0  ;;  %v9229_v40 = vld [vmem:[%s11773_s1 + $0x100] sm:$0xff]  }
 0x260   :  { %v8518_v47 = vpop.f32.mrb[35].mxu0  ;;  %8742 = vmatprep.mubr.msk.bf16.mxu1 %vm9318_vm0, %v9317_v49 }
 0x261   :  { %v4685_v51 = vadd.f32 %v8516_v43, %v11017_v54  ;;  %v8519_v52 = vadd.f32 %v8518_v47, %v8517_v46  ;;  %v9228_v46 = vld [vmem:[%s11773_s1 + $0xa8] sm:$0xff]  }
 0x263   :  { %v4738_v57 = vmax.f32 %v4685_v51, 0.0  ;;  %v4688_v58 = vadd.f32 %v8519_v52, %v11017_v54 }
 0x264   :  { %v5345_v63 = vld [vmem:[#allocation2 + $0x6b] sm:$0xff] }
 0x265   :  { %4764 = vst.msk [vmem:[#allocation2 + $0x80] sm:$0xff] %vm4747_vm1, %v4738_v57  ;;  %v4739_v0 = vmax.f32 %v4688_v58, 0.0  ;;  %v5350_v37 = vpack.c.bf16 %v5345_v63, %v5344_v55  ;;  %v8520_v38 = vpop.f32.mrb[36].mxu0  ;;  %v11123_v55 = vld [vmem:[#allocation2 + $0x18] sm:$0xff]  ;;  %v9230_v58 = vld [vmem:[%s11773_s1 + $0x108] sm:$0xff]   ;;  %v11130_v63 = vld [vmem:[#allocation2 + $0x10] sm:$0xff] }
 0x266   :  { %v8521_v41 = vpop.f32.mrb[37].mxu0  ;;  %v5346_v57 = vld [vmem:[#allocation2 + $0x73] sm:$0xff] }
 0x267   :  { %4765 = vst.msk [vmem:[#allocation2 + $0x88] sm:$0xff] %vm4747_vm1, %v4739_v0  ;;  %8743 = vmatmul.mubr.msk.bf16.vlgmr.msra.gmra.mrb[24].mxu1 %vm4747_vm1, %v4780_v34  ;;  %8823 = vmatmul.mubr.msk.bf16.vlgmr.msra.gmra.mrb[40].mxu0 %vm4747_vm1, %v5350_v37  ;;  %v8522_v42 = vadd.f32 %v8521_v41, %v8520_v38  ;;  %v8523_v43 = vpop.f32.mrb[38].mxu0  ;;  %v4781_v34 = vpack.c.bf16 %v11123_v55, %v11130_v63  ;;  %v4779_v41 = vld [vmem:[#allocation2 + $0x28] sm:$0x1] }
 0x268   :  { %8755 = vmatpush3.bf16.msra.mxu1 %v9227_v62  ;;  %8746 = vmatprep.mubr.msk.bf16.mxu1 %vm9318_vm0, %v9317_v49  ;;  %v8524_v47 = vpop.f32.mrb[39].mxu0 }
 0x269   :  { %8826 = vmatprep.mubr.msk.bf16.mxu0 %vm9318_vm0, %v9317_v49  ;;  %8756 = vmatprep.subr.bf16.mxu1 %v9317_v49  ;;  %v4693_v51 = vadd.f32 %v8522_v42, %v11017_v54  ;;  %v8525_v52 = vadd.f32 %v8524_v47, %v8523_v43  ;;  %v11144_v43 = vld [vmem:[#allocation2 + $0x20] sm:$0xff] }
 0x26a   :  { %8851 = vmatpush3.bf16.msra.mxu0 %v9229_v40  ;;  %v4782_v47 = vpack.c.bf16 %v4779_v41, %v11144_v43  ;;  %v5541_v41 = vld [vmem:[#allocation2 + $0x1f] sm:$0xff] }
 0x26b   :  { %8852 = vmatprep.subr.bf16.mxu0 %v9317_v49  ;;  %v4740_v61 = vmax.f32 %v4693_v51, 0.0  ;;  %v4696_v62 = vadd.f32 %v8525_v52, %v11017_v54 }
 0x26c   :  { %v5347_v0 = vld [vmem:[#allocation2 + $0x7b] sm:$0xff]  ;;  %8757 = vmatpush3.bf16.msra.mxu1 %v9228_v46  ;;  %v11146_v46 = vld [vmem:[#allocation2 + $0xa3] sm:$0xff] }
 0x26d   :  { %v5351_v37 = vpack.c.bf16 %v5347_v0, %v5346_v57  ;;  %8770 = vmatprep.subr.bf16.mxu1 %v9317_v49  ;;  %4766 = vst.msk [vmem:[#allocation2 + $0x90] sm:$0xff] %vm4747_vm1, %v4740_v61  ;;  %v4741_v38 = vmax.f32 %v4696_v62, 0.0  ;;  %v4957_v57 = vld [vmem:[#allocation2 + $0x9] sm:$0xff]  ;;  %v4956_v61 = vld [vmem:[#allocation2 + $0x1] sm:$0xff] }
 0x26e   :  { %8853 = vmatpush3.bf16.msra.mxu0 %v9230_v58  ;;  %v5348_v54 = vld [vmem:[#allocation2 + $0x83] sm:$0xff]  ;;  %v5349_v40 = vld [vmem:[#allocation2 + $0x8b] sm:$0x1]  ;;  %v5539_v58 = vld [vmem:[#allocation2 + $0xf] sm:$0xff] }
 0x26f   :  { %8747 = vmatmul.mubr.msk.bf16.gmra.mrb[28].mxu1 %vm4747_vm1, %v4781_v34  ;;  %8827 = vmatmul.mubr.msk.bf16.gmra.mrb[44].mxu0 %vm4747_vm1, %v5351_v37  ;;  %4767 = vst.msk [vmem:[#allocation2 + $0x98] sm:$0xff] %vm4747_vm1, %v4741_v38  ;;  %v5352_v42 = vpack.c.bf16 %v5349_v40, %v5348_v54  ;;  %v9231_v62 = vld [vmem:[%s11773_s1 + $0xb0] sm:$0xff]   ;;  %v5538_v0 = vld [vmem:[#allocation2 + $0x7] sm:$0xff]  ;;  %v4962_v34 = vpack.c.bf16 %v4957_v57, %v4956_v61  ;;  %v9232_v54 = vld [vmem:[%s11773_s1 + $0xb8] sm:$0xff]  }
 0x270   :  { %8750 = vmatprep.mubr.msk.bf16.mxu1 %vm9318_vm0, %v9317_v49  ;;  %8830 = vmatprep.mubr.msk.bf16.mxu0 %vm9318_vm0, %v9317_v49  ;;  %v5544_v37 = vpack.c.bf16 %v5539_v58, %v5538_v0  ;;  %v9233_v38 = vld [vmem:[%s11773_s1 + $0x120] sm:$0xff]   ;;  %v5540_v57 = vld [vmem:[#allocation2 + $0x17] sm:$0xff]  ;;  %v4961_v0 = vld [vmem:[#allocation2 + $0x29] sm:$0x1] }
 0x271   :  { %8882 = vmatprep.subr.bf16.mxu0 %v9317_v49  ;;  %v4959_v40 = vld [vmem:[#allocation2 + $0x19] sm:$0xff]  ;;  %v5545_v61 = vpack.c.bf16 %v5541_v41, %v5540_v57  ;;  %v5738_v57 = vpack.c.bf16 %v11130_v63, %v11100_v53  ;;  %v5056_v53 = vld [vmem:[#allocation2 + $0x4a] sm:$0xff] }
 0x272   :  { %v5053_v41 = vld [vmem:[#allocation2 + $0x32] sm:$0xff]  ;;  %v9238_v63 = vld [vmem:[%s11773_s1 + $0x148] sm:$0xff]  }
 0x276   :  { %v11149_v51 = vld [vmem:[#allocation2 + $0x9b] sm:$0xff] }
 0x277   :  { %8751 = vmatmul.mubr.msk.bf16.gmra.mrb[32].mxu1 %vm4747_vm1, %v4782_v47  ;;  %8831 = vmatmul.mubr.msk.bf16.gmra.mrb[48].mxu0 %vm4747_vm1, %v5352_v42  ;;  %v6223_v52 = vpack.c.bf16 %v11146_v46, %v11149_v51  ;;  %v9234_v42 = vld [vmem:[%s11773_s1 + $0x128] sm:$0xff]   ;;  %v4958_v47 = vld [vmem:[#allocation2 + $0x11] sm:$0xff] }
 0x278   :  { %8758 = vmatprep.mubr.msk.bf16.mxu1 %vm9318_vm0, %v9317_v49  ;;  %8854 = vmatprep.mubr.msk.bf16.mxu0 %vm9318_vm0, %v9317_v49  ;;  %v4963_v58 = vpack.c.bf16 %v4959_v40, %v4958_v47  ;;  %v5054_v40 = vld [vmem:[#allocation2 + $0x3a] sm:$0xff] }
 0x279   :  { %v5059_v47 = vpack.c.bf16 %v5054_v40, %v5053_v41  ;;  %v5736_v40 = vld [vmem:[#allocation2 + $0x28] sm:$0xff] }
 0x27a   :  { %v5150_v41 = vld [vmem:[#allocation2 + $0x62] sm:$0xff] }
 0x27f   :  { %8759 = vmatmul.mubr.msk.bf16.vlgmr.msra.gmra.mrb[36].mxu1 %vm4747_vm1, %v4962_v34  ;;  %8855 = vmatmul.mubr.msk.bf16.vlgmr.msra.gmra.mrb[52].mxu0 %vm4747_vm1, %v5544_v37  ;;  %v5542_v34 = vld [vmem:[#allocation2 + $0x27] sm:$0xff]  ;;  %v5543_v37 = vld [vmem:[#allocation2 + $0x2f] sm:$0x1] }
 0x280   :  { %8771 = vmatpush3.bf16.msra.mxu1 %v9231_v62  ;;  %8762 = vmatprep.mubr.msk.bf16.mxu1 %vm9318_vm0, %v9317_v49  ;;  %v4960_v62 = vld [vmem:[#allocation2 + $0x21] sm:$0xff] }
 0x281   :  { %8858 = vmatprep.mubr.msk.bf16.mxu0 %vm9318_vm0, %v9317_v49  ;;  %8772 = vmatprep.subr.bf16.mxu1 %v9317_v49 }
 0x282   :  { %8883 = vmatpush3.bf16.msra.mxu0 %v9233_v38  ;;  %v4964_v38 = vpack.c.bf16 %v4961_v0, %v4960_v62  ;;  %v5055_v62 = vld [vmem:[#allocation2 + $0x42] sm:$0xff] }
 0x283   :  { %8884 = vmatprep.subr.bf16.mxu0 %v9317_v49  ;;  %v5060_v0 = vpack.c.bf16 %v5056_v53, %v5055_v62  ;;  %v9240_v62 = vld [vmem:[%s11773_s1 + $0xd8] sm:$0xff]  }
 0x284   :  { %8773 = vmatpush3.bf16.msra.mxu1 %v9232_v54  ;;  %v5546_v54 = vpack.c.bf16 %v5543_v37, %v5542_v34  ;;  %v5739_v34 = vpack.c.bf16 %v11144_v43, %v11123_v55  ;;  %v5057_v37 = vld [vmem:[#allocation2 + $0x52] sm:$0xff] }
 0x285   :  { %8786 = vmatprep.subr.bf16.mxu1 %v9317_v49 }
 0x286   :  { %8885 = vmatpush3.bf16.msra.mxu0 %v9234_v42  ;;  %v9235_v42 = vld [vmem:[%s11773_s1 + $0xc0] sm:$0xff]  }
 0x287   :  { %8763 = vmatmul.mubr.msk.bf16.gmra.mrb[40].mxu1 %vm4747_vm1, %v4963_v58  ;;  %8859 = vmatmul.mubr.msk.bf16.gmra.mrb[56].mxu0 %vm4747_vm1, %v5545_v61  ;;  %v9237_v58 = vld [vmem:[%s11773_s1 + $0x140] sm:$0xff]   ;;  %v9236_v61 = vld [vmem:[%s11773_s1 + $0xc8] sm:$0xff]  }
 0x288   :  { %8766 = vmatprep.mubr.msk.bf16.mxu1 %vm9318_vm0, %v9317_v49  ;;  %8862 = vmatprep.mubr.msk.bf16.mxu0 %vm9318_vm0, %v9317_v49 }
 0x289   :  { %8914 = vmatprep.subr.bf16.mxu0 %v9317_v49 }
 0x28f   :  { %8767 = vmatmul.mubr.msk.bf16.gmra.mrb[44].mxu1 %vm4747_vm1, %v4964_v38  ;;  %8863 = vmatmul.mubr.msk.bf16.gmra.mrb[60].mxu0 %vm4747_vm1, %v5546_v54  ;;  %v5058_v38 = vld [vmem:[#allocation2 + $0x5a] sm:$0x1]  ;;  %v5737_v54 = vld [vmem:[#allocation2 + $0x30] sm:$0x1] }
 0x290   :  { %8774 = vmatprep.mubr.msk.bf16.mxu1 %vm9318_vm0, %v9317_v49  ;;  %8886 = vmatprep.mubr.msk.bf16.mxu0 %vm9318_vm0, %v9317_v49  ;;  %v5061_v55 = vpack.c.bf16 %v5058_v38, %v5057_v37  ;;  %v5740_v43 = vpack.c.bf16 %v5737_v54, %v5736_v40  ;;  %v5928_v37 = vld [vmem:[#allocation2 + $0x79] sm:$0xff]  ;;  %v5929_v38 = vld [vmem:[#allocation2 + $0x81] sm:$0xff] }
 0x291   :  { %v5152_v54 = vld [vmem:[#allocation2 + $0x72] sm:$0xff] }
 0x297   :  { %8775 = vmatmul.mubr.msk.bf16.vlgmr.msra.gmra.mrb[48].mxu1 %vm4747_vm1, %v5059_v47  ;;  %8887 = vmatmul.mubr.msk.bf16.vlgmr.msra.gmra.mrb[64].mxu0 %vm4747_vm1, %v5738_v57  ;;  %v5926_v47 = vld [vmem:[#allocation2 + $0x69] sm:$0xff]  ;;  %v5927_v57 = vld [vmem:[#allocation2 + $0x71] sm:$0xff] }
 0x298   :  { %8787 = vmatpush3.bf16.msra.mxu1 %v9235_v42  ;;  %8778 = vmatprep.mubr.msk.bf16.mxu1 %vm9318_vm0, %v9317_v49  ;;  %v5151_v42 = vld [vmem:[#allocation2 + $0x6a] sm:$0xff]  ;;  %v5932_v53 = vpack.c.bf16 %v5927_v57, %v5926_v47  ;;  %v5154_v57 = vld [vmem:[#allocation2 + $0x82] sm:$0xff] }
 0x299   :  { %8890 = vmatprep.mubr.msk.bf16.mxu0 %vm9318_vm0, %v9317_v49  ;;  %8788 = vmatprep.subr.bf16.mxu1 %v9317_v49  ;;  %v5931_v47 = vld [vmem:[#allocation2 + $0x91] sm:$0x1] }
 0x29a   :  { %8915 = vmatpush3.bf16.msra.mxu0 %v9237_v58  ;;  %v9239_v58 = vld [vmem:[%s11773_s1 + $0xd0] sm:$0xff]  }
 0x29b   :  { %8916 = vmatprep.subr.bf16.mxu0 %v9317_v49 }
 0x29c   :  { %8789 = vmatpush3.bf16.msra.mxu1 %v9236_v61  ;;  %v5156_v61 = vpack.c.bf16 %v5151_v42, %v5150_v41  ;;  %v5930_v41 = vld [vmem:[#allocation2 + $0x89] sm:$0xff] }
 0x29d   :  { %8802 = vmatprep.subr.bf16.mxu1 %v9317_v49 }
 0x29e   :  { %8917 = vmatpush3.bf16.msra.mxu0 %v9238_v63  ;;  %v9241_v63 = vld [vmem:[%s11773_s1 + $0x160] sm:$0xff]  }
 0x29f   :  { %8779 = vmatmul.mubr.msk.bf16.gmra.mrb[52].mxu1 %vm4747_vm1, %v5060_v0  ;;  %8891 = vmatmul.mubr.msk.bf16.gmra.mrb[68].mxu0 %vm4747_vm1, %v5739_v34  ;;  %v9242_v0 = vld [vmem:[%s11773_s1 + $0x168] sm:$0xff]   ;;  %v5153_v34 = vld [vmem:[#allocation2 + $0x7a] sm:$0xff] }
 0x2a0   :  { %8782 = vmatprep.mubr.msk.bf16.mxu1 %vm9318_vm0, %v9317_v49  ;;  %8894 = vmatprep.mubr.msk.bf16.mxu0 %vm9318_vm0, %v9317_v49  ;;  %v5157_v40 = vpack.c.bf16 %v5153_v34, %v5152_v54 }
 0x2a1   :  { %8946 = vmatprep.subr.bf16.mxu0 %v9317_v49 }
 0x2a7   :  { %8783 = vmatmul.mubr.msk.bf16.gmra.mrb[56].mxu1 %vm4747_vm1, %v5061_v55  ;;  %8895 = vmatmul.mubr.msk.bf16.gmra.mrb[72].mxu0 %vm4747_vm1, %v5740_v43  ;;  %v5933_v55 = vpack.c.bf16 %v5929_v38, %v5928_v37  ;;  %v5155_v43 = vld [vmem:[#allocation2 + $0x8a] sm:$0x1]  ;;  %v9244_v37 = vld [vmem:[%s11773_s1 + $0xf8] sm:$0xff]   ;;  %v6127_v38 = vpack.c.bf16 %v5154_v57, %v5153_v34 }
 0x2a8   :  { %8790 = vmatprep.mubr.msk.bf16.mxu1 %vm9318_vm0, %v9317_v49  ;;  %8918 = vmatprep.mubr.msk.bf16.mxu0 %vm9318_vm0, %v9317_v49  ;;  %v5441_v34 = vld [vmem:[#allocation2 + $0x94] sm:$0xff] }
 0x2af   :  { %8791 = vmatmul.mubr.msk.bf16.vlgmr.msra.gmra.mrb[60].mxu1 %vm4747_vm1, %v5156_v61  ;;  %8919 = vmatmul.mubr.msk.bf16.vlgmr.msra.gmra.mrb[76].mxu0 %vm4747_vm1, %v5932_v53  ;;  %v5934_v61 = vpack.c.bf16 %v5931_v47, %v5930_v41  ;;  %v5247_v53 = vld [vmem:[#allocation2 + $0x93] sm:$0xff]  ;;  %v5442_v47 = vld [vmem:[#allocation2 + $0x9c] sm:$0xff] }
 0x2b0   :  { %8803 = vmatpush3.bf16.msra.mxu1 %v9239_v58  ;;  %8794 = vmatprep.mubr.msk.bf16.mxu1 %vm9318_vm0, %v9317_v49  ;;  %v5158_v58 = vpack.c.bf16 %v5155_v43, %v5154_v57  ;;  %v9245_v57 = vld [vmem:[%s11773_s1 + $0x110] sm:$0xff]  }
 0x2b1   :  { %8922 = vmatprep.mubr.msk.bf16.mxu0 %vm9318_vm0, %v9317_v49  ;;  %8804 = vmatprep.subr.bf16.mxu1 %v9317_v49 }
 0x2b2   :  { %8947 = vmatpush3.bf16.msra.mxu0 %v9241_v63  ;;  %v9243_v63 = vld [vmem:[%s11773_s1 + $0xf0] sm:$0xff]  }
 0x2b3   :  { %8948 = vmatprep.subr.bf16.mxu0 %v9317_v49 }
 0x2b4   :  { %8805 = vmatpush3.bf16.msra.mxu1 %v9240_v62  ;;  %v5253_v62 = vpack.c.bf16 %v11149_v51, %v5247_v53  ;;  %v5443_v53 = vld [vmem:[#allocation2 + $0xa4] sm:$0xff] }
 0x2b5   :  { %8834 = vmatprep.subr.bf16.mxu1 %v9317_v49 }
 0x2b6   :  { %8949 = vmatpush3.bf16.msra.mxu0 %v9242_v0  ;;  %v6126_v0 = vpack.c.bf16 %v5152_v54, %v5151_v42  ;;  %v5254_v42 = vpack.c.bf16 %v11046_v44, %v11146_v46  ;;  %v5252_v54 = vld [vmem:[#allocation2 + $0xbb] sm:$0x1] }
 0x2b7   :  { %8795 = vmatmul.mubr.msk.bf16.gmra.mrb[64].mxu1 %vm4747_vm1, %v5157_v40  ;;  %8923 = vmatmul.mubr.msk.bf16.gmra.mrb[80].mxu0 %vm4747_vm1, %v5933_v55  ;;  %v6124_v40 = vld [vmem:[#allocation2 + $0x8a] sm:$0xff]  ;;  %v6125_v55 = vld [vmem:[#allocation2 + $0x92] sm:$0x1]  ;;  %v5255_v43 = vpack.c.bf16 %v5252_v54, %v11048_v45  ;;  %v5635_v54 = vld [vmem:[#allocation2 + $0x38] sm:$0xff] }
 0x2b8   :  { %8798 = vmatprep.mubr.msk.bf16.mxu1 %vm9318_vm0, %v9317_v49  ;;  %8926 = vmatprep.mubr.msk.bf16.mxu0 %vm9318_vm0, %v9317_v49  ;;  %v6128_v41 = vpack.c.bf16 %v6125_v55, %v6124_v40  ;;  %v9247_v40 = vld [vmem:[%s11773_s1 + $0x130] sm:$0xff]  }
 0x2bf   :  { %8799 = vmatmul.mubr.msk.bf16.gmra.mrb[68].mxu1 %vm4747_vm1, %v5158_v58  ;;  %8927 = vmatmul.mubr.msk.bf16.gmra.mrb[84].mxu0 %vm4747_vm1, %v5934_v61  ;;  %v5447_v58 = vpack.c.bf16 %v5442_v47, %v5441_v34  ;;  %v9246_v61 = vld [vmem:[%s11773_s1 + $0x118] sm:$0xff]   ;;  %v5637_v34 = vld [vmem:[#allocation2 + $0x48] sm:$0xff] }
 0x2c0   :  { %8806 = vmatprep.mubr.msk.bf16.mxu1 %vm9318_vm0, %v9317_v49  ;;  %8950 = vmatprep.mubr.msk.bf16.mxu0 %vm9318_vm0, %v9317_v49 }
 0x2c7   :  { %8807 = vmatmul.mubr.msk.bf16.vlgmr.msra.gmra.mrb[72].mxu1 %vm4747_vm1, %v5253_v62  ;;  %8951 = vmatmul.mubr.msk.bf16.vlgmr.msra.gmra.mrb[88].mxu0 %vm4747_vm1, %v6126_v0  ;;  %v5445_v0 = vld [vmem:[#allocation2 + $0xb4] sm:$0xff] }
 0x2c8   :  { %8835 = vmatpush3.bf16.msra.mxu1 %v9243_v63  ;;  %8810 = vmatprep.mubr.msk.bf16.mxu1 %vm9318_vm0, %v9317_v49  ;;  %v5444_v63 = vld [vmem:[#allocation2 + $0xac] sm:$0xff] }
 0x2c9   :  { %8954 = vmatprep.mubr.msk.bf16.mxu0 %vm9318_vm0, %v9317_v49  ;;  %8836 = vmatprep.subr.bf16.mxu1 %v9317_v49  ;;  %v5448_v62 = vpack.c.bf16 %v5444_v63, %v5443_v53  ;;  %v9249_v53 = vld [vmem:[%s11773_s1 + $0x150] sm:$0xff]   ;;  %v9250_v63 = vld [vmem:[%s11773_s1 + $0x158] sm:$0xff]  }
 0x2cc   :  { %8837 = vmatpush3.bf16.msra.mxu1 %v9244_v37  ;;  %v5446_v37 = vld [vmem:[#allocation2 + $0xbc] sm:$0x1] }
 0x2cd   :  { %8866 = vmatprep.subr.bf16.mxu1 %v9317_v49 }
 0x2cf   :  { %8811 = vmatmul.mubr.msk.bf16.gmra.mrb[76].mxu1 %vm4747_vm1, %v5254_v42  ;;  %8955 = vmatmul.mubr.msk.bf16.gmra.mrb[92].mxu0 %vm4747_vm1, %v6127_v38  ;;  %v5449_v42 = vpack.c.bf16 %v5446_v37, %v5445_v0  ;;  %v5636_v38 = vld [vmem:[#allocation2 + $0x40] sm:$0xff] }
 0x2d0   :  { %8814 = vmatprep.mubr.msk.bf16.mxu1 %vm9318_vm0, %v9317_v49  ;;  %8958 = vmatprep.mubr.msk.bf16.mxu0 %vm9318_vm0, %v9317_v49  ;;  %v5641_v55 = vpack.c.bf16 %v5636_v38, %v5635_v54  ;;  %v6023_v0 = vld [vmem:[#allocation2 + $0x9a] sm:$0xff]  ;;  %v6024_v37 = vld [vmem:[#allocation2 + $0xa2] sm:$0xff] }
 0x2d1   :  { %v9252_v54 = vld [vmem:[%s11773_s1 + $0x178] sm:$0xff]  }
 0x2d7   :  { %8815 = vmatmul.mubr.msk.bf16.gmra.mrb[80].mxu1 %vm4747_vm1, %v5255_v43  ;;  %8959 = vmatmul.mubr.msk.bf16.gmra.mrb[96].mxu0 %vm4747_vm1, %v6128_v41  ;;  %v9248_v43 = vld [vmem:[%s11773_s1 + $0x138] sm:$0xff]   ;;  %v5638_v41 = vld [vmem:[#allocation2 + $0x50] sm:$0xff] }
 0x2d8   :  { %8838 = vmatprep.mubr.msk.bf16.mxu1 %vm9318_vm0, %v9317_v49  ;;  %v5642_v47 = vpack.c.bf16 %v5638_v41, %v5637_v34 }
 0x2df   :  { %8839 = vmatmul.mubr.msk.bf16.vlgmr.msra.gmra.mrb[84].mxu1 %vm4747_vm1, %v5447_v58  ;;  %v5639_v58 = vld [vmem:[#allocation2 + $0x58] sm:$0xff] }
 0x2e0   :  { %8867 = vmatpush3.bf16.msra.mxu1 %v9245_v57  ;;  %8842 = vmatprep.mubr.msk.bf16.mxu1 %vm9318_vm0, %v9317_v49  ;;  %v5640_v57 = vld [vmem:[#allocation2 + $0x60] sm:$0x1] }
 0x2e1   :  { %8868 = vmatprep.subr.bf16.mxu1 %v9317_v49 }
 0x2e4   :  { %8869 = vmatpush3.bf16.msra.mxu1 %v9246_v61  ;;  %v5643_v61 = vpack.c.bf16 %v5640_v57, %v5639_v58 }
 0x2e5   :  { %8898 = vmatprep.subr.bf16.mxu1 %v9317_v49 }
 0x2e7   :  { %8843 = vmatmul.mubr.msk.bf16.gmra.mrb[88].mxu1 %vm4747_vm1, %v5448_v62 }
 0x2e8   :  { %8846 = vmatprep.mubr.msk.bf16.mxu1 %vm9318_vm0, %v9317_v49 }
 0x2ef   :  { %8847 = vmatmul.mubr.msk.bf16.gmra.mrb[92].mxu1 %vm4747_vm1, %v5449_v42 }
 0x2f0   :  { %8870 = vmatprep.mubr.msk.bf16.mxu1 %vm9318_vm0, %v9317_v49 }
 0x2f7   :  { %8871 = vmatmul.mubr.msk.bf16.vlgmr.msra.gmra.mrb[96].mxu1 %vm4747_vm1, %v5641_v55  ;;  %v6025_v55 = vld [vmem:[#allocation2 + $0xaa] sm:$0xff] }
 0x2f8   :  { %8899 = vmatpush3.bf16.msra.mxu1 %v9247_v40  ;;  %8874 = vmatprep.mubr.msk.bf16.mxu1 %vm9318_vm0, %v9317_v49 }
 0x2f9   :  { %8900 = vmatprep.subr.bf16.mxu1 %v9317_v49 }
 0x2fc   :  { %8901 = vmatpush3.bf16.msra.mxu1 %v9248_v43  ;;  %v6026_v43 = vld [vmem:[#allocation2 + $0xb2] sm:$0xff] }
 0x2fd   :  { %8930 = vmatprep.subr.bf16.mxu1 %v9317_v49  ;;  %v6030_v57 = vpack.c.bf16 %v6026_v43, %v6025_v55 }
 0x2ff   :  { %8875 = vmatmul.mubr.msk.bf16.gmra.mrb[100].mxu1 %vm4747_vm1, %v5642_v47 }
 0x300   :  { %8878 = vmatprep.mubr.msk.bf16.mxu1 %vm9318_vm0, %v9317_v49 }
 0x307   :  { %8879 = vmatmul.mubr.msk.bf16.gmra.mrb[104].mxu1 %vm4747_vm1, %v5643_v61  ;;  %v6027_v61 = vld [vmem:[#allocation2 + $0xba] sm:$0xff] }
 0x308   :  { %8902 = vmatprep.mubr.msk.bf16.mxu1 %vm9318_vm0, %v9317_v49 }
 0x30f   :  { %8903 = vmatmul.mubr.msk.bf16.vlgmr.msra.gmra.mrb[108].mxu1 %vm4747_vm1, %v5835_v39  ;;  %v5837_v39 = vpack.c.bf16 %v5834_v36, %v5833_v60 }
 0x310   :  { %8931 = vmatpush3.bf16.msra.mxu1 %v9249_v53  ;;  %8906 = vmatprep.mubr.msk.bf16.mxu1 %vm9318_vm0, %v9317_v49  ;;  %v6028_v53 = vld [vmem:[#allocation2 + $0xc2] sm:$0x1] }
 0x311   :  { %8932 = vmatprep.subr.bf16.mxu1 %v9317_v49 }
 0x314   :  { %8933 = vmatpush3.bf16.msra.mxu1 %v9250_v63 }
 0x315   :  { %8962 = vmatprep.subr.bf16.mxu1 %v9317_v49 }
 0x317   :  { %8907 = vmatmul.mubr.msk.bf16.gmra.mrb[112].mxu1 %vm4747_vm1, %v5836_v59  ;;  %v6029_v59 = vpack.c.bf16 %v6024_v37, %v6023_v0 }
 0x318   :  { %8910 = vmatprep.mubr.msk.bf16.mxu1 %vm9318_vm0, %v9317_v49 }
 0x31f   :  { %8911 = vmatmul.mubr.msk.bf16.gmra.mrb[116].mxu1 %vm4747_vm1, %v5837_v39  ;;  %v6031_v39 = vpack.c.bf16 %v6028_v53, %v6027_v61 }
 0x320   :  { %8934 = vmatprep.mubr.msk.bf16.mxu1 %vm9318_vm0, %v9317_v49 }
 0x322   :  { %v4855_v62 = vpop.f32.mrb[12].mxu1 }
 0x323   :  { %v8728_v42 = vpop.f32.mrb[13].mxu1 }
 0x324   :  { %v4858_v38 = vpop.f32.mrb[14].mxu1 }
 0x325   :  { %v8729_v56 = vpop.f32.mrb[15].mxu1 }
 0x327   :  { %8935 = vmatmul.mubr.msk.bf16.vlgmr.msra.gmra.mrb[120].mxu1 %vm4747_vm1, %v6029_v59 }
 0x328   :  { %8963 = vmatpush3.bf16.msra.mxu1 %v9251_v50  ;;  %8938 = vmatprep.mubr.msk.bf16.mxu1 %vm9318_vm0, %v9317_v49 }
 0x329   :  { %8964 = vmatprep.subr.bf16.mxu1 %v9317_v49 }
 0x32a   :  { %v4863_v40 = vpop.f32.mrb[16].mxu1 }
 0x32b   :  { %v8732_v41 = vpop.f32.mrb[17].mxu1 }
 0x32c   :  { %v4866_v34 = vpop.f32.mrb[18].mxu1  ;;  %8965 = vmatpush3.bf16.msra.mxu1 %v9252_v54 }
 0x32d   :  { %v8733_v47 = vpop.f32.mrb[19].mxu1 }
 0x32f   :  { %8939 = vmatmul.mubr.msk.bf16.gmra.mrb[124].mxu1 %vm4747_vm1, %v6030_v57 }
 0x330   :  { %8942 = vmatprep.mubr.msk.bf16.mxu1 %vm9318_vm0, %v9317_v49 }
 0x332   :  { %v4871_v58 = vpop.f32.mrb[20].mxu1 }
 0x333   :  { %v8736_v63 = vpop.f32.mrb[21].mxu1 }
 0x334   :  { %v4874_v60 = vpop.f32.mrb[22].mxu1 }
 0x335   :  { %v8737_v36 = vpop.f32.mrb[23].mxu1 }
 0x337   :  { %8943 = vmatmul.mubr.msk.bf16.gmra.mrb[128].mxu1 %vm4747_vm1, %v6031_v39 }
 0x338   :  { %8966 = vmatprep.mubr.msk.bf16.mxu1 %vm9318_vm0, %v9317_v49 }
 0x33a   :  { %v4933_v0 = vpop.f32.mrb[24].mxu1  ;;  %v11365_v37 = vpop.f32.mrb[40].mxu0 }
 0x33b   :  { %v4934_v42 = vadd.f32 %v4933_v0, %v4855_v62  ;;  %v8744_v50 = vpop.f32.mrb[25].mxu1  ;;  %v8824_v56 = vpop.f32.mrb[41].mxu0 }
 0x33c   :  { %v4936_v59 = vpop.f32.mrb[26].mxu1  ;;  %v11367_v54 = vpop.f32.mrb[42].mxu0 }
 0x33d   :  { %v4937_v55 = vadd.f32 %v4936_v59, %v4858_v38  ;;  %v8745_v43 = vpop.f32.mrb[27].mxu1  ;;  %v8825_v41 = vpop.f32.mrb[43].mxu0 }
 0x33f   :  { %8967 = vmatmul.mubr.msk.bf16.vlgmr.msra.gmra.mrb[132].mxu1 %vm4747_vm1, %v6223_v52  ;;  %v6221_v52 = vld [vmem:[#allocation2 + $0xbb] sm:$0xff] }
 0x340   :  { %8970 = vmatprep.mubr.msk.bf16.mxu1 %vm9318_vm0, %v9317_v49 }
 0x342   :  { %v4941_v47 = vpop.f32.mrb[28].mxu1  ;;  %v11375_v57 = vpop.f32.mrb[44].mxu0 }
 0x343   :  { %v4942_v62 = vadd.f32 %v4941_v47, %v4863_v40  ;;  %v8748_v61 = vpop.f32.mrb[29].mxu1  ;;  %v8828_v53 = vpop.f32.mrb[45].mxu0  ;;  %v6222_v40 = vld [vmem:[#allocation2 + $0xc3] sm:$0x1] }
 0x344   :  { %v4944_v63 = vpop.f32.mrb[30].mxu1  ;;  %v11377_v36 = vpop.f32.mrb[46].mxu0  ;;  %v6225_v61 = vpack.c.bf16 %v6222_v40, %v6221_v52 }
 0x345   :  { %v4945_v38 = vadd.f32 %v4944_v63, %v4866_v34  ;;  %v8749_v39 = vpop.f32.mrb[31].mxu1  ;;  %v8829_v0 = vpop.f32.mrb[47].mxu0 }
 0x347   :  { %8971 = vmatmul.mubr.msk.bf16.gmra.mrb[136].mxu1 %vm4747_vm1, %v6224_v48 }
 0x348   :  { %8974 = vmatprep.mubr.msk.bf16.mxu1 %vm9318_vm0, %v9317_v49 }
 0x34a   :  { %v4949_v46 = vpop.f32.mrb[32].mxu1  ;;  %v11385_v51 = vpop.f32.mrb[48].mxu0 }
 0x34b   :  { %v4950_v50 = vadd.f32 %v4949_v46, %v4871_v58  ;;  %v8752_v56 = vpop.f32.mrb[33].mxu1  ;;  %v8832_v59 = vpop.f32.mrb[49].mxu0 }
 0x34c   :  { %v4952_v43 = vpop.f32.mrb[34].mxu1  ;;  %v11387_v34 = vpop.f32.mrb[50].mxu0 }
 0x34d   :  { %v4953_v41 = vadd.f32 %v4952_v43, %v4874_v60  ;;  %v8753_v47 = vpop.f32.mrb[35].mxu1  ;;  %v8833_v44 = vpop.f32.mrb[51].mxu0 }
 0x34f   :  { %8975 = vmatmul.mubr.msk.bf16.gmra.mrb[140].mxu1 %vm4747_vm1, %v6225_v61 }
 0x352   :  { %v5024_v45 = vpop.f32.mrb[36].mxu1  ;;  %v11390_v48 = vpop.f32.mrb[52].mxu0 }
 0x353   :  { %v5047_v49 = vadd.f32 %v5024_v45, %v4934_v42  ;;  %v8760_v53 = vpop.f32.mrb[37].mxu1  ;;  %v8856_v63 = vpop.f32.mrb[53].mxu0 }
 0x354   :  { %v5027_v39 = vpop.f32.mrb[38].mxu1  ;;  %v11392_v0 = vpop.f32.mrb[54].mxu0 }
 0x355   :  { %v5048_v58 = vadd.f32 %v5027_v39, %v4937_v55  ;;  %v8761_v46 = vpop.f32.mrb[39].mxu1  ;;  %v8857_v56 = vpop.f32.mrb[55].mxu0 }
 0x35a   :  { %v5032_v59 = vpop.f32.mrb[40].mxu1  ;;  %v11394_v35 = vpop.f32.mrb[56].mxu0 }
 0x35b   :  { %v5049_v60 = vadd.f32 %v5032_v59, %v4942_v62  ;;  %v8764_v52 = vpop.f32.mrb[41].mxu1  ;;  %v8860_v40 = vpop.f32.mrb[57].mxu0 }
 0x35c   :  { %v5035_v43 = vpop.f32.mrb[42].mxu1  ;;  %v11396_v47 = vpop.f32.mrb[58].mxu0 }
 0x35d   :  { %v5050_v61 = vadd.f32 %v5035_v43, %v4945_v38  ;;  %v8765_v44 = vpop.f32.mrb[43].mxu1  ;;  %v8861_v42 = vpop.f32.mrb[59].mxu0 }
 0x362   :  { %v5040_v45 = vpop.f32.mrb[44].mxu1  ;;  %v11398_v53 = vpop.f32.mrb[60].mxu0 }
 0x363   :  { %v5051_v63 = vadd.f32 %v5040_v45, %v4950_v50  ;;  %v8768_v24 = vpop.f32.mrb[45].mxu1  ;;  %v8864_v55 = vpop.f32.mrb[61].mxu0 }
 0x364   :  { %v5043_v39 = vpop.f32.mrb[46].mxu1  ;;  %v11400_v46 = vpop.f32.mrb[62].mxu0 }
 0x365   :  { %v5052_v56 = vadd.f32 %v5043_v39, %v4953_v41  ;;  %v8769_v32 = vpop.f32.mrb[47].mxu1  ;;  %v8865_v62 = vpop.f32.mrb[63].mxu0 }
 0x36a   :  { %v5121_v59 = vpop.f32.mrb[48].mxu1  ;;  %v11402_v52 = vpop.f32.mrb[64].mxu0 }
 0x36b   :  { %v5144_v40 = vadd.f32 %v5121_v59, %v5047_v49  ;;  %v8776_v23 = vpop.f32.mrb[49].mxu1  ;;  %v8888_v38 = vpop.f32.mrb[65].mxu0 }
 0x36c   :  { %v5124_v43 = vpop.f32.mrb[50].mxu1  ;;  %v11404_v44 = vpop.f32.mrb[66].mxu0 }
 0x36d   :  { %v5145_v42 = vadd.f32 %v5124_v43, %v5048_v58  ;;  %v8777_v31 = vpop.f32.mrb[51].mxu1  ;;  %v8889_v50 = vpop.f32.mrb[67].mxu0 }
 0x372   :  { %v5129_v24 = vpop.f32.mrb[52].mxu1  ;;  %v11406_v45 = vpop.f32.mrb[68].mxu0 }
 0x373   :  { %v5146_v55 = vadd.f32 %v5129_v24, %v5049_v60  ;;  %v8780_v22 = vpop.f32.mrb[53].mxu1  ;;  %v8892_v41 = vpop.f32.mrb[69].mxu0 }
 0x374   :  { %v5132_v32 = vpop.f32.mrb[54].mxu1  ;;  %v11408_v39 = vpop.f32.mrb[70].mxu0 }
 0x375   :  { %v5147_v62 = vadd.f32 %v5132_v32, %v5050_v61  ;;  %v8781_v30 = vpop.f32.mrb[55].mxu1  ;;  %v8893_v49 = vpop.f32.mrb[71].mxu0 }
 0x37a   :  { %v5137_v23 = vpop.f32.mrb[56].mxu1  ;;  %v11410_v59 = vpop.f32.mrb[72].mxu0 }
 0x37b   :  { %v5148_v38 = vadd.f32 %v5137_v23, %v5051_v63  ;;  %v8784_v21 = vpop.f32.mrb[57].mxu1  ;;  %v8896_v58 = vpop.f32.mrb[73].mxu0 }
 0x37c   :  { %v5140_v31 = vpop.f32.mrb[58].mxu1  ;;  %v11412_v43 = vpop.f32.mrb[74].mxu0 }
 0x37d   :  { %v5149_v50 = vadd.f32 %v5140_v31, %v5052_v56  ;;  %v8785_v29 = vpop.f32.mrb[59].mxu1  ;;  %v8897_v60 = vpop.f32.mrb[75].mxu0 }
 0x382   :  { %v5218_v22 = vpop.f32.mrb[60].mxu1  ;;  %v11414_v24 = vpop.f32.mrb[76].mxu0 }
 0x383   :  { %v5241_v41 = vadd.f32 %v5218_v22, %v5144_v40  ;;  %v8792_v20 = vpop.f32.mrb[61].mxu1  ;;  %v8920_v61 = vpop.f32.mrb[77].mxu0 }
 0x384   :  { %v5221_v30 = vpop.f32.mrb[62].mxu1  ;;  %v11416_v32 = vpop.f32.mrb[78].mxu0 }
 0x385   :  { %v5242_v49 = vadd.f32 %v5221_v30, %v5145_v42  ;;  %v8793_v28 = vpop.f32.mrb[63].mxu1  ;;  %v8921_v63 = vpop.f32.mrb[79].mxu0 }
 0x38a   :  { %v5226_v21 = vpop.f32.mrb[64].mxu1  ;;  %v11418_v23 = vpop.f32.mrb[80].mxu0 }
 0x38b   :  { %v5243_v58 = vadd.f32 %v5226_v21, %v5146_v55  ;;  %v8796_v19 = vpop.f32.mrb[65].mxu1  ;;  %v8924_v56 = vpop.f32.mrb[81].mxu0 }
 0x38c   :  { %v5229_v29 = vpop.f32.mrb[66].mxu1  ;;  %v11420_v31 = vpop.f32.mrb[82].mxu0 }
 0x38d   :  { %v5244_v60 = vadd.f32 %v5229_v29, %v5147_v62  ;;  %v8797_v27 = vpop.f32.mrb[67].mxu1  ;;  %v8925_v40 = vpop.f32.mrb[83].mxu0 }
 0x38e   :  { %v9253_v27 = vld [vmem:[%s11773_s1 + $0x1a0] sm:$0xff]  }
 0x38f   :  { %8978 = vmatprep.subr.bf16.mxu0 %v9253_v27 }
 0x390   :  { %8979 = vmatpush3.bf16.msra.mxu0 %v9253_v27 }
 0x392   :  { %v5234_v20 = vpop.f32.mrb[68].mxu1  ;;  %v11422_v22 = vpop.f32.mrb[84].mxu0 }
 0x393   :  { %v5245_v61 = vadd.f32 %v5234_v20, %v5148_v38  ;;  %v8800_v18 = vpop.f32.mrb[69].mxu1  ;;  %v8928_v42 = vpop.f32.mrb[85].mxu0 }
 0x394   :  { %v5237_v28 = vpop.f32.mrb[70].mxu1  ;;  %v11424_v30 = vpop.f32.mrb[86].mxu0 }
 0x395   :  { %v5246_v63 = vadd.f32 %v5237_v28, %v5149_v50  ;;  %v8801_v26 = vpop.f32.mrb[71].mxu1  ;;  %v8929_v55 = vpop.f32.mrb[87].mxu0 }
 0x39a   :  { %v5315_v19 = vpop.f32.mrb[72].mxu1  ;;  %v11426_v21 = vpop.f32.mrb[88].mxu0 }
 0x39b   :  { %v5338_v56 = vadd.f32 %v5315_v19, %v5241_v41  ;;  %v8808_v17 = vpop.f32.mrb[73].mxu1  ;;  %v8952_v62 = vpop.f32.mrb[89].mxu0 }
 0x39c   :  { %v5318_v29 = vpop.f32.mrb[74].mxu1  ;;  %v11431_v38 = vpop.f32.mrb[90].mxu0  ;;  %v9254_v17 = vld [vmem:[%s11773_s1 + $0x1a8] sm:$0xff]  }
 0x39d   :  { %v5339_v18 = vadd.f32 %v5318_v29, %v5242_v49  ;;  %v8809_v40 = vpop.f32.mrb[75].mxu1  ;;  %v8953_v20 = vpop.f32.mrb[91].mxu0  ;;  %v5435_v50 = vadd.f32 %v11365_v37, %v5338_v56  ;;  %8980 = vmatprep.subr.bf16.mxu0 %v9254_v17  ;;  %v9255_v37 = vld [vmem:[%s11773_s1 + $0x1b0] sm:$0xff]  }
 0x39e   :  { %8981 = vmatpush3.bf16.msra.mxu0 %v9254_v17 }
 0x39f   :  { %v5436_v26 = vadd.f32 %v11367_v54, %v5339_v18  ;;  %8982 = vmatprep.subr.bf16.mxu0 %v9255_v37 }
 0x3a2   :  { %v5323_v41 = vpop.f32.mrb[76].mxu1  ;;  %v11438_v42 = vpop.f32.mrb[92].mxu0  ;;  %8983 = vmatpush3.bf16.msra.mxu0 %v9255_v37 }
 0x3a3   :  { %v5340_v28 = vadd.f32 %v5323_v41, %v5243_v58  ;;  %v8812_v55 = vpop.f32.mrb[77].mxu1  ;;  %v8956_v49 = vpop.f32.mrb[93].mxu0  ;;  %v9256_v58 = vld [vmem:[%s11773_s1 + $0x1b8] sm:$0xff]  }
 0x3a4   :  { %v5326_v19 = vpop.f32.mrb[78].mxu1  ;;  %v11443_v56 = vpop.f32.mrb[94].mxu0  ;;  %8984 = vmatprep.subr.bf16.mxu0 %v9256_v58 }
 0x3a5   :  { %v5341_v54 = vadd.f32 %v5326_v19, %v5244_v60  ;;  %v8813_v62 = vpop.f32.mrb[79].mxu1  ;;  %v8957_v27 = vpop.f32.mrb[95].mxu0  ;;  %v5437_v29 = vadd.f32 %v11375_v57, %v5340_v28  ;;  %v11455_v57 = vld [vmem:[%s11773_s1 + $0x180] sm:$0xff]  }
 0x3a6   :  { %8985 = vmatpush3.bf16.msra.mxu0 %v9256_v58 }
 0x3a7   :  { %v5438_v18 = vadd.f32 %v11377_v36, %v5341_v54  ;;  %8990 = vmatprep.subr.bf16.mxu0 %v11455_v57 }
 0x3aa   :  { %v5331_v40 = vpop.f32.mrb[80].mxu1  ;;  %v11450_v20 = vpop.f32.mrb[96].mxu0 }
 0x3ab   :  { %v5342_v17 = vadd.f32 %v5331_v40, %v5245_v61  ;;  %v8816_v41 = vpop.f32.mrb[81].mxu1  ;;  %v8960_v60 = vpop.f32.mrb[97].mxu0 }
 0x3ac   :  { %v5334_v28 = vpop.f32.mrb[82].mxu1  ;;  %v11457_v55 = vpop.f32.mrb[98].mxu0 }
 0x3ad   :  { %v5343_v36 = vadd.f32 %v5334_v28, %v5246_v63  ;;  %v8817_v49 = vpop.f32.mrb[83].mxu1  ;;  %v8961_v37 = vpop.f32.mrb[99].mxu0  ;;  %v5439_v19 = vadd.f32 %v11385_v51, %v5342_v17 }
 0x3af   :  { %v5440_v54 = vadd.f32 %v11387_v34, %v5343_v36 }
 0x3b2   :  { %v5509_v61 = vpop.f32.mrb[84].mxu1 }
 0x3b3   :  { %v5532_v62 = vadd.f32 %v5509_v61, %v5435_v50  ;;  %v8840_v27 = vpop.f32.mrb[85].mxu1 }
 0x3b4   :  { %v5512_v58 = vpop.f32.mrb[86].mxu1 }
 0x3b5   :  { %v5533_v40 = vadd.f32 %v5512_v58, %v5436_v26  ;;  %v8841_v41 = vpop.f32.mrb[87].mxu1  ;;  %v5629_v60 = vadd.f32 %v11390_v48, %v5532_v62 }
 0x3b7   :  { %v5630_v25 = vadd.f32 %v11392_v0, %v5533_v40 }
 0x3ba   :  { %v5517_v8 = vpop.f32.mrb[88].mxu1 }
 0x3bb   :  { %v5534_v63 = vadd.f32 %v5517_v8, %v5437_v29  ;;  %v8844_v28 = vpop.f32.mrb[89].mxu1 }
 0x3bc   :  { %v5520_v49 = vpop.f32.mrb[90].mxu1 }
 0x3bd   :  { %v5535_v37 = vadd.f32 %v5520_v49, %v5438_v18  ;;  %v8845_v51 = vpop.f32.mrb[91].mxu1  ;;  %v5631_v17 = vadd.f32 %v11394_v35, %v5534_v63 }
 0x3bf   :  { %v5632_v34 = vadd.f32 %v11396_v47, %v5535_v37 }
 0x3c2   :  { %v5525_v36 = vpop.f32.mrb[92].mxu1 }
 0x3c3   :  { %v5536_v50 = vadd.f32 %v5525_v36, %v5439_v19  ;;  %v8848_v61 = vpop.f32.mrb[93].mxu1 }
 0x3c4   :  { %v5528_v27 = vpop.f32.mrb[94].mxu1 }
 0x3c5   :  { %v5537_v26 = vadd.f32 %v5528_v27, %v5440_v54  ;;  %v8849_v58 = vpop.f32.mrb[95].mxu1  ;;  %v5633_v48 = vadd.f32 %v11398_v53, %v5536_v50 }
 0x3c7   :  { %v5634_v0 = vadd.f32 %v11400_v46, %v5537_v26 }
 0x3ca   :  { %v5703_v62 = vpop.f32.mrb[96].mxu1 }
 0x3cb   :  { %v5726_v8 = vadd.f32 %v5703_v62, %v5629_v60  ;;  %v8872_v29 = vpop.f32.mrb[97].mxu1 }
 0x3cc   :  { %v5706_v40 = vpop.f32.mrb[98].mxu1 }
 0x3cd   :  { %v5727_v18 = vadd.f32 %v5706_v40, %v5630_v25  ;;  %v8873_v41 = vpop.f32.mrb[99].mxu1  ;;  %v5823_v35 = vadd.f32 %v11402_v52, %v5726_v8 }
 0x3cf   :  { %v5824_v47 = vadd.f32 %v11404_v44, %v5727_v18 }
 0x3d2   :  { %v5711_v63 = vpop.f32.mrb[100].mxu1 }
 0x3d3   :  { %v5728_v19 = vadd.f32 %v5711_v63, %v5631_v17  ;;  %v8876_v28 = vpop.f32.mrb[101].mxu1 }
 0x3d4   :  { %v5714_v49 = vpop.f32.mrb[102].mxu1 }
 0x3d5   :  { %v5729_v54 = vadd.f32 %v5714_v49, %v5632_v34  ;;  %v8877_v37 = vpop.f32.mrb[103].mxu1  ;;  %v5825_v53 = vadd.f32 %v11406_v45, %v5728_v19 }
 0x3d7   :  { %v5826_v46 = vadd.f32 %v11408_v39, %v5729_v54 }
 0x3da   :  { %v5719_v51 = vpop.f32.mrb[104].mxu1 }
 0x3db   :  { %v5730_v60 = vadd.f32 %v5719_v51, %v5633_v48  ;;  %v8880_v36 = vpop.f32.mrb[105].mxu1 }
 0x3dc   :  { %v5722_v50 = vpop.f32.mrb[106].mxu1 }
 0x3dd   :  { %v5731_v25 = vadd.f32 %v5722_v50, %v5634_v0  ;;  %v8881_v61 = vpop.f32.mrb[107].mxu1  ;;  %v5827_v52 = vadd.f32 %v11410_v59, %v5730_v60 }
 0x3df   :  { %v5828_v44 = vadd.f32 %v11412_v43, %v5731_v25 }
 0x3e2   :  { %v5897_v27 = vpop.f32.mrb[108].mxu1 }
 0x3e3   :  { %v5920_v17 = vadd.f32 %v5897_v27, %v5823_v35  ;;  %v8904_v26 = vpop.f32.mrb[109].mxu1 }
 0x3e4   :  { %v5900_v58 = vpop.f32.mrb[110].mxu1 }
 0x3e5   :  { %v5921_v34 = vadd.f32 %v5900_v58, %v5824_v47  ;;  %v8905_v62 = vpop.f32.mrb[111].mxu1  ;;  %v6017_v45 = vadd.f32 %v11414_v24, %v5920_v17 }
 0x3e6   :  { %v4301_v62 = vld [vmem:[%s11774_s2 + $0x1] ss:$0 sm:$0xff] }
 0x3e7   :  { %v6018_v39 = vadd.f32 %v11416_v32, %v5921_v34 }
 0x3ea   :  { %v5905_v8 = vpop.f32.mrb[112].mxu1 }
 0x3eb   :  { %v5922_v48 = vadd.f32 %v5905_v8, %v5825_v53  ;;  %v8908_v29 = vpop.f32.mrb[113].mxu1 }
 0x3ec   :  { %v5908_v40 = vpop.f32.mrb[114].mxu1 }
 0x3ed   :  { %v5923_v0 = vadd.f32 %v5908_v40, %v5826_v46  ;;  %v8909_v18 = vpop.f32.mrb[115].mxu1  ;;  %v6019_v59 = vadd.f32 %v11418_v23, %v5922_v48 }
 0x3ef   :  { %v6020_v43 = vadd.f32 %v11420_v31, %v5923_v0 }
 0x3f2   :  { %v5913_v41 = vpop.f32.mrb[116].mxu1 }
 0x3f3   :  { %v5924_v35 = vadd.f32 %v5913_v41, %v5827_v52  ;;  %v8912_v63 = vpop.f32.mrb[117].mxu1 }
 0x3f4   :  { %v5916_v19 = vpop.f32.mrb[118].mxu1 }
 0x3f5   :  { %v5925_v47 = vadd.f32 %v5916_v19, %v5828_v44  ;;  %v8913_v28 = vpop.f32.mrb[119].mxu1  ;;  %v6021_v24 = vadd.f32 %v11422_v22, %v5924_v35 }
 0x3f7   :  { %v6022_v32 = vadd.f32 %v11424_v30, %v5925_v47 }
 0x3fa   :  { %v6091_v49 = vpop.f32.mrb[120].mxu1 }
 0x3fb   :  { %v6114_v54 = vadd.f32 %v6091_v49, %v6017_v45  ;;  %v8936_v37 = vpop.f32.mrb[121].mxu1 }
 0x3fc   :  { %v6094_v53 = vpop.f32.mrb[122].mxu1 }
 0x3fd   :  { %v6115_v46 = vadd.f32 %v6094_v53, %v6018_v39  ;;  %v8937_v51 = vpop.f32.mrb[123].mxu1  ;;  %v6211_v23 = vadd.f32 %v11426_v21, %v6114_v54 }
 0x3ff   :  { %v6212_v31 = vadd.f32 %v11431_v38, %v6115_v46 }
 0x402   :  { %v6099_v60 = vpop.f32.mrb[124].mxu1 }
 0x403   :  { %v6116_v36 = vadd.f32 %v6099_v60, %v6019_v59  ;;  %v8940_v50 = vpop.f32.mrb[125].mxu1 }
 0x404   :  { %v6102_v25 = vpop.f32.mrb[126].mxu1 }
 0x405   :  { %v6117_v61 = vadd.f32 %v6102_v25, %v6020_v43  ;;  %v8941_v52 = vpop.f32.mrb[127].mxu1  ;;  %v6213_v22 = vadd.f32 %v11438_v42, %v6116_v36 }
 0x407   :  { %v6214_v30 = vadd.f32 %v11443_v56, %v6117_v61 }
 0x40a   :  { %v6107_v44 = vpop.f32.mrb[128].mxu1 }
 0x40b   :  { %v6118_v27 = vadd.f32 %v6107_v44, %v6021_v24  ;;  %v8944_v17 = vpop.f32.mrb[129].mxu1  ;;  %v9258_v44 = vld [vmem:[%s11773_s1 + $0x188] sm:$0xff]  }
 0x40c   :  { %v6110_v26 = vpop.f32.mrb[130].mxu1 }
 0x40d   :  { %v6119_v58 = vadd.f32 %v6110_v26, %v6022_v32  ;;  %v8945_v34 = vpop.f32.mrb[131].mxu1  ;;  %v6215_v21 = vadd.f32 %v11450_v20, %v6118_v27  ;;  %v9259_v26 = vld [vmem:[%s11773_s1 + $0x190] sm:$0xff]  }
 0x40e   :  { %v9261_v34 = vld [vmem:[%s11773_s1 + $0x1c0] sm:$0xff]  }
 0x40f   :  { %v6216_v38 = vadd.f32 %v11457_v55, %v6119_v58  ;;  %v9260_v58 = vld [vmem:[%s11773_s1 + $0x198] sm:$0xff]  }
 0x412   :  { %v6285_v45 = vpop.f32.mrb[132].mxu1 }
 0x413   :  { %v6308_v39 = vadd.f32 %v6285_v45, %v6211_v23  ;;  %v8968_v8 = vpop.f32.mrb[133].mxu1 }
 0x414   :  { %v6288_v42 = vpop.f32.mrb[134].mxu1 }
 0x415   :  { %v6314_v48 = vadd.f32 %v6308_v39, %v4301_v62  ;;  %v6309_v56 = vadd.f32 %v6288_v42, %v6212_v31  ;;  %v8969_v29 = vpop.f32.mrb[135].mxu1  ;;  %v9262_v39 = vld [vmem:[%s11773_s1 + $0x1c8] sm:$0xff]   ;;  %v9263_v42 = vld [vmem:[%s11773_s1 + $0x1d0] sm:$0xff]  }
 0x417   :  { %v6320_v40 = vmax.f32 %v6314_v48, 0.0  ;;  %v6315_v0 = vadd.f32 %v6309_v56, %v4301_v62  ;;  %v9264_v48 = vld [vmem:[%s11773_s1 + $0x1d8] sm:$0xff]   ;;  %v9265_v56 = vld [vmem:[%s11773_s1 + $0x1e0] sm:$0xff]  }
 0x419   :  { %6327 = vst.msk [vmem:[#allocation3] sm:$0xff] %vm6326_vm3, %v6320_v40  ;;  %v6321_v18 = vmax.f32 %v6315_v0, 0.0 }
 0x41a   :  { %v6293_v20 = vpop.f32.mrb[136].mxu1 }
 0x41b   :  { %6328 = vst.msk [vmem:[#allocation3 + $0x8] sm:$0xff] %vm6326_vm3, %v6321_v18  ;;  %v6310_v55 = vadd.f32 %v6293_v20, %v6213_v22  ;;  %v8972_v59 = vpop.f32.mrb[137].mxu1 }
 0x41c   :  { %v6296_v43 = vpop.f32.mrb[138].mxu1 }
 0x41d   :  { %v6316_v41 = vadd.f32 %v6310_v55, %v4301_v62  ;;  %v6311_v35 = vadd.f32 %v6296_v43, %v6214_v30  ;;  %v8973_v63 = vpop.f32.mrb[139].mxu1  ;;  %v9266_v55 = vld [vmem:[%s11773_s1 + $0x1e8] sm:$0xff]   ;;  %v9267_v43 = vld [vmem:[%s11773_s1 + $0x1f0] sm:$0xff]  }
 0x41f   :  { %v6322_v19 = vmax.f32 %v6316_v41, 0.0  ;;  %v6317_v47 = vadd.f32 %v6311_v35, %v4301_v62  ;;  %v9268_v41 = vld [vmem:[%s11773_s1 + $0x1f8] sm:$0xff]   ;;  %v9269_v35 = vld [vmem:[%s11773_s1 + $0x200] sm:$0xff]  }
 0x420   :  { %v6334_v30 = vld [vmem:[#allocation3] sm:$0xff] }
 0x421   :  { %6329 = vst.msk [vmem:[#allocation3 + $0x10] sm:$0xff] %vm6326_vm3, %v6322_v19  ;;  %v6323_v28 = vmax.f32 %v6317_v47, 0.0 }
 0x422   :  { %v6301_v24 = vpop.f32.mrb[140].mxu1  ;;  %v6348_v31 = vld [vmem:[#allocation3 + $0x1] sm:$0xff] }
 0x423   :  { %6330 = vst.msk [vmem:[#allocation3 + $0x18] sm:$0xff] %vm6326_vm3, %v6323_v28  ;;  %v6312_v32 = vadd.f32 %v6301_v24, %v6215_v21  ;;  %v8976_v49 = vpop.f32.mrb[141].mxu1  ;;  %v11497_v25 = vld [vmem:[#allocation3 + $0x8] sm:$0xff]  ;;  %v9270_v28 = vld [vmem:[%s11773_s1 + $0x208] sm:$0xff]  }
 0x424   :  { %v6304_v54 = vpop.f32.mrb[142].mxu1  ;;  %v6338_v17 = vpack.c.bf16 %v11497_v25, %v6334_v30  ;;  %v6520_v45 = vld [vmem:[#allocation3 + $0x2] sm:$0xff]  ;;  %v9272_v49 = vld [vmem:[%s11773_s1 + $0x218] sm:$0xff]  }
 0x425   :  { %v6318_v37 = vadd.f32 %v6312_v32, %v4301_v62  ;;  %v6313_v53 = vadd.f32 %v6304_v54, %v6216_v38  ;;  %v8977_v46 = vpop.f32.mrb[143].mxu1  ;;  %v6617_v20 = vld [vmem:[#allocation3 + $0x7] sm:$0xff]  ;;  %v9273_v54 = vld [vmem:[%s11773_s1 + $0x220] sm:$0xff]  }
 0x426   :  { %v9271_v32 = vld [vmem:[%s11773_s1 + $0x210] sm:$0xff]  }
 0x427   :  { %v6324_v51 = vmax.f32 %v6318_v37, 0.0  ;;  %v6319_v23 = vadd.f32 %v6313_v53, %v4301_v62 }
 0x428   :  { %v11493_v60 = vld [vmem:[#allocation3 + $0x9] sm:$0xff] }
 0x429   :  { %6331 = vst.msk [vmem:[#allocation3 + $0x20] sm:$0xff] %vm6326_vm3, %v6324_v51  ;;  %v6325_v36 = vmax.f32 %v6319_v23, 0.0  ;;  %v6352_v50 = vpack.c.bf16 %v11493_v60, %v6348_v31  ;;  %v6521_v21 = vld [vmem:[#allocation3 + $0xa] sm:$0xff]  ;;  %v9274_v51 = vld [vmem:[%s11773_s1 + $0x228] sm:$0xff]  }
 0x42a   :  { %v11499_v61 = vld [vmem:[#allocation3 + $0x11] sm:$0xff]  ;;  %v6351_v52 = vld [vmem:[#allocation3 + $0x19] sm:$0x1]  ;;  %v6524_v8 = vpack.c.bf16 %v6521_v21, %v6520_v45  ;;  %v6523_v40 = vld [vmem:[#allocation3 + $0x1a] sm:$0x1] }
 0x42b   :  { %6333 = vst.msk [vmem:[#allocation3 + $0x28] sm:$0x1] %vm6332_vm4, %v6325_v36  ;;  %8986 = vmatprep.mubr.msk.bf16.mxu0 %vm6326_vm3, %v6352_v50  ;;  %v6353_v22 = vpack.c.bf16 %v6351_v52, %v11499_v61  ;;  %v6815_v27 = vpack.c.bf16 %v11499_v61, %v11493_v60  ;;  %v11522_v38 = vld [vmem:[#allocation3 + $0x10] sm:$0xff]  ;;  %v6620_v19 = vld [vmem:[#allocation3 + $0x1f] sm:$0x1]  ;;  %v9275_v23 = vld [vmem:[%s11773_s1 + $0x230] sm:$0xff]  }
 0x42c   :  { %v6522_v29 = vld [vmem:[#allocation3 + $0x12] sm:$0xff]  ;;  %v6718_v24 = vpack.c.bf16 %v11522_v38, %v11497_v25 }
 0x42d   :  { %8987 = vmatmul.mubr.msk.bf16.vlgmr.msra.gmra.mrb[100].mxu0 %vm6326_vm3, %v6353_v22  ;;  %v11539_v0 = vld [vmem:[#allocation3 + $0xf] sm:$0xff]  ;;  %v6525_v18 = vpack.c.bf16 %v6523_v40, %v6522_v29  ;;  %v11556_v63 = vld [vmem:[#allocation3 + $0x17] sm:$0xff]  ;;  %v9278_v22 = vld [vmem:[%s11773_s1 + $0x248] sm:$0xff]  }
 0x42e   :  { %8991 = vmatpush3.bf16.msra.mxu0 %v11455_v57  ;;  %8998 = vmatprep.mubr.msk.bf16.mxu0 %vm6326_vm3, %v6338_v17  ;;  %v6337_v57 = vld [vmem:[#allocation3 + $0x18] sm:$0x1]  ;;  %v6621_v59 = vpack.c.bf16 %v11539_v0, %v6617_v20  ;;  %v6622_v47 = vpack.c.bf16 %v6620_v19, %v11556_v63  ;;  %v9276_v31 = vld [vmem:[%s11773_s1 + $0x238] sm:$0xff]   ;;  %v7009_v21 = vpack.c.bf16 %v11556_v63, %v11539_v0  ;;  %v9287_v40 = vld [vmem:[%s11773_s1 + $0x290] sm:$0xff]   ;;  %v9319_v63 = vmov 1966171168  }
 0x42f   :  { %8992 = vmatprep.subr.bf16.mxu0 %v9258_v44  ;;  %v6339_v62 = vpack.c.bf16 %v6337_v57, %v11522_v38  ;;  %v11575_v53 = vld [vmem:[#allocation3 + $0x18] sm:$0xff]  ;;  %v6908_v52 = vld [vmem:[#allocation3 + $0xe] sm:$0xff]  ;;  %v9282_v57 = vld [vmem:[%s11773_s1 + $0x268] sm:$0xff]   ;;  %v7227_v19 = vunpack.c.l.s4 %v9319_v63 }
 0x430   :  { %v6717_v37 = vld [vmem:[#allocation3 + $0x20] sm:$0x1]  ;;  %v9277_v36 = vld [vmem:[%s11773_s1 + $0x240] sm:$0xff]   ;;  %v6814_v50 = vld [vmem:[#allocation3 + $0x21] sm:$0x1]  ;;  %v7106_v29 = vpack.c.bf16 %v11575_v53, %v11522_v38 }
 0x431   :  { %v6719_v46 = vpack.c.bf16 %v6717_v37, %v11575_v53  ;;  %v6813_v60 = vld [vmem:[#allocation3 + $0x19] sm:$0xff]  ;;  %v9284_v45 = vld [vmem:[%s11773_s1 + $0x278] sm:$0xff]  }
 0x432   :  { %8993 = vmatpush3.bf16.msra.mxu0 %v9258_v44  ;;  %v6909_v25 = vld [vmem:[#allocation3 + $0x16] sm:$0xff]  ;;  %v6816_v61 = vpack.c.bf16 %v6814_v50, %v6813_v60  ;;  %v9279_v44 = vld [vmem:[%s11773_s1 + $0x250] sm:$0xff]   ;;  %v7104_v38 = vld [vmem:[#allocation3 + $0x20] sm:$0xff] }
 0x433   :  { %8994 = vmatprep.subr.bf16.mxu0 %v9259_v26  ;;  %v6912_v30 = vpack.c.bf16 %v6909_v25, %v6908_v52  ;;  %v9281_v17 = vld [vmem:[%s11773_s1 + $0x260] sm:$0xff]   ;;  %v9288_v0 = vld [vmem:[%s11773_s1 + $0x298] sm:$0xff]  }
 0x436   :  { %8995 = vmatpush3.bf16.msra.mxu0 %v9259_v26  ;;  %v6910_v26 = vld [vmem:[#allocation3 + $0x1e] sm:$0xff] }
 0x437   :  { %8996 = vmatprep.subr.bf16.mxu0 %v9260_v58 }
 0x43a   :  { %8997 = vmatpush3.bf16.msra.mxu0 %v9260_v58  ;;  %v6911_v58 = vld [vmem:[#allocation3 + $0x26] sm:$0x1] }
 0x43b   :  { %9002 = vmatprep.subr.bf16.mxu0 %v9261_v34 }
 0x43d   :  { %8999 = vmatmul.mubr.msk.bf16.vlgmr.msra.gmra.mrb[100].mxu0 %vm6326_vm3, %v6339_v62  ;;  %v9283_v62 = vld [vmem:[%s11773_s1 + $0x270] sm:$0xff]  }
 0x43e   :  { %9003 = vmatpush3.bf16.msra.mxu0 %v9261_v34  ;;  %9010 = vmatprep.mubr.msk.bf16.mxu0 %vm6326_vm3, %v6524_v8  ;;  %v6913_v34 = vpack.c.bf16 %v6911_v58, %v6910_v26  ;;  %v7007_v8 = vld [vmem:[#allocation3 + $0x1f] sm:$0xff] }
 0x43f   :  { %9004 = vmatprep.subr.bf16.mxu0 %v9262_v39 }
 0x442   :  { %9005 = vmatpush3.bf16.msra.mxu0 %v9262_v39  ;;  %v9285_v39 = vld [vmem:[%s11773_s1 + $0x280] sm:$0xff]  }
 0x443   :  { %9006 = vmatprep.subr.bf16.mxu0 %v9263_v42 }
 0x446   :  { %9007 = vmatpush3.bf16.msra.mxu0 %v9263_v42  ;;  %v7008_v42 = vld [vmem:[#allocation3 + $0x27] sm:$0x1] }
 0x447   :  { %9008 = vmatprep.subr.bf16.mxu0 %v9264_v48 }
 0x44a   :  { %9009 = vmatpush3.bf16.msra.mxu0 %v9264_v48  ;;  %v7010_v48 = vpack.c.bf16 %v7008_v42, %v7007_v8 }
 0x44b   :  { %9014 = vmatprep.subr.bf16.mxu0 %v9265_v56 }
 0x44d   :  { %9011 = vmatmul.mubr.msk.bf16.vlgmr.msra.gmra.mrb[100].mxu0 %vm6326_vm3, %v6525_v18  ;;  %v7105_v18 = vld [vmem:[#allocation3 + $0x28] sm:$0x1] }
 0x44e   :  { %9015 = vmatpush3.bf16.msra.mxu0 %v9265_v56  ;;  %9022 = vmatprep.mubr.msk.bf16.mxu0 %vm6326_vm3, %v6621_v59  ;;  %v9286_v56 = vld [vmem:[%s11773_s1 + $0x288] sm:$0xff]   ;;  %v7107_v20 = vpack.c.bf16 %v7105_v18, %v7104_v38 }
 0x44f   :  { %9016 = vmatprep.subr.bf16.mxu0 %v9266_v55 }
 0x452   :  { %9017 = vmatpush3.bf16.msra.mxu0 %v9266_v55  ;;  %v4302_v55 = vld [vmem:[%s11774_s2 + $0x2] ss:$0 sm:$0xff] }
 0x453   :  { %9018 = vmatprep.subr.bf16.mxu0 %v9267_v43 }
 0x456   :  { %9019 = vmatpush3.bf16.msra.mxu0 %v9267_v43 }
 0x457   :  { %9020 = vmatprep.subr.bf16.mxu0 %v9268_v41 }
 0x45a   :  { %9021 = vmatpush3.bf16.msra.mxu0 %v9268_v41 }
 0x45b   :  { %9026 = vmatprep.subr.bf16.mxu0 %v9269_v35 }
 0x45d   :  { %9023 = vmatmul.mubr.msk.bf16.vlgmr.msra.gmra.mrb[100].mxu0 %vm6326_vm3, %v6622_v47 }
 0x45e   :  { %9027 = vmatpush3.bf16.msra.mxu0 %v9269_v35  ;;  %9034 = vmatprep.mubr.msk.bf16.mxu0 %vm6326_vm3, %v6718_v24  ;;  %v7212_v35 = vlaneseq }
 0x45f   :  { %9028 = vmatprep.subr.bf16.mxu0 %v9270_v28 }
 0x460   :  { %vm11649_vm5 = vcmp.lt.s32.totalorder %v7212_v35, 64  ;;  %vm7236_vm6 = vcmp.ge.s32.totalorder %v7212_v35, 64  ;;  %vm7237_vm7 = vcmp.lt.s32.totalorder %v7212_v35, 128 }
 0x461   :  { %vm11669_vm8 = vmand %vm7236_vm6, %vm7237_vm7 }
 0x462   :  { %9029 = vmatpush3.bf16.msra.mxu0 %v9270_v28 }
 0x463   :  { %9030 = vmatprep.subr.bf16.mxu0 %v9271_v32 }
 0x466   :  { %9031 = vmatpush3.bf16.msra.mxu0 %v9271_v32 }
 0x467   :  { %9032 = vmatprep.subr.bf16.mxu0 %v9272_v49 }
 0x46a   :  { %9033 = vmatpush3.bf16.msra.mxu0 %v9272_v49 }
 0x46b   :  { %9038 = vmatprep.subr.bf16.mxu0 %v9273_v54 }
 0x46d   :  { %9035 = vmatmul.mubr.msk.bf16.vlgmr.msra.gmra.mrb[100].mxu0 %vm6326_vm3, %v6719_v46  ;;  %v7228_v46 = vunpack.c.0.s8 %v7227_v19 }
 0x46e   :  { %9039 = vmatpush3.bf16.msra.mxu0 %v9273_v54  ;;  %9046 = vmatprep.mubr.msk.bf16.mxu0 %vm6326_vm3, %v6815_v27  ;;  %v9280_v27 = vld [vmem:[%s11773_s1 + $0x258] sm:$0xff]   ;;  %s9320_s1 = smov 64  }
 0x46f   :  { %9040 = vmatprep.subr.bf16.mxu0 %v9274_v51 }
 0x472   :  { %9041 = vmatpush3.bf16.msra.mxu0 %v9274_v51  ;;  %v11643_v51 = vshrl.u32 %v7212_v35, 7 }
 0x473   :  { %9042 = vmatprep.subr.bf16.mxu0 %v9275_v23 }
 0x476   :  { %9043 = vmatpush3.bf16.msra.mxu0 %v9275_v23 }
 0x477   :  { %9044 = vmatprep.subr.bf16.mxu0 %v9276_v31 }
 0x47a   :  { %9045 = vmatpush3.bf16.msra.mxu0 %v9276_v31  ;;  %v7231_v31 = vsub.s32 %v7228_v46, %v11643_v51 }
 0x47b   :  { %9050 = vmatprep.subr.bf16.mxu0 %v9277_v36 }
 0x47d   :  { %9047 = vmatmul.mubr.msk.bf16.vlgmr.msra.gmra.mrb[100].mxu0 %vm6326_vm3, %v6816_v61 }
 0x47e   :  { %9051 = vmatpush3.bf16.msra.mxu0 %v9277_v36  ;;  %9058 = vmatprep.mubr.msk.bf16.mxu0 %vm6326_vm3, %v6912_v30 }
 0x47f   :  { %9052 = vmatprep.subr.bf16.mxu0 %v9278_v22 }
 0x482   :  { %9053 = vmatpush3.bf16.msra.mxu0 %v9278_v22 }
 0x483   :  { %9054 = vmatprep.subr.bf16.mxu0 %v9279_v44 }
 0x486   :  { %9055 = vmatpush3.bf16.msra.mxu0 %v9279_v44 }
 0x487   :  { %9056 = vmatprep.subr.bf16.mxu0 %v9280_v27 }
 0x48a   :  { %9057 = vmatpush3.bf16.msra.mxu0 %v9280_v27 }
 0x48b   :  { %9062 = vmatprep.subr.bf16.mxu0 %v9281_v17 }
 0x48d   :  { %9059 = vmatmul.mubr.msk.bf16.vlgmr.msra.gmra.mrb[100].mxu0 %vm6326_vm3, %v6913_v34 }
 0x48e   :  { %9063 = vmatpush3.bf16.msra.mxu0 %v9281_v17  ;;  %9070 = vmatprep.mubr.msk.bf16.mxu0 %vm6326_vm3, %v7009_v21 }
 0x48f   :  { %9064 = vmatprep.subr.bf16.mxu0 %v9282_v57 }
 0x492   :  { %9065 = vmatpush3.bf16.msra.mxu0 %v9282_v57 }
 0x493   :  { %9066 = vmatprep.subr.bf16.mxu0 %v9283_v62 }
 0x496   :  { %9067 = vmatpush3.bf16.msra.mxu0 %v9283_v62 }
 0x497   :  { %9068 = vmatprep.subr.bf16.mxu0 %v9284_v45 }
 0x49a   :  { %9069 = vmatpush3.bf16.msra.mxu0 %v9284_v45 }
 0x49b   :  { %9074 = vmatprep.subr.bf16.mxu0 %v9285_v39 }
 0x49d   :  { %9071 = vmatmul.mubr.msk.bf16.vlgmr.msra.gmra.mrb[100].mxu0 %vm6326_vm3, %v7010_v48 }
 0x49e   :  { %9075 = vmatpush3.bf16.msra.mxu0 %v9285_v39  ;;  %9082 = vmatprep.mubr.msk.bf16.mxu0 %vm6326_vm3, %v7106_v29 }
 0x49f   :  { %9076 = vmatprep.subr.bf16.mxu0 %v9286_v56 }
 0x4a2   :  { %9077 = vmatpush3.bf16.msra.mxu0 %v9286_v56 }
 0x4a3   :  { %9078 = vmatprep.subr.bf16.mxu0 %v9287_v40 }
 0x4a6   :  { %9079 = vmatpush3.bf16.msra.mxu0 %v9287_v40 }
 0x4a7   :  { %9080 = vmatprep.subr.bf16.mxu0 %v9288_v0 }
 0x4aa   :  { %9081 = vmatpush3.bf16.msra.mxu0 %v9288_v0 }
 0x4ad   :  { %9083 = vmatmul.mubr.msk.bf16.vlgmr.msra.gmra.mrb[100].mxu0 %vm6326_vm3, %v7107_v20 }
 0x580   :  { %v9084_v59 = vpop.f32.mrb[100].mxu0 }
 0x581   :  { %v7201_v43 = vadd.f32 %v9084_v59, %v4302_v55  ;;  %v7180_v41 = vpop.f32.mrb[101].mxu0 }
 0x582   :  { %v7199_v47 = vadd.f32 %v7180_v41, %v4302_v55  ;;  %v9085_v28 = vpop.f32.mrb[102].mxu0 }
 0x583   :  { %v7205_v24 = vmax.f32 %v7201_v43, 0.0  ;;  %v7202_v32 = vadd.f32 %v9085_v28, %v4302_v55  ;;  %v7183_v49 = vpop.f32.mrb[103].mxu0 }
 0x584   :  { %v7203_v54 = vmax.f32 %v7199_v47, 0.0  ;;  %v7200_v37 = vadd.f32 %v7183_v49, %v4302_v55 }
 0x585   :  { %7209 = vst.msk [vmem:[#allocation4 + $0x10] sm:$0xff] %vm6326_vm3, %v7205_v24  ;;  %v7206_v53 = vmax.f32 %v7202_v32, 0.0 }
 0x586   :  { %7207 = vst.msk [vmem:[#allocation4] sm:$0xff] %vm6326_vm3, %v7203_v54  ;;  %v7204_v23 = vmax.f32 %v7200_v37, 0.0 }
 0x587   :  { %7210 = vst.msk [vmem:[#allocation4 + $0x18] sm:$0x1] %vm6332_vm4, %v7206_v53 }
 0x588   :  { %7208 = vst.msk [vmem:[#allocation4 + $0x8] sm:$0xff] %vm6326_vm3, %v7204_v23 }
 0x58c   :  { %v8445_v60 = vld.sshfl [vmem:[#allocation4 + $0x11] sm:$0x1 pattern:$0x75316420]  ;;  %v7328_v50 = vld [vmem:[#allocation4 + $0x10] sm:$0x1] }
 0x58d   :  { %v7345_v25 = vrot.slane %v8445_v60, %v7231_v31  ;;  %v8440_v61 = vld.sshfl [vmem:[#allocation4 + $0x1] sm:$0x1 pattern:$0x75316420]  ;;  %7329 = vst.msk [vmem:[#allocation5 + $0x5] sm:$0x1] %vm11649_vm5, %v7328_v50 }
 0x58e   :  { %v7211_v52 = vld [vmem:[#allocation4] sm:$0x1]  ;;  %v7232_v22 = vrot.slane %v8440_v61, %v7231_v31  ;;  %v8441_v30 = vld.sshfl [vmem:[#allocation4 + $0x3] sm:$0x1 pattern:$0x75316420] }
 0x58f   :  { %7216 = vst.msk [vmem:[#allocation5] sm:$0x1] %vm11649_vm5, %v7211_v52  ;;  %v7262_v44 = vld [vmem:[#allocation4 + $0x7] sm:$0x1]  ;;  %7346 = vrot.lane.b32.xlu1 %v7345_v25, %s9320_s1  ;;  %v7240_v17 = vld [vmem:[#allocation4 + $0x2] sm:$0x1]  ;;  %v7257_v57 = vrot.slane %v8441_v30, %v7231_v31 }
 0x590   :  { %v8442_v27 = vld.sshfl [vmem:[#allocation4 + $0x8] sm:$0x1 pattern:$0x75316420]  ;;  %7263 = vst.msk [vmem:[#allocation5 + $0x2] sm:$0x1] %vm11649_vm5, %v7262_v44  ;;  %7233 = vrot.lane.b32.xlu0 %v7232_v22, %s9320_s1 }
 0x591   :  { %v7279_v26 = vrot.slane %v8442_v27, %v7231_v31  ;;  %7241 = vst.msk [vmem:[#allocation5 + $0x1] sm:$0x1] %vm11649_vm5, %v7240_v17  ;;  %v7284_v58 = vld [vmem:[#allocation4 + $0x9] sm:$0x1]  ;;  %v7306_v34 = vld [vmem:[#allocation4 + $0xe] sm:$0x1] }
 0x592   :  { %7285 = vst.msk [vmem:[#allocation5 + $0x3] sm:$0x1] %vm11649_vm5, %v7284_v58  ;;  %v8443_v21 = vld.sshfl [vmem:[#allocation4 + $0xa] sm:$0x1 pattern:$0x75316420] }
 0x593   :  { %7307 = vst.msk [vmem:[#allocation5 + $0x4] sm:$0x1] %vm11649_vm5, %v7306_v34  ;;  %v7372_v62 = vld [vmem:[#allocation4 + $0x17] sm:$0x1]  ;;  %7280 = vrot.lane.b32.xlu1 %v7279_v26, %s9320_s1  ;;  %v7350_v39 = vld [vmem:[#allocation4 + $0x15] sm:$0x1]  ;;  %v7301_v8 = vrot.slane %v8443_v21, %v7231_v31 }
 0x594   :  { %v8444_v45 = vld.sshfl [vmem:[#allocation4 + $0xf] sm:$0x1 pattern:$0x75316420]  ;;  %7373 = vst.msk [vmem:[#allocation5 + $0x7] sm:$0x1] %vm11649_vm5, %v7372_v62  ;;  %7258 = vrot.lane.b32.xlu0 %v7257_v57, %s9320_s1 }
 0x595   :  { %7351 = vst.msk [vmem:[#allocation5 + $0x6] sm:$0x1] %vm11649_vm5, %v7350_v39  ;;  %v7323_v42 = vrot.slane %v8444_v45, %v7231_v31  ;;  %v8447_v48 = vld.sshfl [vmem:[#allocation4 + $0x18] sm:$0x1 pattern:$0x75316420] }
 0x596   :  { %v8446_v56 = vld.sshfl [vmem:[#allocation4 + $0x16] sm:$0x1 pattern:$0x75316420]  ;;  %v7389_v29 = vrot.slane %v8447_v48, %v7231_v31 }
 0x597   :  { %7302 = vrot.lane.b32.xlu1 %v7301_v8, %s9320_s1  ;;  %v7367_v40 = vrot.slane %v8446_v56, %v7231_v31 }
 0x598   :  { %7324 = vrot.lane.b32.xlu0 %v7323_v42, %s9320_s1 }
 0x59b   :  { %7390 = vrot.lane.b32.xlu1 %v7389_v29, %s9320_s1 }
 0x59c   :  { %7368 = vrot.lane.b32.xlu0 %v7367_v40, %s9320_s1 }
 0x601   :  { %v7347_v18 = vpop.permute.xlu1 %7346 }
 0x602   :  { %7349 = vst.msk [vmem:[#allocation5 + $0x5] sm:$0x1] %vm11669_vm8, %v7347_v18  ;;  %v7234_v38 = vpop.permute.xlu0 %7233 }
 0x603   :  { %7239 = vst.msk [vmem:[#allocation5] sm:$0x1] %vm11669_vm8, %v7234_v38 }
 0x605   :  { %v7281_v20 = vpop.permute.xlu1 %7280 }
 0x606   :  { %7283 = vst.msk [vmem:[#allocation5 + $0x2] sm:$0x1] %vm11669_vm8, %v7281_v20  ;;  %v7259_v55 = vpop.permute.xlu0 %7258 }
 0x607   :  { %7261 = vst.msk [vmem:[#allocation5 + $0x1] sm:$0x1] %vm11669_vm8, %v7259_v55 }
 0x609   :  { %v7303_v59 = vpop.permute.xlu1 %7302 }
 0x60a   :  { %7305 = vst.msk [vmem:[#allocation5 + $0x3] sm:$0x1] %vm11669_vm8, %v7303_v59  ;;  %v7325_v43 = vpop.permute.xlu0 %7324 }
 0x60b   :  { %7327 = vst.msk [vmem:[#allocation5 + $0x4] sm:$0x1] %vm11669_vm8, %v7325_v43 }
 0x60d   :  { %v7391_v41 = vpop.permute.xlu1 %7390 }
 0x60e   :  { %7393 = vst.msk [vmem:[#allocation5 + $0x7] sm:$0x1] %vm11669_vm8, %v7391_v41  ;;  %v7369_v35 = vpop.permute.xlu0 %7368 }
 0x60f   :  { %7371 = vst.msk [vmem:[#allocation5 + $0x6] sm:$0x1] %vm11669_vm8, %v7369_v35 }
 0x610   :  { %9311 = dma.done.wait [#allocation8], 32768 }
 0x611   :  { %9312 = vsyncadd [#allocation8], 4294934528  ;;  %v7449_v63 = vld [vmem:[#allocation6 + $0x8] sm:$0xff]  ;;  %v7451_v19 = vld [vmem:[#allocation6 + $0x18] sm:$0xff]  ;;  %v7406_v27 = vsub.s32 1, %v11643_v51 }
 0x612   :  { %v7448_v47 = vld [vmem:[#allocation6] sm:$0xff]  ;;  %7725 = vmatprep.subr.bf16.mxu1 %v7449_v63  ;;  %7889 = vmatprep.subr.bf16.mxu0 %v7451_v19  ;;  %v7450_v28 = vld [vmem:[#allocation6 + $0x10] sm:$0xff]  ;;  %v7453_v24 = vld [vmem:[#allocation6 + $0x28] sm:$0xff] }
 0x613   :  { %v7455_v32 = vld [vmem:[#allocation6 + $0x38] sm:$0xff]  ;;  %7726 = vmatpush1.bf16.msra.mxu1 %v7448_v47  ;;  %7890 = vmatpush1.bf16.msra.mxu0 %v7450_v28  ;;  %v7452_v49 = vld [vmem:[#allocation6 + $0x20] sm:$0xff]  ;;  %v7454_v54 = vld [vmem:[#allocation6 + $0x30] sm:$0xff] }
 0x614   :  { %7727 = vmatprep.subr.bf16.mxu1 %v7453_v24  ;;  %7891 = vmatprep.subr.bf16.mxu0 %v7455_v32  ;;  %v7457_v37 = vld [vmem:[#allocation6 + $0x48] sm:$0xff]  ;;  %v7459_v53 = vld [vmem:[#allocation6 + $0x58] sm:$0xff]  ;;  %v7456_v46 = vld [vmem:[#allocation6 + $0x40] sm:$0xff] }
 0x615   :  { %v7458_v23 = vld [vmem:[#allocation6 + $0x50] sm:$0xff]  ;;  %v7461_v31 = vld [vmem:[#allocation6 + $0x68] sm:$0xff]  ;;  %v7463_v36 = vld [vmem:[#allocation6 + $0x78] sm:$0xff] }
 0x616   :  { %v7460_v60 = vld [vmem:[#allocation6 + $0x60] sm:$0xff]  ;;  %v7462_v50 = vld [vmem:[#allocation6 + $0x70] sm:$0xff]  ;;  %v7465_v25 = vld [vmem:[#allocation6 + $0x88] sm:$0xff] }
 0x617   :  { %7728 = vmatpush1.bf16.msra.mxu1 %v7452_v49  ;;  %7892 = vmatpush1.bf16.msra.mxu0 %v7454_v54  ;;  %v7467_v61 = vld [vmem:[#allocation6 + $0x98] sm:$0xff]  ;;  %v7464_v52 = vld [vmem:[#allocation6 + $0x80] sm:$0xff]  ;;  %v7466_v22 = vld [vmem:[#allocation6 + $0x90] sm:$0xff] }
 0x618   :  { %7729 = vmatprep.subr.bf16.mxu1 %v7457_v37  ;;  %7893 = vmatprep.subr.bf16.mxu0 %v7459_v53  ;;  %v7469_v30 = vld [vmem:[#allocation6 + $0xa8] sm:$0xff]  ;;  %v7471_v44 = vld [vmem:[#allocation6 + $0xb8] sm:$0xff]  ;;  %v7468_v17 = vld [vmem:[#allocation6 + $0xa0] sm:$0xff] }
 0x619   :  { %v7470_v26 = vld [vmem:[#allocation6 + $0xb0] sm:$0xff]  ;;  %v7473_v58 = vld [vmem:[#allocation6 + $0xc8] sm:$0xff]  ;;  %v7475_v34 = vld [vmem:[#allocation6 + $0xd8] sm:$0xff] }
 0x61a   :  { %v11690_v57 = vld [vmem:[#allocation5] sm:$0xff]  ;;  %v7472_v62 = vld [vmem:[#allocation6 + $0xc0] sm:$0xff]  ;;  %v7474_v45 = vld [vmem:[#allocation6 + $0xd0] sm:$0xff] }
 0x61b   :  { %7730 = vmatpush1.bf16.msra.mxu1 %v7456_v46  ;;  %7894 = vmatpush1.bf16.msra.mxu0 %v7458_v23  ;;  %v7407_v21 = vrot.slane %v11690_v57, %v7406_v27  ;;  %v7477_v39 = vld [vmem:[#allocation6 + $0xe8] sm:$0xff]  ;;  %v7479_v8 = vld [vmem:[#allocation6 + $0xf8] sm:$0xff]  ;;  %v7476_v48 = vld [vmem:[#allocation6 + $0xe0] sm:$0xff] }
 0x61c   :  { %7731 = vmatprep.subr.bf16.mxu1 %v7461_v31  ;;  %7895 = vmatprep.subr.bf16.mxu0 %v7463_v36  ;;  %v7478_v56 = vld [vmem:[#allocation6 + $0xf0] sm:$0xff]  ;;  %v7481_v29 = vld [vmem:[#allocation6 + $0x108] sm:$0xff]  ;;  %v7483_v40 = vld [vmem:[#allocation6 + $0x118] sm:$0xff] }
 0x61d   :  { %v7441_v42 = vpack.c.bf16 %v7407_v21, %v7407_v21  ;;  %v7480_v0 = vld [vmem:[#allocation6 + $0x100] sm:$0xff]  ;;  %v7482_v18 = vld [vmem:[#allocation6 + $0x110] sm:$0xff]  ;;  %v7485_v38 = vld [vmem:[#allocation6 + $0x128] sm:$0xff] }
 0x61e   :  { %v7487_v20 = vld [vmem:[#allocation6 + $0x138] sm:$0xff]  ;;  %v7484_v55 = vld [vmem:[#allocation6 + $0x120] sm:$0xff]  ;;  %v7486_v59 = vld [vmem:[#allocation6 + $0x130] sm:$0xff] }
 0x61f   :  { %7732 = vmatpush1.bf16.msra.mxu1 %v7460_v60  ;;  %7896 = vmatpush1.bf16.msra.mxu0 %v7462_v50  ;;  %v7489_v43 = vld [vmem:[#allocation6 + $0x148] sm:$0xff]  ;;  %v7491_v41 = vld [vmem:[#allocation6 + $0x158] sm:$0xff]  ;;  %v7488_v35 = vld [vmem:[#allocation6 + $0x140] sm:$0xff]  ;;  %v7402_v50 = vsub.s32 0, %v11643_v51 }
 0x620   :  { %7733 = vmatprep.subr.bf16.mxu1 %v7465_v25  ;;  %7897 = vmatprep.subr.bf16.mxu0 %v7467_v61  ;;  %v7490_v63 = vld [vmem:[#allocation6 + $0x150] sm:$0xff]  ;;  %v7493_v19 = vld [vmem:[#allocation6 + $0x168] sm:$0xff]  ;;  %v7495_v47 = vld [vmem:[#allocation6 + $0x178] sm:$0xff] }
 0x621   :  { %7757 = vmatprep.mubr.bf16.mxu1 %v7441_v42  ;;  %7921 = vmatprep.mubr.bf16.mxu0 %v7441_v42  ;;  %v7492_v28 = vld [vmem:[#allocation6 + $0x160] sm:$0xff]  ;;  %v7494_v24 = vld [vmem:[#allocation6 + $0x170] sm:$0xff]  ;;  %v7497_v32 = vld [vmem:[#allocation6 + $0x188] sm:$0xff] }
 0x622   :  { %v7499_v49 = vld [vmem:[#allocation6 + $0x198] sm:$0xff]  ;;  %v7496_v54 = vld [vmem:[#allocation6 + $0x180] sm:$0xff]  ;;  %v7498_v37 = vld [vmem:[#allocation6 + $0x190] sm:$0xff] }
 0x623   :  { %7734 = vmatpush1.bf16.msra.mxu1 %v7464_v52  ;;  %7898 = vmatpush1.bf16.msra.mxu0 %v7466_v22  ;;  %v7501_v53 = vld [vmem:[#allocation6 + $0x1a8] sm:$0xff]  ;;  %v7503_v46 = vld [vmem:[#allocation6 + $0x1b8] sm:$0xff]  ;;  %v7500_v23 = vld [vmem:[#allocation6 + $0x1a0] sm:$0xff] }
 0x624   :  { %7735 = vmatprep.subr.bf16.mxu1 %v7469_v30  ;;  %7899 = vmatprep.subr.bf16.mxu0 %v7471_v44  ;;  %v7502_v31 = vld [vmem:[#allocation6 + $0x1b0] sm:$0xff]  ;;  %v7505_v36 = vld [vmem:[#allocation6 + $0x1c8] sm:$0xff]  ;;  %v7507_v60 = vld [vmem:[#allocation6 + $0x1d8] sm:$0xff]  ;;  %v7414_v30 = vsub.s32 3, %v11643_v51  ;;  %v7403_v44 = vrot.slane %v11690_v57, %v7402_v50 }
 0x625   :  { %v7504_v25 = vld [vmem:[#allocation6 + $0x1c0] sm:$0xff]  ;;  %v7506_v61 = vld [vmem:[#allocation6 + $0x1d0] sm:$0xff]  ;;  %v7509_v52 = vld [vmem:[#allocation6 + $0x1e8] sm:$0xff] }
 0x626   :  { %v7511_v22 = vld [vmem:[#allocation6 + $0x1f8] sm:$0xff]  ;;  %v7415_v21 = vrot.slane %v11690_v57, %v7414_v30 }
 0x627   :  { %7736 = vmatpush1.bf16.msra.mxu1 %v7468_v17  ;;  %7900 = vmatpush1.bf16.msra.mxu0 %v7470_v26  ;;  %v7508_v17 = vld [vmem:[#allocation6 + $0x1e0] sm:$0xff]  ;;  %v7510_v26 = vld [vmem:[#allocation6 + $0x1f0] sm:$0xff]  ;;  %v7519_v42 = vld [vmem:[#allocation6 + $0x238] sm:$0xff] }
 0x628   :  { %7737 = vmatprep.subr.bf16.mxu1 %v7473_v58  ;;  %7901 = vmatprep.subr.bf16.mxu0 %v7475_v34  ;;  %v7513_v58 = vld [vmem:[#allocation6 + $0x208] sm:$0xff]  ;;  %v7515_v34 = vld [vmem:[#allocation6 + $0x218] sm:$0xff] }
 0x62b   :  { %7738 = vmatpush1.bf16.msra.mxu1 %v7472_v62  ;;  %7902 = vmatpush1.bf16.msra.mxu0 %v7474_v45  ;;  %v7440_v62 = vpack.c.bf16 %v7403_v44, %v7403_v44  ;;  %v7512_v45 = vld [vmem:[#allocation6 + $0x200] sm:$0xff]  ;;  %v7551_v44 = vld [vmem:[#allocation6 + $0x338] sm:$0xff] }
 0x62c   :  { %7739 = vmatprep.subr.bf16.mxu1 %v7477_v39  ;;  %7903 = vmatprep.subr.bf16.mxu0 %v7479_v8  ;;  %v7514_v39 = vld [vmem:[#allocation6 + $0x210] sm:$0xff]  ;;  %v7517_v8 = vld [vmem:[#allocation6 + $0x228] sm:$0xff] }
 0x62f   :  { %7740 = vmatpush1.bf16.msra.mxu1 %v7476_v48  ;;  %7904 = vmatpush1.bf16.msra.mxu0 %v7478_v56  ;;  %v7443_v48 = vpack.c.bf16 %v7415_v21, %v7415_v21  ;;  %v7516_v56 = vld [vmem:[#allocation6 + $0x220] sm:$0xff] }
 0x630   :  { %7741 = vmatprep.subr.bf16.mxu1 %v7481_v29  ;;  %7905 = vmatprep.subr.bf16.mxu0 %v7483_v40  ;;  %v7518_v29 = vld [vmem:[#allocation6 + $0x230] sm:$0xff]  ;;  %v7521_v40 = vld [vmem:[#allocation6 + $0x248] sm:$0xff]  ;;  %v7552_v21 = vld [vmem:[#allocation6 + $0x340] sm:$0xff] }
 0x633   :  { %7742 = vmatpush1.bf16.msra.mxu1 %v7480_v0  ;;  %7906 = vmatpush1.bf16.msra.mxu0 %v7482_v18  ;;  %v7523_v0 = vld [vmem:[#allocation6 + $0x258] sm:$0xff]  ;;  %v7520_v18 = vld [vmem:[#allocation6 + $0x240] sm:$0xff] }
 0x634   :  { %7743 = vmatprep.subr.bf16.mxu1 %v7485_v38  ;;  %7907 = vmatprep.subr.bf16.mxu0 %v7487_v20  ;;  %v7522_v38 = vld [vmem:[#allocation6 + $0x250] sm:$0xff]  ;;  %v7525_v20 = vld [vmem:[#allocation6 + $0x268] sm:$0xff] }
 0x637   :  { %7744 = vmatpush1.bf16.msra.mxu1 %v7484_v55  ;;  %7908 = vmatpush1.bf16.msra.mxu0 %v7486_v59  ;;  %v7527_v55 = vld [vmem:[#allocation6 + $0x278] sm:$0xff]  ;;  %v7524_v59 = vld [vmem:[#allocation6 + $0x260] sm:$0xff] }
 0x638   :  { %7745 = vmatprep.subr.bf16.mxu1 %v7489_v43  ;;  %7909 = vmatprep.subr.bf16.mxu0 %v7491_v41  ;;  %v7526_v43 = vld [vmem:[#allocation6 + $0x270] sm:$0xff]  ;;  %v7529_v41 = vld [vmem:[#allocation6 + $0x288] sm:$0xff] }
 0x63b   :  { %7746 = vmatpush1.bf16.msra.mxu1 %v7488_v35  ;;  %7910 = vmatpush1.bf16.msra.mxu0 %v7490_v63  ;;  %v7531_v35 = vld [vmem:[#allocation6 + $0x298] sm:$0xff]  ;;  %v7528_v63 = vld [vmem:[#allocation6 + $0x280] sm:$0xff] }
 0x63c   :  { %7747 = vmatprep.subr.bf16.mxu1 %v7493_v19  ;;  %7911 = vmatprep.subr.bf16.mxu0 %v7495_v47  ;;  %v7530_v19 = vld [vmem:[#allocation6 + $0x290] sm:$0xff]  ;;  %v7533_v47 = vld [vmem:[#allocation6 + $0x2a8] sm:$0xff] }
 0x63f   :  { %7748 = vmatpush1.bf16.msra.mxu1 %v7492_v28  ;;  %7912 = vmatpush1.bf16.msra.mxu0 %v7494_v24  ;;  %v7535_v28 = vld [vmem:[#allocation6 + $0x2b8] sm:$0xff]  ;;  %v7532_v24 = vld [vmem:[#allocation6 + $0x2a0] sm:$0xff] }
 0x640   :  { %7749 = vmatprep.subr.bf16.mxu1 %v7497_v32  ;;  %7913 = vmatprep.subr.bf16.mxu0 %v7499_v49  ;;  %v7534_v32 = vld [vmem:[#allocation6 + $0x2b0] sm:$0xff]  ;;  %v7537_v49 = vld [vmem:[#allocation6 + $0x2c8] sm:$0xff] }
 0x643   :  { %7750 = vmatpush1.bf16.msra.mxu1 %v7496_v54  ;;  %7914 = vmatpush1.bf16.msra.mxu0 %v7498_v37  ;;  %v7539_v54 = vld [vmem:[#allocation6 + $0x2d8] sm:$0xff]  ;;  %v7536_v37 = vld [vmem:[#allocation6 + $0x2c0] sm:$0xff] }
 0x644   :  { %7751 = vmatprep.subr.bf16.mxu1 %v7501_v53  ;;  %7915 = vmatprep.subr.bf16.mxu0 %v7503_v46  ;;  %v7538_v53 = vld [vmem:[#allocation6 + $0x2d0] sm:$0xff]  ;;  %v7541_v46 = vld [vmem:[#allocation6 + $0x2e8] sm:$0xff] }
 0x647   :  { %7752 = vmatpush1.bf16.msra.mxu1 %v7500_v23  ;;  %7916 = vmatpush1.bf16.msra.mxu0 %v7502_v31  ;;  %v7543_v23 = vld [vmem:[#allocation6 + $0x2f8] sm:$0xff]  ;;  %v7540_v31 = vld [vmem:[#allocation6 + $0x2e0] sm:$0xff] }
 0x648   :  { %7753 = vmatprep.subr.bf16.mxu1 %v7505_v36  ;;  %7917 = vmatprep.subr.bf16.mxu0 %v7507_v60  ;;  %v7542_v36 = vld [vmem:[#allocation6 + $0x2f0] sm:$0xff]  ;;  %v7545_v60 = vld [vmem:[#allocation6 + $0x308] sm:$0xff] }
 0x64b   :  { %7754 = vmatpush1.bf16.msra.mxu1 %v7504_v25  ;;  %7918 = vmatpush1.bf16.msra.mxu0 %v7506_v61  ;;  %v7547_v25 = vld [vmem:[#allocation6 + $0x318] sm:$0xff]  ;;  %v7544_v61 = vld [vmem:[#allocation6 + $0x300] sm:$0xff] }
 0x64c   :  { %7755 = vmatprep.subr.bf16.mxu1 %v7509_v52  ;;  %7919 = vmatprep.subr.bf16.mxu0 %v7511_v22  ;;  %v7546_v52 = vld [vmem:[#allocation6 + $0x310] sm:$0xff]  ;;  %v7549_v22 = vld [vmem:[#allocation6 + $0x328] sm:$0xff] }
 0x64f   :  { %7756 = vmatpush1.bf16.msra.mxu1 %v7508_v17  ;;  %7920 = vmatpush1.bf16.msra.mxu0 %v7510_v26  ;;  %v7548_v17 = vld [vmem:[#allocation6 + $0x320] sm:$0xff]  ;;  %v7550_v26 = vld [vmem:[#allocation6 + $0x330] sm:$0xff] }
 0x650   :  { %7766 = vmatprep.subr.bf16.mxu1 %v7513_v58  ;;  %7930 = vmatprep.subr.bf16.mxu0 %v7515_v34  ;;  %v7553_v58 = vld [vmem:[#allocation6 + $0x348] sm:$0xff]  ;;  %v7555_v34 = vld [vmem:[#allocation6 + $0x358] sm:$0xff] }
 0x652   :  { %7758 = vmatmul.mubr.bf16.vlgmr.msra.gmra.mrb[144].mxu1 %v7440_v62  ;;  %7922 = vmatmul.mubr.bf16.vlgmr.msra.gmra.mrb[104].mxu0 %v7440_v62  ;;  %v7554_v62 = vld [vmem:[#allocation6 + $0x350] sm:$0xff] }
 0x653   :  { %7767 = vmatpush1.bf16.msra.mxu1 %v7512_v45  ;;  %7931 = vmatpush1.bf16.msra.mxu0 %v7514_v39  ;;  %v7557_v45 = vld [vmem:[#allocation6 + $0x368] sm:$0xff]  ;;  %v7559_v39 = vld [vmem:[#allocation6 + $0x378] sm:$0xff] }
 0x654   :  { %7768 = vmatprep.subr.bf16.mxu1 %v7517_v8  ;;  %7932 = vmatprep.subr.bf16.mxu0 %v7519_v42  ;;  %v7556_v8 = vld [vmem:[#allocation6 + $0x360] sm:$0xff]  ;;  %v7558_v42 = vld [vmem:[#allocation6 + $0x370] sm:$0xff] }
 0x655   :  { %7798 = vmatprep.mubr.bf16.mxu1 %v7443_v48  ;;  %7962 = vmatprep.mubr.bf16.mxu0 %v7443_v48  ;;  %v7561_v48 = vld [vmem:[#allocation6 + $0x388] sm:$0xff] }
 0x657   :  { %7769 = vmatpush1.bf16.msra.mxu1 %v7516_v56  ;;  %7933 = vmatpush1.bf16.msra.mxu0 %v7518_v29  ;;  %v7563_v56 = vld [vmem:[#allocation6 + $0x398] sm:$0xff]  ;;  %v7560_v29 = vld [vmem:[#allocation6 + $0x380] sm:$0xff] }
 0x658   :  { %7770 = vmatprep.subr.bf16.mxu1 %v7521_v40  ;;  %7934 = vmatprep.subr.bf16.mxu0 %v7523_v0  ;;  %v7562_v40 = vld [vmem:[#allocation6 + $0x390] sm:$0xff]  ;;  %v7565_v0 = vld [vmem:[#allocation6 + $0x3a8] sm:$0xff] }
 0x65b   :  { %7771 = vmatpush1.bf16.msra.mxu1 %v7520_v18  ;;  %7935 = vmatpush1.bf16.msra.mxu0 %v7522_v38  ;;  %v7567_v18 = vld [vmem:[#allocation6 + $0x3b8] sm:$0xff]  ;;  %v7564_v38 = vld [vmem:[#allocation6 + $0x3a0] sm:$0xff] }
 0x65c   :  { %7772 = vmatprep.subr.bf16.mxu1 %v7525_v20  ;;  %7936 = vmatprep.subr.bf16.mxu0 %v7527_v55  ;;  %v7566_v20 = vld [vmem:[#allocation6 + $0x3b0] sm:$0xff]  ;;  %v7569_v55 = vld [vmem:[#allocation6 + $0x3c8] sm:$0xff] }
 0x65f   :  { %7773 = vmatpush1.bf16.msra.mxu1 %v7524_v59  ;;  %7937 = vmatpush1.bf16.msra.mxu0 %v7526_v43  ;;  %v7571_v59 = vld [vmem:[#allocation6 + $0x3d8] sm:$0xff]  ;;  %v7410_v43 = vsub.s32 2, %v11643_v51 }
 0x660   :  { %7774 = vmatprep.subr.bf16.mxu1 %v7529_v41  ;;  %7938 = vmatprep.subr.bf16.mxu0 %v7531_v35  ;;  %v7568_v41 = vld [vmem:[#allocation6 + $0x3c0] sm:$0xff]  ;;  %v7570_v35 = vld [vmem:[#allocation6 + $0x3d0] sm:$0xff] }
 0x663   :  { %7775 = vmatpush1.bf16.msra.mxu1 %v7528_v63  ;;  %7939 = vmatpush1.bf16.msra.mxu0 %v7530_v19  ;;  %v7573_v63 = vld [vmem:[#allocation6 + $0x3e8] sm:$0xff]  ;;  %v7575_v19 = vld [vmem:[#allocation6 + $0x3f8] sm:$0xff] }
 0x664   :  { %7776 = vmatprep.subr.bf16.mxu1 %v7533_v47  ;;  %7940 = vmatprep.subr.bf16.mxu0 %v7535_v28  ;;  %v7422_v47 = vsub.s32 5, %v11643_v51  ;;  %v7411_v28 = vrot.slane %v11690_v57, %v7410_v43 }
 0x667   :  { %7777 = vmatpush1.bf16.msra.mxu1 %v7532_v24  ;;  %7941 = vmatpush1.bf16.msra.mxu0 %v7534_v32  ;;  %v7572_v24 = vld [vmem:[#allocation6 + $0x3e0] sm:$0xff]  ;;  %v7574_v32 = vld [vmem:[#allocation6 + $0x3f0] sm:$0xff] }
 0x668   :  { %7778 = vmatprep.subr.bf16.mxu1 %v7537_v49  ;;  %7942 = vmatprep.subr.bf16.mxu0 %v7539_v54  ;;  %v7577_v49 = vld [vmem:[#allocation6 + $0x408] sm:$0xff]  ;;  %v7579_v54 = vld [vmem:[#allocation6 + $0x418] sm:$0xff] }
 0x66b   :  { %7779 = vmatpush1.bf16.msra.mxu1 %v7536_v37  ;;  %7943 = vmatpush1.bf16.msra.mxu0 %v7538_v53  ;;  %v7423_v37 = vrot.slane %v11690_v57, %v7422_v47  ;;  %v7442_v53 = vpack.c.bf16 %v7411_v28, %v7411_v28  ;;  %v7610_v47 = vld [vmem:[#allocation6 + $0x510] sm:$0xff]  ;;  %v7613_v28 = vld [vmem:[#allocation6 + $0x528] sm:$0xff] }
 0x66c   :  { %7780 = vmatprep.subr.bf16.mxu1 %v7541_v46  ;;  %7944 = vmatprep.subr.bf16.mxu0 %v7543_v23  ;;  %v7576_v46 = vld [vmem:[#allocation6 + $0x400] sm:$0xff]  ;;  %v7578_v23 = vld [vmem:[#allocation6 + $0x410] sm:$0xff] }
 0x66f   :  { %7781 = vmatpush1.bf16.msra.mxu1 %v7540_v31  ;;  %7945 = vmatpush1.bf16.msra.mxu0 %v7542_v36  ;;  %v7581_v31 = vld [vmem:[#allocation6 + $0x428] sm:$0xff]  ;;  %v7583_v36 = vld [vmem:[#allocation6 + $0x438] sm:$0xff] }
 0x670   :  { %7782 = vmatprep.subr.bf16.mxu1 %v7545_v60  ;;  %7946 = vmatprep.subr.bf16.mxu0 %v7547_v25  ;;  %v7445_v60 = vpack.c.bf16 %v7423_v37, %v7423_v37  ;;  %v7580_v25 = vld [vmem:[#allocation6 + $0x420] sm:$0xff]  ;;  %v7619_v37 = vld [vmem:[#allocation6 + $0x558] sm:$0xff] }
 0x673   :  { %7783 = vmatpush1.bf16.msra.mxu1 %v7544_v61  ;;  %7947 = vmatpush1.bf16.msra.mxu0 %v7546_v52  ;;  %v7582_v61 = vld [vmem:[#allocation6 + $0x430] sm:$0xff]  ;;  %v7585_v52 = vld [vmem:[#allocation6 + $0x448] sm:$0xff] }
 0x674   :  { %7784 = vmatprep.subr.bf16.mxu1 %v7549_v22  ;;  %7948 = vmatprep.subr.bf16.mxu0 %v7551_v44  ;;  %v7587_v22 = vld [vmem:[#allocation6 + $0x458] sm:$0xff]  ;;  %v7584_v44 = vld [vmem:[#allocation6 + $0x440] sm:$0xff] }
 0x677   :  { %7785 = vmatpush1.bf16.msra.mxu1 %v7548_v17  ;;  %7949 = vmatpush1.bf16.msra.mxu0 %v7550_v26  ;;  %v7586_v17 = vld [vmem:[#allocation6 + $0x450] sm:$0xff]  ;;  %v7589_v26 = vld [vmem:[#allocation6 + $0x468] sm:$0xff] }
 0x678   :  { %7786 = vmatprep.subr.bf16.mxu1 %v7553_v58  ;;  %7950 = vmatprep.subr.bf16.mxu0 %v7555_v34  ;;  %v7591_v58 = vld [vmem:[#allocation6 + $0x478] sm:$0xff]  ;;  %v7588_v34 = vld [vmem:[#allocation6 + $0x460] sm:$0xff] }
 0x67b   :  { %7787 = vmatpush1.bf16.msra.mxu1 %v7552_v21  ;;  %7951 = vmatpush1.bf16.msra.mxu0 %v7554_v62  ;;  %v7590_v21 = vld [vmem:[#allocation6 + $0x470] sm:$0xff]  ;;  %v7593_v62 = vld [vmem:[#allocation6 + $0x488] sm:$0xff] }
 0x67c   :  { %7788 = vmatprep.subr.bf16.mxu1 %v7557_v45  ;;  %7952 = vmatprep.subr.bf16.mxu0 %v7559_v39  ;;  %v7595_v45 = vld [vmem:[#allocation6 + $0x498] sm:$0xff]  ;;  %v7592_v39 = vld [vmem:[#allocation6 + $0x480] sm:$0xff] }
 0x67f   :  { %7789 = vmatpush1.bf16.msra.mxu1 %v7556_v8  ;;  %7953 = vmatpush1.bf16.msra.mxu0 %v7558_v42  ;;  %v7594_v8 = vld [vmem:[#allocation6 + $0x490] sm:$0xff]  ;;  %v7597_v42 = vld [vmem:[#allocation6 + $0x4a8] sm:$0xff] }
 0x680   :  { %7790 = vmatprep.subr.bf16.mxu1 %v7561_v48  ;;  %7954 = vmatprep.subr.bf16.mxu0 %v7563_v56  ;;  %v7599_v48 = vld [vmem:[#allocation6 + $0x4b8] sm:$0xff]  ;;  %v7596_v56 = vld [vmem:[#allocation6 + $0x4a0] sm:$0xff] }
 0x683   :  { %7791 = vmatpush1.bf16.msra.mxu1 %v7560_v29  ;;  %7955 = vmatpush1.bf16.msra.mxu0 %v7562_v40  ;;  %v7598_v29 = vld [vmem:[#allocation6 + $0x4b0] sm:$0xff]  ;;  %v7601_v40 = vld [vmem:[#allocation6 + $0x4c8] sm:$0xff] }
 0x684   :  { %7792 = vmatprep.subr.bf16.mxu1 %v7565_v0  ;;  %7956 = vmatprep.subr.bf16.mxu0 %v7567_v18  ;;  %v7603_v0 = vld [vmem:[#allocation6 + $0x4d8] sm:$0xff]  ;;  %v7600_v18 = vld [vmem:[#allocation6 + $0x4c0] sm:$0xff] }
 0x687   :  { %7793 = vmatpush1.bf16.msra.mxu1 %v7564_v38  ;;  %7957 = vmatpush1.bf16.msra.mxu0 %v7566_v20  ;;  %v7602_v38 = vld [vmem:[#allocation6 + $0x4d0] sm:$0xff]  ;;  %v7605_v20 = vld [vmem:[#allocation6 + $0x4e8] sm:$0xff] }
 0x688   :  { %7794 = vmatprep.subr.bf16.mxu1 %v7569_v55  ;;  %7958 = vmatprep.subr.bf16.mxu0 %v7571_v59  ;;  %v7607_v55 = vld [vmem:[#allocation6 + $0x4f8] sm:$0xff]  ;;  %v7604_v59 = vld [vmem:[#allocation6 + $0x4e0] sm:$0xff] }
 0x68b   :  { %7795 = vmatpush1.bf16.msra.mxu1 %v7568_v41  ;;  %7959 = vmatpush1.bf16.msra.mxu0 %v7570_v35  ;;  %v7606_v41 = vld [vmem:[#allocation6 + $0x4f0] sm:$0xff]  ;;  %v7609_v35 = vld [vmem:[#allocation6 + $0x508] sm:$0xff] }
 0x68c   :  { %7796 = vmatprep.subr.bf16.mxu1 %v7573_v63  ;;  %7960 = vmatprep.subr.bf16.mxu0 %v7575_v19  ;;  %v7611_v63 = vld [vmem:[#allocation6 + $0x518] sm:$0xff]  ;;  %v7608_v19 = vld [vmem:[#allocation6 + $0x500] sm:$0xff] }
 0x68f   :  { %7797 = vmatpush1.bf16.msra.mxu1 %v7572_v24  ;;  %7961 = vmatpush1.bf16.msra.mxu0 %v7574_v32  ;;  %v7615_v24 = vld [vmem:[#allocation6 + $0x538] sm:$0xff]  ;;  %v7612_v32 = vld [vmem:[#allocation6 + $0x520] sm:$0xff] }
 0x690   :  { %7807 = vmatprep.subr.bf16.mxu1 %v7577_v49  ;;  %7971 = vmatprep.subr.bf16.mxu0 %v7579_v54  ;;  %v7614_v49 = vld [vmem:[#allocation6 + $0x530] sm:$0xff]  ;;  %v7617_v54 = vld [vmem:[#allocation6 + $0x548] sm:$0xff] }
 0x692   :  { %7799 = vmatmul.mubr.bf16.vlgmr.msra.gmra.mrb[144].mxu1 %v7442_v53  ;;  %7963 = vmatmul.mubr.bf16.vlgmr.msra.gmra.mrb[104].mxu0 %v7442_v53  ;;  %v7616_v53 = vld [vmem:[#allocation6 + $0x540] sm:$0xff] }
 0x693   :  { %7808 = vmatpush1.bf16.msra.mxu1 %v7576_v46  ;;  %7972 = vmatpush1.bf16.msra.mxu0 %v7578_v23  ;;  %v7618_v46 = vld [vmem:[#allocation6 + $0x550] sm:$0xff]  ;;  %v7621_v23 = vld [vmem:[#allocation6 + $0x568] sm:$0xff] }
 0x694   :  { %7809 = vmatprep.subr.bf16.mxu1 %v7581_v31  ;;  %7973 = vmatprep.subr.bf16.mxu0 %v7583_v36  ;;  %v7623_v31 = vld [vmem:[#allocation6 + $0x578] sm:$0xff]  ;;  %v7620_v36 = vld [vmem:[#allocation6 + $0x560] sm:$0xff] }
 0x695   :  { %7839 = vmatprep.mubr.bf16.mxu1 %v7445_v60  ;;  %8003 = vmatprep.mubr.bf16.mxu0 %v7445_v60  ;;  %v7622_v60 = vld [vmem:[#allocation6 + $0x570] sm:$0xff] }
 0x697   :  { %7810 = vmatpush1.bf16.msra.mxu1 %v7580_v25  ;;  %7974 = vmatpush1.bf16.msra.mxu0 %v7582_v61  ;;  %v7625_v25 = vld [vmem:[#allocation6 + $0x588] sm:$0xff]  ;;  %v7627_v61 = vld [vmem:[#allocation6 + $0x598] sm:$0xff] }
 0x698   :  { %7811 = vmatprep.subr.bf16.mxu1 %v7585_v52  ;;  %7975 = vmatprep.subr.bf16.mxu0 %v7587_v22  ;;  %v7624_v52 = vld [vmem:[#allocation6 + $0x580] sm:$0xff]  ;;  %v7626_v22 = vld [vmem:[#allocation6 + $0x590] sm:$0xff] }
 0x69b   :  { %7812 = vmatpush1.bf16.msra.mxu1 %v7584_v44  ;;  %7976 = vmatpush1.bf16.msra.mxu0 %v7586_v17  ;;  %v7629_v44 = vld [vmem:[#allocation6 + $0x5a8] sm:$0xff]  ;;  %v7631_v17 = vld [vmem:[#allocation6 + $0x5b8] sm:$0xff] }
 0x69c   :  { %7813 = vmatprep.subr.bf16.mxu1 %v7589_v26  ;;  %7977 = vmatprep.subr.bf16.mxu0 %v7591_v58  ;;  %v7628_v26 = vld [vmem:[#allocation6 + $0x5a0] sm:$0xff]  ;;  %v7630_v58 = vld [vmem:[#allocation6 + $0x5b0] sm:$0xff] }
 0x69f   :  { %7814 = vmatpush1.bf16.msra.mxu1 %v7588_v34  ;;  %7978 = vmatpush1.bf16.msra.mxu0 %v7590_v21  ;;  %v7633_v34 = vld [vmem:[#allocation6 + $0x5c8] sm:$0xff]  ;;  %v7635_v21 = vld [vmem:[#allocation6 + $0x5d8] sm:$0xff] }
 0x6a0   :  { %7815 = vmatprep.subr.bf16.mxu1 %v7593_v62  ;;  %7979 = vmatprep.subr.bf16.mxu0 %v7595_v45  ;;  %v7418_v62 = vsub.s32 4, %v11643_v51  ;;  %v7632_v45 = vld [vmem:[#allocation6 + $0x5c0] sm:$0xff] }
 0x6a3   :  { %7816 = vmatpush1.bf16.msra.mxu1 %v7592_v39  ;;  %7980 = vmatpush1.bf16.msra.mxu0 %v7594_v8  ;;  %v7634_v39 = vld [vmem:[#allocation6 + $0x5d0] sm:$0xff]  ;;  %v7637_v8 = vld [vmem:[#allocation6 + $0x5e8] sm:$0xff] }
 0x6a4   :  { %7817 = vmatprep.subr.bf16.mxu1 %v7597_v42  ;;  %7981 = vmatprep.subr.bf16.mxu0 %v7599_v48  ;;  %v7639_v42 = vld [vmem:[#allocation6 + $0x5f8] sm:$0xff]  ;;  %v7430_v48 = vsub.s32 7, %v11643_v51 }
 0x6a7   :  { %7818 = vmatpush1.bf16.msra.mxu1 %v7596_v56  ;;  %7982 = vmatpush1.bf16.msra.mxu0 %v7598_v29  ;;  %v7419_v56 = vrot.slane %v11690_v57, %v7418_v62  ;;  %v7636_v29 = vld [vmem:[#allocation6 + $0x5e0] sm:$0xff] }
 0x6a8   :  { %7819 = vmatprep.subr.bf16.mxu1 %v7601_v40  ;;  %7983 = vmatprep.subr.bf16.mxu0 %v7603_v0  ;;  %v7638_v40 = vld [vmem:[#allocation6 + $0x5f0] sm:$0xff]  ;;  %v7641_v0 = vld [vmem:[#allocation6 + $0x608] sm:$0xff]  ;;  %v7668_v62 = vld [vmem:[#allocation6 + $0x6e0] sm:$0xff] }
 0x6ab   :  { %7820 = vmatpush1.bf16.msra.mxu1 %v7600_v18  ;;  %7984 = vmatpush1.bf16.msra.mxu0 %v7602_v38  ;;  %v7643_v18 = vld [vmem:[#allocation6 + $0x618] sm:$0xff]  ;;  %v7431_v38 = vrot.slane %v11690_v57, %v7430_v48  ;;  %v7674_v48 = vld [vmem:[#allocation6 + $0x710] sm:$0xff] }
 0x6ac   :  { %7821 = vmatprep.subr.bf16.mxu1 %v7605_v20  ;;  %7985 = vmatprep.subr.bf16.mxu0 %v7607_v55  ;;  %v7444_v20 = vpack.c.bf16 %v7419_v56, %v7419_v56  ;;  %v7640_v55 = vld [vmem:[#allocation6 + $0x600] sm:$0xff]  ;;  %v7677_v56 = vld [vmem:[#allocation6 + $0x728] sm:$0xff] }
 0x6af   :  { %7822 = vmatpush1.bf16.msra.mxu1 %v7604_v59  ;;  %7986 = vmatpush1.bf16.msra.mxu0 %v7606_v41  ;;  %v7642_v59 = vld [vmem:[#allocation6 + $0x610] sm:$0xff]  ;;  %v7645_v41 = vld [vmem:[#allocation6 + $0x628] sm:$0xff] }
 0x6b0   :  { %7823 = vmatprep.subr.bf16.mxu1 %v7609_v35  ;;  %7987 = vmatprep.subr.bf16.mxu0 %v7611_v63  ;;  %v7647_v35 = vld [vmem:[#allocation6 + $0x638] sm:$0xff]  ;;  %v7447_v63 = vpack.c.bf16 %v7431_v38, %v7431_v38 }
 0x6b1   :  { %v7683_v38 = vld [vmem:[#allocation6 + $0x758] sm:$0xff] }
 0x6b3   :  { %7824 = vmatpush1.bf16.msra.mxu1 %v7608_v19  ;;  %7988 = vmatpush1.bf16.msra.mxu0 %v7610_v47  ;;  %v7644_v19 = vld [vmem:[#allocation6 + $0x620] sm:$0xff]  ;;  %v7646_v47 = vld [vmem:[#allocation6 + $0x630] sm:$0xff] }
 0x6b4   :  { %7825 = vmatprep.subr.bf16.mxu1 %v7613_v28  ;;  %7989 = vmatprep.subr.bf16.mxu0 %v7615_v24  ;;  %v7649_v28 = vld [vmem:[#allocation6 + $0x648] sm:$0xff]  ;;  %v7651_v24 = vld [vmem:[#allocation6 + $0x658] sm:$0xff] }
 0x6b7   :  { %7826 = vmatpush1.bf16.msra.mxu1 %v7612_v32  ;;  %7990 = vmatpush1.bf16.msra.mxu0 %v7614_v49  ;;  %v7648_v32 = vld [vmem:[#allocation6 + $0x640] sm:$0xff]  ;;  %v7650_v49 = vld [vmem:[#allocation6 + $0x650] sm:$0xff] }
 0x6b8   :  { %7827 = vmatprep.subr.bf16.mxu1 %v7617_v54  ;;  %7991 = vmatprep.subr.bf16.mxu0 %v7619_v37  ;;  %v7653_v54 = vld [vmem:[#allocation6 + $0x668] sm:$0xff]  ;;  %v7655_v37 = vld [vmem:[#allocation6 + $0x678] sm:$0xff] }
 0x6bb   :  { %7828 = vmatpush1.bf16.msra.mxu1 %v7616_v53  ;;  %7992 = vmatpush1.bf16.msra.mxu0 %v7618_v46  ;;  %v7652_v53 = vld [vmem:[#allocation6 + $0x660] sm:$0xff]  ;;  %v7654_v46 = vld [vmem:[#allocation6 + $0x670] sm:$0xff] }
 0x6bc   :  { %7829 = vmatprep.subr.bf16.mxu1 %v7621_v23  ;;  %7993 = vmatprep.subr.bf16.mxu0 %v7623_v31  ;;  %v7657_v23 = vld [vmem:[#allocation6 + $0x688] sm:$0xff]  ;;  %v7659_v31 = vld [vmem:[#allocation6 + $0x698] sm:$0xff] }
 0x6bf   :  { %7830 = vmatpush1.bf16.msra.mxu1 %v7620_v36  ;;  %7994 = vmatpush1.bf16.msra.mxu0 %v7622_v60  ;;  %v7656_v36 = vld [vmem:[#allocation6 + $0x680] sm:$0xff]  ;;  %v7658_v60 = vld [vmem:[#allocation6 + $0x690] sm:$0xff] }
 0x6c0   :  { %7831 = vmatprep.subr.bf16.mxu1 %v7625_v25  ;;  %7995 = vmatprep.subr.bf16.mxu0 %v7627_v61  ;;  %v7661_v25 = vld [vmem:[#allocation6 + $0x6a8] sm:$0xff]  ;;  %v7663_v61 = vld [vmem:[#allocation6 + $0x6b8] sm:$0xff] }
 0x6c3   :  { %7832 = vmatpush1.bf16.msra.mxu1 %v7624_v52  ;;  %7996 = vmatpush1.bf16.msra.mxu0 %v7626_v22  ;;  %v7660_v52 = vld [vmem:[#allocation6 + $0x6a0] sm:$0xff]  ;;  %v7662_v22 = vld [vmem:[#allocation6 + $0x6b0] sm:$0xff] }
 0x6c4   :  { %7833 = vmatprep.subr.bf16.mxu1 %v7629_v44  ;;  %7997 = vmatprep.subr.bf16.mxu0 %v7631_v17  ;;  %v7665_v44 = vld [vmem:[#allocation6 + $0x6c8] sm:$0xff]  ;;  %v7667_v17 = vld [vmem:[#allocation6 + $0x6d8] sm:$0xff] }
 0x6c7   :  { %7834 = vmatpush1.bf16.msra.mxu1 %v7628_v26  ;;  %7998 = vmatpush1.bf16.msra.mxu0 %v7630_v58  ;;  %v7664_v26 = vld [vmem:[#allocation6 + $0x6c0] sm:$0xff]  ;;  %v7666_v58 = vld [vmem:[#allocation6 + $0x6d0] sm:$0xff] }
 0x6c8   :  { %7835 = vmatprep.subr.bf16.mxu1 %v7633_v34  ;;  %7999 = vmatprep.subr.bf16.mxu0 %v7635_v21  ;;  %v7669_v34 = vld [vmem:[#allocation6 + $0x6e8] sm:$0xff]  ;;  %v7671_v21 = vld [vmem:[#allocation6 + $0x6f8] sm:$0xff] }
 0x6cb   :  { %7836 = vmatpush1.bf16.msra.mxu1 %v7632_v45  ;;  %8000 = vmatpush1.bf16.msra.mxu0 %v7634_v39  ;;  %v7670_v45 = vld [vmem:[#allocation6 + $0x6f0] sm:$0xff]  ;;  %v7673_v39 = vld [vmem:[#allocation6 + $0x708] sm:$0xff] }
 0x6cc   :  { %7837 = vmatprep.subr.bf16.mxu1 %v7637_v8  ;;  %8001 = vmatprep.subr.bf16.mxu0 %v7639_v42  ;;  %v7675_v8 = vld [vmem:[#allocation6 + $0x718] sm:$0xff]  ;;  %v7672_v42 = vld [vmem:[#allocation6 + $0x700] sm:$0xff] }
 0x6cf   :  { %7838 = vmatpush1.bf16.msra.mxu1 %v7636_v29  ;;  %8002 = vmatpush1.bf16.msra.mxu0 %v7638_v40  ;;  %v7679_v29 = vld [vmem:[#allocation6 + $0x738] sm:$0xff]  ;;  %v7676_v40 = vld [vmem:[#allocation6 + $0x720] sm:$0xff] }
 0x6d0   :  { %7848 = vmatprep.subr.bf16.mxu1 %v7641_v0  ;;  %8012 = vmatprep.subr.bf16.mxu0 %v7643_v18  ;;  %v7678_v0 = vld [vmem:[#allocation6 + $0x730] sm:$0xff]  ;;  %v7681_v18 = vld [vmem:[#allocation6 + $0x748] sm:$0xff] }
 0x6d2   :  { %7840 = vmatmul.mubr.bf16.vlgmr.msra.gmra.mrb[144].mxu1 %v7444_v20  ;;  %8004 = vmatmul.mubr.bf16.vlgmr.msra.gmra.mrb[104].mxu0 %v7444_v20  ;;  %v7680_v20 = vld [vmem:[#allocation6 + $0x740] sm:$0xff] }
 0x6d3   :  { %7849 = vmatpush1.bf16.msra.mxu1 %v7640_v55  ;;  %8013 = vmatpush1.bf16.msra.mxu0 %v7642_v59  ;;  %v7682_v55 = vld [vmem:[#allocation6 + $0x750] sm:$0xff]  ;;  %v7685_v59 = vld [vmem:[#allocation6 + $0x768] sm:$0xff] }
 0x6d4   :  { %7850 = vmatprep.subr.bf16.mxu1 %v7645_v41  ;;  %8014 = vmatprep.subr.bf16.mxu0 %v7647_v35  ;;  %v7687_v41 = vld [vmem:[#allocation6 + $0x778] sm:$0xff]  ;;  %v7684_v35 = vld [vmem:[#allocation6 + $0x760] sm:$0xff] }
 0x6d5   :  { %7880 = vmatprep.mubr.bf16.mxu1 %v7447_v63  ;;  %8044 = vmatprep.mubr.bf16.mxu0 %v7447_v63  ;;  %v7686_v63 = vld [vmem:[#allocation6 + $0x770] sm:$0xff] }
 0x6d7   :  { %7851 = vmatpush1.bf16.msra.mxu1 %v7644_v19  ;;  %8015 = vmatpush1.bf16.msra.mxu0 %v7646_v47  ;;  %v7689_v19 = vld [vmem:[#allocation6 + $0x788] sm:$0xff]  ;;  %v7691_v47 = vld [vmem:[#allocation6 + $0x798] sm:$0xff] }
 0x6d8   :  { %7852 = vmatprep.subr.bf16.mxu1 %v7649_v28  ;;  %8016 = vmatprep.subr.bf16.mxu0 %v7651_v24  ;;  %v7688_v28 = vld [vmem:[#allocation6 + $0x780] sm:$0xff]  ;;  %v7690_v24 = vld [vmem:[#allocation6 + $0x790] sm:$0xff] }
 0x6db   :  { %7853 = vmatpush1.bf16.msra.mxu1 %v7648_v32  ;;  %8017 = vmatpush1.bf16.msra.mxu0 %v7650_v49  ;;  %v7693_v32 = vld [vmem:[#allocation6 + $0x7a8] sm:$0xff]  ;;  %v7695_v49 = vld [vmem:[#allocation6 + $0x7b8] sm:$0xff] }
 0x6dc   :  { %7854 = vmatprep.subr.bf16.mxu1 %v7653_v54  ;;  %8018 = vmatprep.subr.bf16.mxu0 %v7655_v37  ;;  %v7692_v54 = vld [vmem:[#allocation6 + $0x7a0] sm:$0xff]  ;;  %v7694_v37 = vld [vmem:[#allocation6 + $0x7b0] sm:$0xff] }
 0x6df   :  { %7855 = vmatpush1.bf16.msra.mxu1 %v7652_v53  ;;  %8019 = vmatpush1.bf16.msra.mxu0 %v7654_v46  ;;  %v7697_v53 = vld [vmem:[#allocation6 + $0x7c8] sm:$0xff]  ;;  %v7699_v46 = vld [vmem:[#allocation6 + $0x7d8] sm:$0xff] }
 0x6e0   :  { %7856 = vmatprep.subr.bf16.mxu1 %v7657_v23  ;;  %8020 = vmatprep.subr.bf16.mxu0 %v7659_v31  ;;  %v7426_v23 = vsub.s32 6, %v11643_v51  ;;  %v7696_v31 = vld [vmem:[#allocation6 + $0x7c0] sm:$0xff] }
 0x6e3   :  { %7857 = vmatpush1.bf16.msra.mxu1 %v7656_v36  ;;  %8021 = vmatpush1.bf16.msra.mxu0 %v7658_v60  ;;  %v7698_v36 = vld [vmem:[#allocation6 + $0x7d0] sm:$0xff]  ;;  %v7701_v60 = vld [vmem:[#allocation6 + $0x7e8] sm:$0xff] }
 0x6e4   :  { %7858 = vmatprep.subr.bf16.mxu1 %v7661_v25  ;;  %8022 = vmatprep.subr.bf16.mxu0 %v7663_v61  ;;  %v7703_v25 = vld [vmem:[#allocation6 + $0x7f8] sm:$0xff]  ;;  %v7427_v61 = vrot.slane %v11690_v57, %v7426_v23  ;;  %v7712_v57 = vrot.slane %v10862_v33, %v7406_v27 }
 0x6e7   :  { %7859 = vmatpush1.bf16.msra.mxu1 %v7660_v52  ;;  %8023 = vmatpush1.bf16.msra.mxu0 %v7662_v22  ;;  %v7700_v52 = vld [vmem:[#allocation6 + $0x7e0] sm:$0xff]  ;;  %v7702_v22 = vld [vmem:[#allocation6 + $0x7f0] sm:$0xff] }
 0x6e8   :  { %7860 = vmatprep.subr.bf16.mxu1 %v7665_v44  ;;  %8024 = vmatprep.subr.bf16.mxu0 %v7667_v17  ;;  %v7446_v44 = vpack.c.bf16 %v7427_v61, %v7427_v61  ;;  %v7708_v17 = vrot.slane %v10862_v33, %v7402_v50 }
 0x6eb   :  { %7861 = vmatpush1.bf16.msra.mxu1 %v7664_v26  ;;  %8025 = vmatpush1.bf16.msra.mxu0 %v7666_v58  ;;  %v7716_v26 = vrot.slane %v10862_v33, %v7410_v43  ;;  %v7720_v58 = vrot.slane %v10862_v33, %v7414_v30 }
 0x6ec   :  { %7862 = vmatprep.subr.bf16.mxu1 %v7669_v34  ;;  %8026 = vmatprep.subr.bf16.mxu0 %v7671_v21 }
 0x6ef   :  { %7863 = vmatpush1.bf16.msra.mxu1 %v7668_v62  ;;  %8027 = vmatpush1.bf16.msra.mxu0 %v7670_v45 }
 0x6f0   :  { %7864 = vmatprep.subr.bf16.mxu1 %v7673_v39  ;;  %8028 = vmatprep.subr.bf16.mxu0 %v7675_v8 }
 0x6f3   :  { %7865 = vmatpush1.bf16.msra.mxu1 %v7672_v42  ;;  %8029 = vmatpush1.bf16.msra.mxu0 %v7674_v48 }
 0x6f4   :  { %7866 = vmatprep.subr.bf16.mxu1 %v7677_v56  ;;  %8030 = vmatprep.subr.bf16.mxu0 %v7679_v29 }
 0x6f7   :  { %7867 = vmatpush1.bf16.msra.mxu1 %v7676_v40  ;;  %8031 = vmatpush1.bf16.msra.mxu0 %v7678_v0 }
 0x6f8   :  { %7868 = vmatprep.subr.bf16.mxu1 %v7681_v18  ;;  %8032 = vmatprep.subr.bf16.mxu0 %v7683_v38 }
 0x6fb   :  { %7869 = vmatpush1.bf16.msra.mxu1 %v7680_v20  ;;  %8033 = vmatpush1.bf16.msra.mxu0 %v7682_v55 }
 0x6fc   :  { %7870 = vmatprep.subr.bf16.mxu1 %v7685_v59  ;;  %8034 = vmatprep.subr.bf16.mxu0 %v7687_v41 }
 0x6ff   :  { %7871 = vmatpush1.bf16.msra.mxu1 %v7684_v35  ;;  %8035 = vmatpush1.bf16.msra.mxu0 %v7686_v63 }
 0x700   :  { %7872 = vmatprep.subr.bf16.mxu1 %v7689_v19  ;;  %8036 = vmatprep.subr.bf16.mxu0 %v7691_v47 }
 0x703   :  { %7873 = vmatpush1.bf16.msra.mxu1 %v7688_v28  ;;  %8037 = vmatpush1.bf16.msra.mxu0 %v7690_v24 }
 0x704   :  { %7874 = vmatprep.subr.bf16.mxu1 %v7693_v32  ;;  %8038 = vmatprep.subr.bf16.mxu0 %v7695_v49 }
 0x707   :  { %7875 = vmatpush1.bf16.msra.mxu1 %v7692_v54  ;;  %8039 = vmatpush1.bf16.msra.mxu0 %v7694_v37 }
 0x708   :  { %7876 = vmatprep.subr.bf16.mxu1 %v7697_v53  ;;  %8040 = vmatprep.subr.bf16.mxu0 %v7699_v46 }
 0x70b   :  { %7877 = vmatpush1.bf16.msra.mxu1 %v7696_v31  ;;  %8041 = vmatpush1.bf16.msra.mxu0 %v7698_v36 }
 0x70c   :  { %7878 = vmatprep.subr.bf16.mxu1 %v7701_v60  ;;  %8042 = vmatprep.subr.bf16.mxu0 %v7703_v25 }
 0x70f   :  { %7879 = vmatpush1.bf16.msra.mxu1 %v7700_v52  ;;  %8043 = vmatpush1.bf16.msra.mxu0 %v7702_v22 }
 0x710   :  { %8678 = vmatprep.subr.bf16.mxu1 %v10742_v9 }
 0x712   :  { %7881 = vmatmul.mubr.bf16.vlgmr.msra.gmra.mrb[144].mxu1 %v7446_v44  ;;  %8045 = vmatmul.mubr.bf16.vlgmr.msra.gmra.mrb[104].mxu0 %v7446_v44 }
 0x7e5   :  { %v7882_v34 = vpop.f32.mrb[144].mxu1  ;;  %v8046_v21 = vpop.f32.mrb[104].mxu0 }
 0x7e6   :  { %v9102_v62 = vadd.f32 %v7882_v34, %v7708_v17  ;;  %v9104_v45 = vadd.f32 %v8046_v21, %v7716_v26  ;;  %v7884_v39 = vpop.f32.mrb[145].mxu1  ;;  %v8048_v8 = vpop.f32.mrb[105].mxu0 }
 0x7e7   :  { %v9103_v42 = vadd.f32 %v7884_v39, %v7712_v57  ;;  %v9105_v50 = vadd.f32 %v8048_v8, %v7720_v58  ;;  %v7886_v48 = vpop.f32.mrb[146].mxu1  ;;  %v8050_v56 = vpop.f32.mrb[106].mxu0 }
 0x7e8   :  { %v8053_v29 = vmax.f32 %v9102_v62, 0.0  ;;  %v8055_v43 = vmax.f32 %v9104_v45, 0.0  ;;  %v7887_v40 = vpop.f32.mrb[147].mxu1  ;;  %v8051_v0 = vpop.f32.mrb[107].mxu0 }
 0x7e9   :  { %v8054_v18 = vmax.f32 %v9103_v42, 0.0  ;;  %v8056_v27 = vmax.f32 %v9105_v50, 0.0 }
 0x7ea   :  { %v8057_v38 = vpack.c.bf16 %v8053_v29, %v8053_v29  ;;  %v8059_v51 = vpack.c.bf16 %v8055_v43, %v8055_v43 }
 0x7eb   :  { %v8058_v20 = vpack.c.bf16 %v8054_v18, %v8054_v18  ;;  %v8060_v33 = vpack.c.bf16 %v8056_v27, %v8056_v27 }
 0x7ed   :  { %8129 = vmatprep.mubr.bf16.mxu1 %v8058_v20 }
 0x7ee   :  { %9313 = dma.done.wait [#allocation8 + $0x1], 4096 }
 0x7ef   :  { %9314 = vsyncadd [#allocation8 + $0x1], 4294963200  ;;  %8679 = vmatpush3.bf16.msra.mxu1 %v10702_v1  ;;  %v11800_v1 = vld [vmem:[#allocation16_spill] sm:$0xff]  ;;  %v11805_v9 = vld [vmem:[#allocation27_spill] sm:$0xff]  ;;  %s9321_s2 = smov [#allocation9]  }
 0x7f0   :  { %8680 = vmatprep.subr.bf16.mxu1 %v10747_v10  ;;  %v11807_v10 = vld [vmem:[#allocation28_spill] sm:$0xff]  ;;  %s8184_s9 = sshll.u32 %s9321_s2, 4  ;;  %v11817_v24 = vld [vmem:[#allocation33_spill] sm:$0xff]  ;;  %s8185_s9 = int_to_ptr.vmem [resolvable:$true] %s8184_s9 }
 0x7f1   :  { %v11815_v30 = vld [vmem:[#allocation32_spill] sm:$0xff]  ;;  %s9289_s4 = scalar_lea.vmem %s8185_s9, 16  ;;  %s9293_s0 = scalar_lea.vmem %s8185_s9, 32 }
 0x7f2   :  { %v11816_v55 = vld [vmem:[#allocation24_spill] sm:$0xff]  ;;  %p9290_p0 = scmp.ne.s32.totalorder %s8185_s9, %s9289_s4  ;;  %p9294_p1 = scmp.lt.s32.totalorder %s8185_s9, %s8185_s9 }
 0x7f3   :  { %8681 = vmatpush3.bf16.msra.mxu1 %v10707_v2  ;;  %v11801_v2 = vld [vmem:[#allocation25_spill] sm:$0xff]  ;;  %p9295_p2 = scmp.lt.s32.totalorder %s9293_s0, %s9289_s4 }
 0x7f4   :  { %8682 = vmatprep.subr.bf16.mxu1 %v10752_v11  ;;  %v11809_v11 = vld [vmem:[#allocation29_spill] sm:$0xff] }
 0x7f5   :  { %p9296_p3 = por %p9295_p2, %p9294_p1 }
 0x7f7   :  { %8683 = vmatpush3.bf16.msra.mxu1 %v10712_v3  ;;  %v11802_v3 = vld [vmem:[#allocation17_spill] sm:$0xff]  ;;  %p9297_p4 = pnand %p9296_p3, %p9290_p0 }
 0x7f8   :  { %8684 = vmatprep.subr.bf16.mxu1 %v10757_v12  ;;  %v11810_v12 = vld [vmem:[#allocation21_spill] sm:$0xff] }
 0x7fb   :  { %8685 = vmatpush3.bf16.msra.mxu1 %v10717_v4  ;;  %v11803_v4 = vld [vmem:[#allocation26_spill] sm:$0xff] }
 0x7fc   :  { %8686 = vmatprep.subr.bf16.mxu1 %v10762_v13  ;;  %v11811_v13 = vld [vmem:[#allocation30_spill] sm:$0xff] }
 0x7ff   :  { %8687 = vmatpush3.bf16.msra.mxu1 %v10722_v5  ;;  %v11804_v5 = vld [vmem:[#allocation18_spill] sm:$0xff] }
 0x800   :  { %8688 = vmatprep.subr.bf16.mxu1 %v10767_v14  ;;  %v11812_v14 = vld [vmem:[#allocation22_spill] sm:$0xff] }
 0x803   :  { %8689 = vmatpush3.bf16.msra.mxu1 %v10727_v6  ;;  %v11806_v6 = vld [vmem:[#allocation19_spill] sm:$0xff] }
 0x804   :  { %8690 = vmatprep.subr.bf16.mxu1 %v10772_v15  ;;  %v11813_v15 = vld [vmem:[#allocation31_spill] sm:$0xff] }
 0x807   :  { %8691 = vmatpush3.bf16.msra.mxu1 %v10732_v7  ;;  %v11808_v7 = vld [vmem:[#allocation20_spill] sm:$0xff] }
 0x808   :  { %8692 = vmatprep.subr.bf16.mxu1 %v10777_v16  ;;  %v11814_v16 = vld [vmem:[#allocation23_spill] sm:$0xff] }
 0x80b   :  { %8693 = vmatpush3.bf16.msra.mxu1 %v11800_v1 }
 0x80c   :  { %8700 = vmatprep.subr.bf16.mxu1 %v11801_v2 }
 0x80e   :  { %8130 = vmatmul.mubr.bf16.vlgmr.msra.gmra.mrb[148].mxu1 %v8057_v38 }
 0x80f   :  { %8701 = vmatpush3.bf16.msra.mxu1 %v11802_v3  ;;  %8169 = vmatprep.mubr.bf16.mxu1 %v8060_v33 }
 0x810   :  { %8702 = vmatprep.subr.bf16.mxu1 %v11803_v4 }
 0x813   :  { %8703 = vmatpush3.bf16.msra.mxu1 %v11804_v5 }
 0x814   :  { %8704 = vmatprep.subr.bf16.mxu1 %v11805_v9 }
 0x817   :  { %8705 = vmatpush3.bf16.msra.mxu1 %v11806_v6 }
 0x818   :  { %8706 = vmatprep.subr.bf16.mxu1 %v11807_v10 }
 0x81b   :  { %8707 = vmatpush3.bf16.msra.mxu1 %v11808_v7 }
 0x81c   :  { %8708 = vmatprep.subr.bf16.mxu1 %v11809_v11 }
 0x81f   :  { %8709 = vmatpush3.bf16.msra.mxu1 %v11810_v12 }
 0x820   :  { %8710 = vmatprep.subr.bf16.mxu1 %v11811_v13 }
 0x823   :  { %8711 = vmatpush3.bf16.msra.mxu1 %v11812_v14 }
 0x824   :  { %8712 = vmatprep.subr.bf16.mxu1 %v11813_v15 }
 0x827   :  { %8713 = vmatpush3.bf16.msra.mxu1 %v11814_v16 }
 0x828   :  { %8714 = vmatprep.subr.bf16.mxu1 %v11815_v30 }
 0x82b   :  { %8715 = vmatpush3.bf16.msra.mxu1 %v11816_v55 }
 0x82e   :  { %8170 = vmatmul.mubr.bf16.vlgmr.msra.gmra.mrb[152].mxu1 %v8059_v51 }
 0x8e1   :  { %v8694_v59 = vpop.f32.mrb[148].mxu1 }
 0x8e2   :  { %v8695_v41 = vpop.f32.mrb[149].mxu1 }
 0x8e3   :  { %v8696_v35 = vadd.f32 %v8695_v41, %v8694_v59  ;;  %v8697_v63 = vpop.f32.mrb[150].mxu1 }
 0x8e4   :  { %v8698_v19 = vpop.f32.mrb[151].mxu1 }
 0x8e5   :  { %v8132_v32 = vadd.f32 %v8696_v35, %v11817_v24 }
 0x901   :  { %v8716_v47 = vpop.f32.mrb[152].mxu1 }
 0x902   :  { %v8717_v28 = vpop.f32.mrb[153].mxu1 }
 0x903   :  { %v8718_v49 = vadd.f32 %v8717_v28, %v8716_v47  ;;  %v8719_v54 = vpop.f32.mrb[154].mxu1 }
 0x904   :  { %v8720_v37 = vpop.f32.mrb[155].mxu1 }
 0x905   :  { %v8172_v53 = vadd.f32 %v8718_v49, %v8132_v32 }
 0x907   :  { %8177 = vst [vmem:[#allocation9] sm:$0x1] %v8172_v53 }
 0x908   :  { %9300 = shalt.err (!%p9297_p4)
}
 0x909   :  { %s9301_s12 = scalar_lea.hbm %s11777_s5, 16 }
 0x90a   :  { %p9302_p5 = scmp.ne.s32.totalorder %s11777_s5, %s9301_s12  ;;  %p9305_p6 = scmp.lt.u32.totalorder %s9301_s12, %s11777_s5 }
 0x90c   :  { %p9307_p7 = pnand %p9305_p6, %p9302_p5 }
 0x90e   :  { %9310 = shalt.err (!%p9307_p7)
}
 0x90f   :  { %8187 = dma.vmem_to_hbm [thread:$0]  %s8185_s9, 16, %s11777_s5, [#allocation10]  }
 0x910   :  { %9315 = dma.done.wait [#allocation10], 16  }
 0x911   :  { %9316 = vsyncadd [#allocation10], 4294967280 }
 0x912   :  { %8191 = vsyncpa [#allocation10], 1 }
 0x913   :  { %8192 = vsyncmov [#allocation8] }
 0x916   :  { %s8193_s19 = vpop.sfrf %8192 }
 0x917   :  { %p8448_p8 = scmp.ne.s32.totalorder %s8193_s19, 0 }
 0x919   :  { %8197 = shalt.err (%p8448_p8)  }
 0x91a   :  { %8199 = vsyncmov [#allocation8 + $0x1] }
 0x91d   :  { %s8200_s20 = vpop.sfrf %8199 }
 0x91e   :  { %p8449_p9 = scmp.ne.s32.totalorder %s8200_s20, 0 }
 0x920   :  { %8204 = shalt.err (%p8449_p9)  }

</bundles_post_ra>
